<compile_context>
chip_gen: v5e
topology: v5e:2x2
jax: 0.10.0
libtpu: 0.0.40
codegen_flags: <defaults>
</compile_context>

<pallas_src>
import functools

import jax
import jax.numpy as jnp
from jax.experimental import pallas as pl
from jax.experimental.pallas import tpu as pltpu

IN_FEATURES = 512
HIDDEN1 = 1024
HIDDEN2 = 1024
OUT = 43
OUT_PAD = 128          # lane-dense padded classifier width


def mlp_kernel(x_ref, w1_ref, b1_ref, b2_ref, b3_ref,   # BlockSpec-managed (VMEM)
               w2_hbm, w3_hbm,                           # raw HBM refs (pl.ANY)
               out_ref,
               w2_vmem, w3_vmem, sems):                  # scratch
    step = pl.program_id(0)

    # Kick off the layer-2 / classifier weight DMAs so they overlap the layer-1 dot.
    # Only on the first grid step; the VMEM scratch persists across steps.
    @pl.when(step == 0)
    def _():
        pltpu.make_async_copy(w2_hbm, w2_vmem, sems.at[0]).start()
        pltpu.make_async_copy(w3_hbm, w3_vmem, sems.at[1]).start()

    # dense1: Linear(512 -> 1024) + ReLU   (bf16 MXU inputs, f32 accumulate)
    x = x_ref[...].astype(jnp.bfloat16)
    h1 = jnp.dot(x, w1_ref[...], preferred_element_type=jnp.float32)
    h1 = jnp.maximum(h1 + b1_ref[...], 0.0)

    @pl.when(step == 0)
    def _():
        pltpu.make_async_copy(w2_hbm, w2_vmem, sems.at[0]).wait()

    # dense2: Linear(1024 -> 1024) + ReLU
    h2 = jnp.dot(h1.astype(jnp.bfloat16), w2_vmem[...],
                 preferred_element_type=jnp.float32)
    h2 = jnp.maximum(h2 + b2_ref[...], 0.0)

    @pl.when(step == 0)
    def _():
        pltpu.make_async_copy(w3_hbm, w3_vmem, sems.at[1]).wait()

    # classifier: Linear(1024 -> 43), zero-padded to 128 lanes for an unmasked store
    o = jnp.dot(h2.astype(jnp.bfloat16), w3_vmem[...],
                preferred_element_type=jnp.float32)
    out_ref[...] = (o + b3_ref[...]).astype(out_ref.dtype)


@functools.partial(jax.jit, static_argnames=("tm",))
def vgg11_split1_forward(x, w1, b1, w2, b2, w3p, b3p, *, tm=None):
    """x: (B, 512) f32.  w*: bf16 (in, out);  b*: f32 (1, out).
    w3p/b3p are zero-padded to OUT_PAD lanes.  Returns (B, 43) f32."""
    B = x.shape[0]
    if tm is None:
        if B <= 128:
            # Small batch: pad only to sublane granularity, single tile.
            tm = max(8, ((B + 7) // 8) * 8)
        else:
            # Large batch: big M tile to amortize per-step overhead / fill the MXU.
            tm = 256
    n_tiles = pl.cdiv(B, tm)
    b_pad = n_tiles * tm
    if b_pad != B:
        x = jnp.pad(x, ((0, b_pad - B), (0, 0)))

    flops = 2 * b_pad * (IN_FEATURES * HIDDEN1 + HIDDEN1 * HIDDEN2 + HIDDEN2 * OUT_PAD)
    bytes_accessed = (
        b_pad * IN_FEATURES * 4                                                 # x (f32)
        + 2 * (IN_FEATURES * HIDDEN1 + HIDDEN1 * HIDDEN2 + HIDDEN2 * OUT_PAD)   # bf16 weights
        + 4 * (HIDDEN1 + HIDDEN2 + OUT_PAD)                                     # f32 biases
        + b_pad * OUT_PAD * 4                                                   # output (f32)
    )

    out = pl.pallas_call(
        mlp_kernel,
        out_shape=jax.ShapeDtypeStruct((b_pad, OUT_PAD), jnp.float32),
        grid=(n_tiles,),
        in_specs=[
            pl.BlockSpec((tm, IN_FEATURES), lambda i: (i, 0)),        # x tile, pipelined
            pl.BlockSpec((IN_FEATURES, HIDDEN1), lambda i: (0, 0)),   # w1 resident
            pl.BlockSpec((1, HIDDEN1), lambda i: (0, 0)),             # b1
            pl.BlockSpec((1, HIDDEN2), lambda i: (0, 0)),             # b2
            pl.BlockSpec((1, OUT_PAD), lambda i: (0, 0)),             # b3 (padded)
            pl.BlockSpec(memory_space=pl.ANY),                        # w2 stays in HBM
            pl.BlockSpec(memory_space=pl.ANY),                        # w3 stays in HBM
        ],
        out_specs=pl.BlockSpec((tm, OUT_PAD), lambda i: (i, 0)),
        scratch_shapes=[
            pltpu.VMEM((HIDDEN1, HIDDEN2), jnp.bfloat16),   # w2 single-copy resident
            pltpu.VMEM((HIDDEN2, OUT_PAD), jnp.bfloat16),   # w3 single-copy resident
            pltpu.SemaphoreType.DMA((2,)),
        ],
        compiler_params=pltpu.CompilerParams(
            dimension_semantics=("arbitrary",)),
        cost_estimate=pl.CostEstimate(flops=flops, transcendentals=0,
                                      bytes_accessed=bytes_accessed),
    )(x, w1, b1, b2, b3p, w2, w3p)

    return out[:B, :OUT]


def init_params(key):
    """Deterministic init mimicking nn.Linear's uniform(-1/sqrt(fan_in), +...) ranges.
    Weights stored (in, out) — transposed vs PyTorch's (out, in) — and cast to bf16."""
    ks = jax.random.split(key, 6)

    def linear(kw, kb, fan_in, fan_out):
        bound = 1.0 / jnp.sqrt(fan_in)
        w = jax.random.uniform(kw, (fan_in, fan_out), jnp.float32, -bound, bound)
        b = jax.random.uniform(kb, (1, fan_out), jnp.float32, -bound, bound)
        return w, b

    w1, b1 = linear(ks[0], ks[1], IN_FEATURES, HIDDEN1)
    w2, b2 = linear(ks[2], ks[3], HIDDEN1, HIDDEN2)
    w3, b3 = linear(ks[4], ks[5], HIDDEN2, OUT)
    # Pad the classifier to a lane-dense 128-wide output; zeros contribute nothing.
    w3p = jnp.pad(w3, ((0, 0), (0, OUT_PAD - OUT)))
    b3p = jnp.pad(b3, ((0, 0), (0, OUT_PAD - OUT)))
    return (w1.astype(jnp.bfloat16), b1,
            w2.astype(jnp.bfloat16), b2,
            w3p.astype(jnp.bfloat16), b3p)


def ref_forward(x, w1, b1, w2, b2, w3p, b3p):
    """Pure-JAX reference replicating the kernel's bf16-input / f32-accumulate math."""
    def mm(a, w):
        return jnp.dot(a.astype(jnp.bfloat16), w, preferred_element_type=jnp.float32)
    h1 = jnp.maximum(mm(x, w1) + b1, 0.0)
    h2 = jnp.maximum(mm(h1, w2) + b2, 0.0)
    return (mm(h2, w3p) + b3p)[:, :OUT]


if __name__ == "__main__":
    key = jax.random.PRNGKey(0)
    kx, kx2, kp = jax.random.split(key, 3)
    params = init_params(kp)

    # Small-batch path (single tile, sublane-granular padding).
    batch = 8
    x = jax.random.normal(kx, (batch, IN_FEATURES), jnp.float32)
    out = vgg11_split1_forward(x, *params)
    jax.block_until_ready(out)
    ref = ref_forward(x, *params)
    assert out.shape == (batch, OUT), out.shape
    assert jnp.allclose(out, ref, atol=1e-2, rtol=1e-2), float(jnp.max(jnp.abs(out - ref)))

    # Multi-tile path (tm=256, 2 grid steps) to exercise the resident-weight guard.
    batch2 = 300
    x2 = jax.random.normal(kx2, (batch2, IN_FEATURES), jnp.float32)
    out2 = vgg11_split1_forward(x2, *params)
    jax.block_until_ready(out2)
    ref2 = ref_forward(x2, *params)
    assert out2.shape == (batch2, OUT), out2.shape
    assert jnp.allclose(out2, ref2, atol=1e-2, rtol=1e-2), float(jnp.max(jnp.abs(out2 - ref2)))

    print("KERNEL_OK")
</pallas_src>

<mosaic_0001>
module attributes {stable_mosaic.version = 11 : i64} {
  func.func @mlp_kernel(%arg0: i32, %arg1: memref<8x512xf32, #tpu.memory_space<vmem>>, %arg2: memref<512x1024xbf16, #tpu.memory_space<vmem>>, %arg3: memref<1x1024xf32, #tpu.memory_space<vmem>>, %arg4: memref<1x1024xf32, #tpu.memory_space<vmem>>, %arg5: memref<1x128xf32, #tpu.memory_space<vmem>>, %arg6: memref<1024x1024xbf16, #tpu.memory_space<any>>, %arg7: memref<1024x128xbf16, #tpu.memory_space<any>>, %arg8: memref<8x128xf32, #tpu.memory_space<vmem>>, %arg9: memref<1024x1024xbf16, #tpu.memory_space<vmem>>, %arg10: memref<1024x128xbf16, #tpu.memory_space<vmem>>, %arg11: memref<2x!tpu.dma_semaphore, #tpu.memory_space<semaphore_mem>>) attributes {dimension_semantics = [#tpu.dimension_semantics<arbitrary>], iteration_bounds = array<i64: 1>, scalar_prefetch = 0 : i64, scratch_operands = 3 : i64, tpu.core_type = #tpu.core_type<tc>, window_params = [{transform_indices = @transform_0, window_bounds = array<i64: 8, 512>}, {pipeline_mode = #tpu.pipeline_mode<synchronous>, transform_indices = @transform_1, window_bounds = array<i64: 512, 1024>}, {pipeline_mode = #tpu.pipeline_mode<synchronous>, transform_indices = @transform_2, window_bounds = array<i64: 1, 1024>}, {pipeline_mode = #tpu.pipeline_mode<synchronous>, transform_indices = @transform_3, window_bounds = array<i64: 1, 1024>}, {pipeline_mode = #tpu.pipeline_mode<synchronous>, transform_indices = @transform_4, window_bounds = array<i64: 1, 128>}, {}, {}, {transform_indices = @transform_7, window_bounds = array<i64: 8, 128>}]} {
    %c0_i32 = arith.constant 0 : i32
    %0 = arith.cmpi eq, %arg0, %c0_i32 : i32
    %1 = arith.extui %0 : i1 to i32
    %c0_i32_0 = arith.constant 0 : i32
    %2 = arith.cmpi ne, %1, %c0_i32_0 : i32
    scf.if %2 {
      %c0_i32_24 = arith.constant 0 : i32
      %33 = tpu.memref_slice %arg11[%c0_i32_24] : memref<2x!tpu.dma_semaphore, #tpu.memory_space<semaphore_mem>> -> memref<1x!tpu.dma_semaphore, #tpu.memory_space<semaphore_mem>>
      %34 = tpu.memref_squeeze %33 : memref<1x!tpu.dma_semaphore, #tpu.memory_space<semaphore_mem>> -> memref<!tpu.dma_semaphore, #tpu.memory_space<semaphore_mem>>
      tpu.enqueue_dma source(%arg6 : memref<1024x1024xbf16, #tpu.memory_space<any>>) target(%arg9 : memref<1024x1024xbf16, #tpu.memory_space<vmem>>) target_semaphore(%34 : memref<!tpu.dma_semaphore, #tpu.memory_space<semaphore_mem>>)
      %c1_i32 = arith.constant 1 : i32
      %35 = tpu.memref_slice %arg11[%c1_i32] : memref<2x!tpu.dma_semaphore, #tpu.memory_space<semaphore_mem>> -> memref<1x!tpu.dma_semaphore, #tpu.memory_space<semaphore_mem>>
      %36 = tpu.memref_squeeze %35 : memref<1x!tpu.dma_semaphore, #tpu.memory_space<semaphore_mem>> -> memref<!tpu.dma_semaphore, #tpu.memory_space<semaphore_mem>>
      tpu.enqueue_dma source(%arg7 : memref<1024x128xbf16, #tpu.memory_space<any>>) target(%arg10 : memref<1024x128xbf16, #tpu.memory_space<vmem>>) target_semaphore(%36 : memref<!tpu.dma_semaphore, #tpu.memory_space<semaphore_mem>>)
    } else {
    }
    %c0 = arith.constant 0 : index
    %c0_1 = arith.constant 0 : index
    %3 = vector.load %arg1[%c0, %c0_1] : memref<8x512xf32, #tpu.memory_space<vmem>>, vector<8x512xf32>
    %4 = arith.truncf %3 : vector<8x512xf32> to vector<8x512xbf16>
    %c0_2 = arith.constant 0 : index
    %c0_3 = arith.constant 0 : index
    %5 = vector.load %arg2[%c0_2, %c0_3] : memref<512x1024xbf16, #tpu.memory_space<vmem>>, vector<512x1024xbf16>
    %cst = arith.constant dense<0.000000e+00> : vector<8x1024xf32>
    %6 = tpu.matmul %4, %5, %cst {dimension_numbers = #tpu.dot_dimension_numbers<[1], [0], [0], [1], [0, 0, 1, 1], [], []>} : vector<8x512xbf16>, vector<512x1024xbf16>, vector<8x1024xf32> -> vector<8x1024xf32>
    %c0_4 = arith.constant 0 : index
    %c0_5 = arith.constant 0 : index
    %7 = vector.load %arg3[%c0_4, %c0_5] : memref<1x1024xf32, #tpu.memory_space<vmem>>, vector<1x1024xf32>
    %8 = vector.broadcast %7 : vector<1x1024xf32> to vector<8x1024xf32>
    %9 = arith.addf %6, %8 : vector<8x1024xf32>
    %cst_6 = arith.constant 0.000000e+00 : f32
    %10 = vector.broadcast %cst_6 : f32 to vector<8x1024xf32>
    %11 = arith.maximumf %9, %10 : vector<8x1024xf32>
    %c0_i32_7 = arith.constant 0 : i32
    %12 = arith.cmpi eq, %arg0, %c0_i32_7 : i32
    %13 = arith.extui %12 : i1 to i32
    %c0_i32_8 = arith.constant 0 : i32
    %14 = arith.cmpi ne, %13, %c0_i32_8 : i32
    scf.if %14 {
      %c0_i32_24 = arith.constant 0 : i32
      %33 = tpu.memref_slice %arg11[%c0_i32_24] : memref<2x!tpu.dma_semaphore, #tpu.memory_space<semaphore_mem>> -> memref<1x!tpu.dma_semaphore, #tpu.memory_space<semaphore_mem>>
      %34 = tpu.memref_squeeze %33 : memref<1x!tpu.dma_semaphore, #tpu.memory_space<semaphore_mem>> -> memref<!tpu.dma_semaphore, #tpu.memory_space<semaphore_mem>>
      tpu.wait_dma2 semaphore(%34 : memref<!tpu.dma_semaphore, #tpu.memory_space<semaphore_mem>>) src(%arg6 : memref<1024x1024xbf16, #tpu.memory_space<any>>) dst(%arg9 : memref<1024x1024xbf16, #tpu.memory_space<vmem>>)
    } else {
    }
    %15 = arith.truncf %11 : vector<8x1024xf32> to vector<8x1024xbf16>
    %c0_9 = arith.constant 0 : index
    %c0_10 = arith.constant 0 : index
    %16 = vector.load %arg9[%c0_9, %c0_10] : memref<1024x1024xbf16, #tpu.memory_space<vmem>>, vector<1024x1024xbf16>
    %cst_11 = arith.constant dense<0.000000e+00> : vector<8x1024xf32>
    %17 = tpu.matmul %15, %16, %cst_11 {dimension_numbers = #tpu.dot_dimension_numbers<[1], [0], [0], [1], [0, 0, 1, 1], [], []>} : vector<8x1024xbf16>, vector<1024x1024xbf16>, vector<8x1024xf32> -> vector<8x1024xf32>
    %c0_12 = arith.constant 0 : index
    %c0_13 = arith.constant 0 : index
    %18 = vector.load %arg4[%c0_12, %c0_13] : memref<1x1024xf32, #tpu.memory_space<vmem>>, vector<1x1024xf32>
    %19 = vector.broadcast %18 : vector<1x1024xf32> to vector<8x1024xf32>
    %20 = arith.addf %17, %19 : vector<8x1024xf32>
    %cst_14 = arith.constant 0.000000e+00 : f32
    %21 = vector.broadcast %cst_14 : f32 to vector<8x1024xf32>
    %22 = arith.maximumf %20, %21 : vector<8x1024xf32>
    %c0_i32_15 = arith.constant 0 : i32
    %23 = arith.cmpi eq, %arg0, %c0_i32_15 : i32
    %24 = arith.extui %23 : i1 to i32
    %c0_i32_16 = arith.constant 0 : i32
    %25 = arith.cmpi ne, %24, %c0_i32_16 : i32
    scf.if %25 {
      %c1_i32 = arith.constant 1 : i32
      %33 = tpu.memref_slice %arg11[%c1_i32] : memref<2x!tpu.dma_semaphore, #tpu.memory_space<semaphore_mem>> -> memref<1x!tpu.dma_semaphore, #tpu.memory_space<semaphore_mem>>
      %34 = tpu.memref_squeeze %33 : memref<1x!tpu.dma_semaphore, #tpu.memory_space<semaphore_mem>> -> memref<!tpu.dma_semaphore, #tpu.memory_space<semaphore_mem>>
      tpu.wait_dma2 semaphore(%34 : memref<!tpu.dma_semaphore, #tpu.memory_space<semaphore_mem>>) src(%arg7 : memref<1024x128xbf16, #tpu.memory_space<any>>) dst(%arg10 : memref<1024x128xbf16, #tpu.memory_space<vmem>>)
    } else {
    }
    %26 = arith.truncf %22 : vector<8x1024xf32> to vector<8x1024xbf16>
    %c0_17 = arith.constant 0 : index
    %c0_18 = arith.constant 0 : index
    %27 = vector.load %arg10[%c0_17, %c0_18] : memref<1024x128xbf16, #tpu.memory_space<vmem>>, vector<1024x128xbf16>
    %cst_19 = arith.constant dense<0.000000e+00> : vector<8x128xf32>
    %28 = tpu.matmul %26, %27, %cst_19 {dimension_numbers = #tpu.dot_dimension_numbers<[1], [0], [0], [1], [0, 0, 1, 1], [], []>} : vector<8x1024xbf16>, vector<1024x128xbf16>, vector<8x128xf32> -> vector<8x128xf32>
    %c0_20 = arith.constant 0 : index
    %c0_21 = arith.constant 0 : index
    %29 = vector.load %arg5[%c0_20, %c0_21] : memref<1x128xf32, #tpu.memory_space<vmem>>, vector<1x128xf32>
    %30 = vector.broadcast %29 : vector<1x128xf32> to vector<8x128xf32>
    %31 = arith.addf %28, %30 : vector<8x128xf32>
    %c0_22 = arith.constant 0 : index
    %c0_23 = arith.constant 0 : index
    %32 = vector.load %arg8[%c0_22, %c0_23] : memref<8x128xf32, #tpu.memory_space<vmem>>, vector<8x128xf32>
    tpu.vector_store %arg8[%c0_22, %c0_23], %31 {strides = array<i32>} : memref<8x128xf32, #tpu.memory_space<vmem>>, vector<8x128xf32>,
    return
  }
  func.func @transform_0(%arg0: i32) -> (i32, i32) {
    %c0_i32 = arith.constant 0 : i32
    %c0_i32_0 = arith.constant 0 : i32
    return %arg0, %c0_i32 : i32, i32
  }
  func.func @transform_1(%arg0: i32) -> (i32, i32) {
    %c0_i32 = arith.constant 0 : i32
    %c0_i32_0 = arith.constant 0 : i32
    %c0_i32_1 = arith.constant 0 : i32
    return %c0_i32, %c0_i32_0 : i32, i32
  }
  func.func @transform_2(%arg0: i32) -> (i32, i32) {
    %c0_i32 = arith.constant 0 : i32
    %c0_i32_0 = arith.constant 0 : i32
    %c0_i32_1 = arith.constant 0 : i32
    return %c0_i32, %c0_i32_0 : i32, i32
  }
  func.func @transform_3(%arg0: i32) -> (i32, i32) {
    %c0_i32 = arith.constant 0 : i32
    %c0_i32_0 = arith.constant 0 : i32
    %c0_i32_1 = arith.constant 0 : i32
    return %c0_i32, %c0_i32_0 : i32, i32
  }
  func.func @transform_4(%arg0: i32) -> (i32, i32) {
    %c0_i32 = arith.constant 0 : i32
    %c0_i32_0 = arith.constant 0 : i32
    %c0_i32_1 = arith.constant 0 : i32
    return %c0_i32, %c0_i32_0 : i32, i32
  }
  func.func @transform_7(%arg0: i32) -> (i32, i32) {
    %c0_i32 = arith.constant 0 : i32
    %c0_i32_0 = arith.constant 0 : i32
    return %arg0, %c0_i32 : i32, i32
  }
}

</mosaic_0001>

<bundles_post_ra>
// kernel: vgg11_split1_forward.1
= control target key start
LH: loop header
LB: loop body
LE: loop exit
PB: predicated region body
PF: predicated region fallthrough
CT: control target
= control target key end

     0   :  { %12 = vsyncpa [#allocation6], 0  ;;  %s11432_s0 = inlined_call_operand.hbm [shape: f32[8,512], index: 0, kind: input, shape index: {}]   ;;  %s11433_s1 = inlined_call_operand.hbm [shape: bf16[512,1024], index: 1, kind: input, shape index: {}]   ;;  %s11434_s2 = inlined_call_operand.hbm [shape: f32[1,1024], index: 2, kind: input, shape index: {}]   ;;  %s11435_s3 = inlined_call_operand.hbm [shape: f32[1,1024], index: 3, kind: input, shape index: {}]   ;;  %s11436_s4 = inlined_call_operand.hbm [shape: f32[1,128], index: 4, kind: input, shape index: {}]   ;;  %s11437_s5 = inlined_call_operand.hbm [shape: bf16[1024,1024], index: 5, kind: input, shape index: {}]   ;;  %s11438_s6 = inlined_call_operand.hbm [shape: bf16[1024,128], index: 6, kind: input, shape index: {}]   ;;  %s11439_s7 = inlined_call_operand.hbm [shape: f32[8,128], index: 7, kind: output, shape index: {}]  }
   0x1   :  { %13 = vsyncpa [#allocation9], 0 }
   0x2   :  { %14 = vsyncpa [#allocation12], 0  ;;  %s31_s26 = sshll.u32 %s11433_s1, 4  ;;  %s32_s26 = int_to_ptr.hbm [resolvable:$true] %s31_s26 }
   0x3   :  { %15 = vsyncpa [#allocation7], 0  ;;  %s11103_s27 = smov [#allocation8]   ;;  %s56_s8 = sshll.u32 %s11435_s3, 4  ;;  %s57_s8 = int_to_ptr.hbm [resolvable:$true] %s56_s8 }
   0x4   :  { %s33_s28 = sshll.u32 %s11103_s27, 4  ;;  %s11104_s9 = smov 512   ;;  %s34_s28 = int_to_ptr.vmem [resolvable:$true] %s33_s28 }
   0x5   :  { %s11105_s10 = smov 32   ;;  %s11106_s11 = smov [#allocation11]  }
   0x6   :  { %39 = dma.hbm_to_vmem [thread:$0]  %s32_s26, 32768, %s34_s28, [#allocation9], %s11104_s9, %s11104_s9, %s11105_s10  }
   0x7   :  { %s58_s12 = sshll.u32 %s11106_s11, 4  ;;  %s21_s15 = sshll.u32 %s11432_s0, 4  ;;  %s59_s12 = int_to_ptr.vmem [resolvable:$true] %s58_s12  ;;  %s22_s15 = int_to_ptr.hbm [resolvable:$true] %s21_s15 }
   0x8   :  { %61 = dma.hbm_to_vmem [thread:$0]  %s57_s8, 128, %s59_s12, [#allocation12]  }
   0x9   :  { %s45_s17 = sshll.u32 %s11434_s2, 4  ;;  %s11107_s18 = smov [#allocation5]   ;;  %s46_s17 = int_to_ptr.hbm [resolvable:$true] %s45_s17 }
   0xa   :  { %s23_s19 = sshll.u32 %s11107_s18, 4  ;;  %s11108_s3 = smov [#allocation10]   ;;  %s24_s19 = int_to_ptr.vmem [resolvable:$true] %s23_s19 }
   0xb   :  { %26 = dma.hbm_to_vmem [thread:$0]  %s22_s15, 512, %s24_s19, [#allocation6]  }
   0xc   :  { %s47_s20 = sshll.u32 %s11108_s3, 4  ;;  %s67_s23 = sshll.u32 %s11436_s4, 4  ;;  %s48_s20 = int_to_ptr.vmem [resolvable:$true] %s47_s20  ;;  %s68_s23 = int_to_ptr.hbm [resolvable:$true] %s67_s23 }
   0xd   :  { %50 = dma.hbm_to_vmem [thread:$0]  %s46_s17, 128, %s48_s20, [#allocation9]  }
   0xe   :  { %s11109_s0 = smov [#allocation13]  }
   0xf   :  { %s69_s24 = sshll.u32 %s11109_s0, 4  ;;  %s70_s24 = int_to_ptr.vmem [resolvable:$true] %s69_s24 }
  0x10   :  { %72 = dma.hbm_to_vmem [thread:$0]  %s68_s23, 16, %s70_s24, [#allocation12]  }
  0x11   :  { %11091 = dma.done.wait [#allocation6], 512  }
  0x12   :  { %11092 = vsyncadd [#allocation6], 4294966784 }
  0x13   :  { %11093 = dma.done.wait [#allocation9], 32896  }
  0x14   :  { %11094 = vsyncadd [#allocation9], 4294934400 }
  0x15   :  { %11095 = dma.done.wait [#allocation12], 144  }
  0x16   :  { %11096 = vsyncadd [#allocation12], 4294967152  ;;  %v6950_v0 = vld [vmem:[#allocation8 + $0x1c0] sm:$0xf]  ;;  %s104_s25 = sshll.u32 %s11437_s5, 4  ;;  %s11110_s26 = smov [#allocation2]   ;;  %s105_s25 = int_to_ptr.hbm [resolvable:$true] %s104_s25 }
  0x17   :  { %v10114_v1 = vld [vmem:[#allocation8 + $0x1dc] sm:$0xf0]  ;;  %s106_s27 = sshll.u32 %s11110_s26, 4  ;;  %s118_s30 = sshll.u32 %s11438_s6, 4  ;;  %s107_s27 = int_to_ptr.vmem [resolvable:$true] %s106_s27  ;;  %s119_s30 = int_to_ptr.hbm [resolvable:$true] %s118_s30 }
  0x18   :  { %v7206_v2 = vld [vmem:[#allocation8 + $0x3c0] sm:$0xf]  ;;  %v6951_v3 = vor.u32 %v10114_v1, %v6950_v0  ;;  %109 = dma.hbm_to_vmem [thread:$0]  %s105_s25, 65536, %s107_s27, [#allocation4] }
  0x19   :  { %v10178_v4 = vld [vmem:[#allocation8 + $0x3dc] sm:$0xf0]  ;;  %s11111_s8 = smov [#allocation3]  }
  0x1a   :  { %v7462_v5 = vld [vmem:[#allocation8 + $0x5c0] sm:$0xf]  ;;  %v7207_v7 = vor.u32 %v10178_v4, %v7206_v2  ;;  %1686 = vmatpush.bf16.msra.mxu0 %v6951_v3  ;;  %s120_s9 = sshll.u32 %s11111_s8, 4  ;;  %s121_s9 = int_to_ptr.vmem [resolvable:$true] %s120_s9 }
  0x1b   :  { %v10242_v6 = vld [vmem:[#allocation8 + $0x5dc] sm:$0xf0]  ;;  %123 = dma.hbm_to_vmem [thread:$0]  %s119_s30, 8192, %s121_s9, [#allocation4 + $0x1] }
  0x1c   :  { %v7463_v8 = vor.u32 %v10242_v6, %v7462_v5  ;;  %v7718_v9 = vld [vmem:[#allocation8 + $0x7c0] sm:$0xf]  ;;  %1699 = vmatpush.bf16.msra.mxu1 %v7207_v7 }
  0x1d   :  { %v10306_v10 = vld [vmem:[#allocation8 + $0x7dc] sm:$0xf0] }
  0x1e   :  { %v6918_v11 = vld [vmem:[#allocation8 + $0x180] sm:$0xf]  ;;  %v7719_v12 = vor.u32 %v10306_v10, %v7718_v9  ;;  %1712 = vmatpush.bf16.msra.mxu2 %v7463_v8 }
  0x1f   :  { %v10106_v13 = vld [vmem:[#allocation8 + $0x19c] sm:$0xf0] }
  0x20   :  { %v7174_v14 = vld [vmem:[#allocation8 + $0x380] sm:$0xf]  ;;  %v6919_v16 = vor.u32 %v10106_v13, %v6918_v11  ;;  %1725 = vmatpush.bf16.msra.mxu3 %v7719_v12 }
  0x21   :  { %v10170_v15 = vld [vmem:[#allocation8 + $0x39c] sm:$0xf0] }
  0x22   :  { %v7175_v17 = vor.u32 %v10170_v15, %v7174_v14  ;;  %v7430_v18 = vld [vmem:[#allocation8 + $0x580] sm:$0xf]  ;;  %1687 = vmatpush.bf16.msra.mxu0 %v6919_v16 }
  0x23   :  { %v10234_v19 = vld [vmem:[#allocation8 + $0x59c] sm:$0xf0] }
  0x24   :  { %v7686_v20 = vld [vmem:[#allocation8 + $0x780] sm:$0xf]  ;;  %v7431_v21 = vor.u32 %v10234_v19, %v7430_v18  ;;  %1700 = vmatpush.bf16.msra.mxu1 %v7175_v17 }
  0x25   :  { %v10298_v22 = vld [vmem:[#allocation8 + $0x79c] sm:$0xf0] }
  0x26   :  { %v6886_v23 = vld [vmem:[#allocation8 + $0x140] sm:$0xf]  ;;  %v7687_v25 = vor.u32 %v10298_v22, %v7686_v20  ;;  %1713 = vmatpush.bf16.msra.mxu2 %v7431_v21 }
  0x27   :  { %v10098_v24 = vld [vmem:[#allocation8 + $0x15c] sm:$0xf0] }
  0x28   :  { %v7142_v26 = vld [vmem:[#allocation8 + $0x340] sm:$0xf]  ;;  %v6887_v29 = vor.u32 %v10098_v24, %v6886_v23  ;;  %1726 = vmatpush.bf16.msra.mxu3 %v7687_v25 }
  0x29   :  { %v10162_v27 = vld [vmem:[#allocation8 + $0x35c] sm:$0xf0] }
  0x2a   :  { %v7398_v28 = vld [vmem:[#allocation8 + $0x540] sm:$0xf]  ;;  %v7143_v33 = vor.u32 %v10162_v27, %v7142_v26  ;;  %1688 = vmatpush.bf16.msra.mxu0 %v6887_v29  ;;  %v6952_v29 = vld [vmem:[#allocation8 + $0x1e0] sm:$0xf0] }
  0x2b   :  { %v10226_v30 = vld [vmem:[#allocation8 + $0x55c] sm:$0xf0] }
  0x2c   :  { %v7654_v31 = vld [vmem:[#allocation8 + $0x740] sm:$0xf]  ;;  %v7399_v34 = vor.u32 %v10226_v30, %v7398_v28  ;;  %1701 = vmatpush.bf16.msra.mxu1 %v7143_v33  ;;  %v10110_v28 = vld [vmem:[#allocation8 + $0x1c4] sm:$0xf] }
  0x2d   :  { %v10290_v32 = vld [vmem:[#allocation8 + $0x75c] sm:$0xf0]  ;;  %v10174_v30 = vld [vmem:[#allocation8 + $0x3c4] sm:$0xf] }
  0x2e   :  { %v6854_v35 = vld [vmem:[#allocation8 + $0x100] sm:$0xf]  ;;  %v7655_v38 = vor.u32 %v10290_v32, %v7654_v31  ;;  %1714 = vmatpush.bf16.msra.mxu2 %v7399_v34  ;;  %v7208_v32 = vld [vmem:[#allocation8 + $0x3e0] sm:$0xf0] }
  0x2f   :  { %v10090_v36 = vld [vmem:[#allocation8 + $0x11c] sm:$0xf0]  ;;  %v10238_v33 = vld [vmem:[#allocation8 + $0x5c4] sm:$0xf] }
  0x30   :  { %v7110_v37 = vld [vmem:[#allocation8 + $0x300] sm:$0xf]  ;;  %v6855_v44 = vor.u32 %v10090_v36, %v6854_v35  ;;  %1727 = vmatpush.bf16.msra.mxu3 %v7655_v38  ;;  %v7464_v34 = vld [vmem:[#allocation8 + $0x5e0] sm:$0xf0] }
  0x31   :  { %v10154_v39 = vld [vmem:[#allocation8 + $0x31c] sm:$0xf0]  ;;  %v7720_v38 = vld [vmem:[#allocation8 + $0x7e0] sm:$0xf0] }
  0x32   :  { %v7366_v40 = vld [vmem:[#allocation8 + $0x500] sm:$0xf]  ;;  %v7111_v45 = vor.u32 %v10154_v39, %v7110_v37  ;;  %1689 = vmatpush.bf16.msra.mxu0 %v6855_v44  ;;  %v10302_v37 = vld [vmem:[#allocation8 + $0x7c4] sm:$0xf] }
  0x33   :  { %v10218_v41 = vld [vmem:[#allocation8 + $0x51c] sm:$0xf0]  ;;  %v6920_v44 = vld [vmem:[#allocation8 + $0x1a0] sm:$0xf0] }
  0x34   :  { %v7622_v42 = vld [vmem:[#allocation8 + $0x700] sm:$0xf]  ;;  %v7367_v46 = vor.u32 %v10218_v41, %v7366_v40  ;;  %1702 = vmatpush.bf16.msra.mxu1 %v7111_v45  ;;  %v6955_v40 = vor.u32 %v10110_v28, %v6952_v29  ;;  %v7211_v41 = vor.u32 %v10174_v30, %v7208_v32  ;;  %v10166_v45 = vld [vmem:[#allocation8 + $0x384] sm:$0xf] }
  0x35   :  { %v10282_v43 = vld [vmem:[#allocation8 + $0x71c] sm:$0xf0]  ;;  %v10206_v28 = vld [vmem:[#allocation8 + $0x4c4] sm:$0xf] }
  0x36   :  { %v6822_v47 = vld [vmem:[#allocation8 + $0xc0] sm:$0xf]  ;;  %v7623_v50 = vor.u32 %v10282_v43, %v7622_v42  ;;  %1715 = vmatpush.bf16.msra.mxu2 %v7367_v46  ;;  %v7467_v42 = vor.u32 %v10238_v33, %v7464_v34  ;;  %v10102_v43 = vld [vmem:[#allocation8 + $0x184] sm:$0xf]  ;;  %v7723_v46 = vor.u32 %v10302_v37, %v7720_v38 }
  0x37   :  { %v10082_v48 = vld [vmem:[#allocation8 + $0xdc] sm:$0xf0]  ;;  %v7336_v29 = vld [vmem:[#allocation8 + $0x4e0] sm:$0xf0] }
  0x38   :  { %v7078_v49 = vld [vmem:[#allocation8 + $0x2c0] sm:$0xf]  ;;  %v6823_v56 = vor.u32 %v10082_v48, %v6822_v47  ;;  %1728 = vmatpush.bf16.msra.mxu3 %v7623_v50  ;;  %v7176_v47 = vld [vmem:[#allocation8 + $0x3a0] sm:$0xf0]  ;;  %v7339_v34 = vor.u32 %v10206_v28, %v7336_v29  ;;  %v7438_v28 = vld [vmem:[#allocation8 + $0x588] sm:$0xf] }
  0x39   :  { %v10146_v51 = vld [vmem:[#allocation8 + $0x2dc] sm:$0xf0]  ;;  %v10230_v48 = vld [vmem:[#allocation8 + $0x584] sm:$0xf]  ;;  %v10235_v29 = vld [vmem:[#allocation8 + $0x5a4] sm:$0xf0] }
  0x3a   :  { %v7334_v52 = vld [vmem:[#allocation8 + $0x4c0] sm:$0xf]  ;;  %v7079_v57 = vor.u32 %v10146_v51, %v7078_v49  ;;  %1690 = vmatpush.bf16.msra.mxu0 %v6823_v56  ;;  %v7432_v49 = vld [vmem:[#allocation8 + $0x5a0] sm:$0xf0] }
  0x3b   :  { %v10210_v53 = vld [vmem:[#allocation8 + $0x4dc] sm:$0xf0]  ;;  %v10294_v50 = vld [vmem:[#allocation8 + $0x784] sm:$0xf] }
  0x3c   :  { %v7590_v54 = vld [vmem:[#allocation8 + $0x6c0] sm:$0xf]  ;;  %v7335_v58 = vor.u32 %v10210_v53, %v7334_v52  ;;  %1703 = vmatpush.bf16.msra.mxu1 %v7079_v57  ;;  %v7688_v51 = vld [vmem:[#allocation8 + $0x7a0] sm:$0xf0]  ;;  %v6923_v52 = vor.u32 %v10102_v43, %v6920_v44 }
  0x3d   :  { %v10274_v55 = vld [vmem:[#allocation8 + $0x6dc] sm:$0xf0]  ;;  %v10094_v53 = vld [vmem:[#allocation8 + $0x144] sm:$0xf] }
  0x3e   :  { %v6790_v59 = vld [vmem:[#allocation8 + $0x80] sm:$0xf]  ;;  %v7591_v62 = vor.u32 %v10274_v55, %v7590_v54  ;;  %1716 = vmatpush.bf16.msra.mxu2 %v7335_v58  ;;  %v7179_v54 = vor.u32 %v10166_v45, %v7176_v47  ;;  %v7435_v55 = vor.u32 %v10230_v48, %v7432_v49  ;;  %v6888_v56 = vld [vmem:[#allocation8 + $0x160] sm:$0xf0] }
  0x3f   :  { %v10074_v60 = vld [vmem:[#allocation8 + $0x9c] sm:$0xf0]  ;;  %v10158_v57 = vld [vmem:[#allocation8 + $0x344] sm:$0xf] }
  0x40   :  { %v7046_v61 = vld [vmem:[#allocation8 + $0x280] sm:$0xf]  ;;  %v6791_v4 = vor.u32 %v10074_v60, %v6790_v59  ;;  %1729 = vmatpush.bf16.msra.mxu3 %v7591_v62  ;;  %v7144_v58 = vld [vmem:[#allocation8 + $0x360] sm:$0xf0]  ;;  %v7691_v59 = vor.u32 %v10294_v50, %v7688_v51 }
  0x41   :  { %v10138_v63 = vld [vmem:[#allocation8 + $0x29c] sm:$0xf0]  ;;  %v10222_v60 = vld [vmem:[#allocation8 + $0x544] sm:$0xf] }
  0x42   :  { %v7302_v0 = vld [vmem:[#allocation8 + $0x480] sm:$0xf]  ;;  %v7047_v5 = vor.u32 %v10138_v63, %v7046_v61  ;;  %1691 = vmatpush.bf16.msra.mxu0 %v6791_v4  ;;  %v7400_v61 = vld [vmem:[#allocation8 + $0x560] sm:$0xf0] }
  0x43   :  { %v10202_v1 = vld [vmem:[#allocation8 + $0x49c] sm:$0xf0]  ;;  %v10286_v62 = vld [vmem:[#allocation8 + $0x744] sm:$0xf]  ;;  %v7403_v4 = vor.u32 %v10222_v60, %v7400_v61 }
  0x44   :  { %v7558_v2 = vld [vmem:[#allocation8 + $0x680] sm:$0xf]  ;;  %v7303_v6 = vor.u32 %v10202_v1, %v7302_v0  ;;  %1704 = vmatpush.bf16.msra.mxu1 %v7047_v5  ;;  %v7656_v63 = vld [vmem:[#allocation8 + $0x760] sm:$0xf0]  ;;  %v6891_v0 = vor.u32 %v10094_v53, %v6888_v56  ;;  %v7147_v1 = vor.u32 %v10158_v57, %v7144_v58 }
  0x45   :  { %v10266_v3 = vld [vmem:[#allocation8 + $0x69c] sm:$0xf0]  ;;  %v10086_v5 = vld [vmem:[#allocation8 + $0x104] sm:$0xf] }
  0x46   :  { %v6758_v7 = vld [vmem:[#allocation8 + $0x40] sm:$0xf]  ;;  %v7559_v10 = vor.u32 %v10266_v3, %v7558_v2  ;;  %1717 = vmatpush.bf16.msra.mxu2 %v7303_v6  ;;  %v126_v2 = vld [vmem:[#allocation5 + $0x10] sm:$0xff]  ;;  %v127_v3 = vld [vmem:[#allocation5 + $0x18] sm:$0xff] }
  0x47   :  { %v10066_v8 = vld [vmem:[#allocation8 + $0x5c] sm:$0xf0]  ;;  %v6856_v6 = vld [vmem:[#allocation8 + $0x120] sm:$0xf0] }
  0x48   :  { %v7014_v9 = vld [vmem:[#allocation8 + $0x240] sm:$0xf]  ;;  %v6759_v16 = vor.u32 %v10066_v8, %v6758_v7  ;;  %1730 = vmatpush.bf16.msra.mxu3 %v7559_v10  ;;  %v10150_v7 = vld [vmem:[#allocation8 + $0x304] sm:$0xf]  ;;  %v11168_v8 = vpack.c.bf16 %v126_v2, %v126_v2  ;;  %v7659_v10 = vor.u32 %v10286_v62, %v7656_v63 }
  0x49   :  { %v10130_v11 = vld [vmem:[#allocation8 + $0x25c] sm:$0xf0]  ;;  %v10270_v30 = vld [vmem:[#allocation8 + $0x6c4] sm:$0xf] }
  0x4a   :  { %v7270_v12 = vld [vmem:[#allocation8 + $0x440] sm:$0xf]  ;;  %v7015_v19 = vor.u32 %v10130_v11, %v7014_v9  ;;  %1692 = vmatpush.bf16.msra.mxu0 %v6759_v16  ;;  %v11170_v9 = vpack.c.bf16 %v127_v3, %v127_v3  ;;  %v7112_v11 = vld [vmem:[#allocation8 + $0x320] sm:$0xf0] }
  0x4b   :  { %v10194_v13 = vld [vmem:[#allocation8 + $0x45c] sm:$0xf0]  ;;  %v10134_v37 = vld [vmem:[#allocation8 + $0x284] sm:$0xf] }
  0x4c   :  { %v7526_v14 = vld [vmem:[#allocation8 + $0x640] sm:$0xf]  ;;  %v7271_v20 = vor.u32 %v10194_v13, %v7270_v12  ;;  %1705 = vmatpush.bf16.msra.mxu1 %v7015_v19  ;;  %v10214_v12 = vld [vmem:[#allocation8 + $0x504] sm:$0xf]  ;;  %v125_v19 = vld [vmem:[#allocation5 + $0x8] sm:$0xff] }
  0x4d   :  { %v10258_v15 = vld [vmem:[#allocation8 + $0x65c] sm:$0xf0]  ;;  %v7368_v13 = vld [vmem:[#allocation8 + $0x520] sm:$0xf0] }
  0x4e   :  { %v6726_v17 = vld [vmem:[#allocation8] sm:$0xf]  ;;  %v7527_v24 = vor.u32 %v10258_v15, %v7526_v14  ;;  %1718 = vmatpush.bf16.msra.mxu2 %v7271_v20  ;;  %v10278_v14 = vld [vmem:[#allocation8 + $0x704] sm:$0xf]  ;;  %v7115_v20 = vor.u32 %v10150_v7, %v7112_v11  ;;  %v7470_v11 = vld [vmem:[#allocation8 + $0x5c8] sm:$0xf] }
  0x4f   :  { %v10058_v18 = vld [vmem:[#allocation8 + $0x1c] sm:$0xf0]  ;;  %v7624_v15 = vld [vmem:[#allocation8 + $0x720] sm:$0xf0] }
  0x50   :  { %v6982_v21 = vld [vmem:[#allocation8 + $0x200] sm:$0xf]  ;;  %v6727_v31 = vor.u32 %v10058_v18, %v6726_v17  ;;  %1731 = vmatpush.bf16.msra.mxu3 %v7527_v24  ;;  %v6859_v17 = vor.u32 %v10086_v5, %v6856_v6  ;;  %v10142_v24 = vld [vmem:[#allocation8 + $0x2c4] sm:$0xf]  ;;  %v10115_v5 = vld [vmem:[#allocation8 + $0x1e4] sm:$0xf0] }
  0x51   :  { %v10122_v22 = vld [vmem:[#allocation8 + $0x21c] sm:$0xf0]  ;;  %v7560_v43 = vld [vmem:[#allocation8 + $0x6a0] sm:$0xf0]  ;;  %v7214_v6 = vld [vmem:[#allocation8 + $0x3c8] sm:$0xf] }
  0x52   :  { %v7238_v23 = vld [vmem:[#allocation8 + $0x400] sm:$0xf]  ;;  %v6983_v35 = vor.u32 %v10122_v22, %v6982_v21  ;;  %1693 = vmatpush.bf16.msra.mxu0 %v6727_v31  ;;  %v7371_v21 = vor.u32 %v10214_v12, %v7368_v13  ;;  %v10078_v22 = vld [vmem:[#allocation8 + $0xc4] sm:$0xf]  ;;  %v10243_v12 = vld [vmem:[#allocation8 + $0x5e4] sm:$0xf0] }
  0x53   :  { %v10186_v25 = vld [vmem:[#allocation8 + $0x41c] sm:$0xf0]  ;;  %v7592_v31 = vld [vmem:[#allocation8 + $0x6e0] sm:$0xf0] }
  0x54   :  { %v7494_v26 = vld [vmem:[#allocation8 + $0x600] sm:$0xf]  ;;  %v7239_v36 = vor.u32 %v10186_v25, %v7238_v23  ;;  %1706 = vmatpush.bf16.msra.mxu1 %v6983_v35  ;;  %v6824_v23 = vld [vmem:[#allocation8 + $0xe0] sm:$0xf0]  ;;  %v11176_v25 = vpack.c.bf16 %v125_v19, %v125_v19  ;;  %v7595_v38 = vor.u32 %v10270_v30, %v7592_v31  ;;  %v7694_v30 = vld [vmem:[#allocation8 + $0x788] sm:$0xf] }
  0x55   :  { %v10250_v27 = vld [vmem:[#allocation8 + $0x61c] sm:$0xf0]  ;;  %v6827_v32 = vor.u32 %v10078_v22, %v6824_v23  ;;  %v10070_v35 = vld [vmem:[#allocation8 + $0x84] sm:$0xf]  ;;  %v6926_v22 = vld [vmem:[#allocation8 + $0x188] sm:$0xf] }
  0x56   :  { %v7495_v39 = vor.u32 %v10250_v27, %v7494_v26  ;;  %1719 = vmatpush.bf16.msra.mxu2 %v7239_v36  ;;  %1738 = vmatpush.bf16.msrb.mxu0 %v6955_v40  ;;  %v124_v16 = vld [vmem:[#allocation5] sm:$0xff]  ;;  %v7627_v26 = vor.u32 %v10278_v14, %v7624_v15  ;;  %v7726_v15 = vld [vmem:[#allocation8 + $0x7c8] sm:$0xf] }
  0x57   :  { %v11174_v18 = vpack.c.bf16 %v124_v16, %v124_v16  ;;  %v7080_v27 = vld [vmem:[#allocation8 + $0x2e0] sm:$0xf0]  ;;  %1707 = vmatmul.bf16.vlgmr.msra.gmra.mxu1 %v11176_v25  ;;  %v10307_v16 = vld [vmem:[#allocation8 + $0x7e4] sm:$0xf0] }
  0x58   :  { %1732 = vmatpush.bf16.msra.mxu3 %v7495_v39  ;;  %1751 = vmatpush.bf16.msrb.mxu1 %v7211_v41  ;;  %v7083_v33 = vor.u32 %v10142_v24, %v7080_v27  ;;  %v6792_v36 = vld [vmem:[#allocation8 + $0xa0] sm:$0xf0]  ;;  %v10107_v23 = vld [vmem:[#allocation8 + $0x1a4] sm:$0xf0] }
  0x59   :  { %1720 = vmatmul.bf16.vlgmr.msra.gmra.mxu2 %v11168_v8  ;;  %1694 = vmatmul.bf16.vlgmr.msra.gmra.mxu0 %v11174_v18  ;;  %v7048_v39 = vld [vmem:[#allocation8 + $0x2a0] sm:$0xf0]  ;;  %v6795_v44 = vor.u32 %v10070_v35, %v6792_v36  ;;  %v7182_v24 = vld [vmem:[#allocation8 + $0x388] sm:$0xf] }
  0x5a   :  { %1764 = vmatpush.bf16.msrb.mxu2 %v7467_v42  ;;  %1739 = vmatpush.bf16.msrb.mxu0 %v6923_v52  ;;  %v10198_v40 = vld [vmem:[#allocation8 + $0x484] sm:$0xf]  ;;  %v7051_v45 = vor.u32 %v10134_v37, %v7048_v39  ;;  %v10171_v27 = vld [vmem:[#allocation8 + $0x3a4] sm:$0xf0] }
  0x5b   :  { %1733 = vmatmul.bf16.vlgmr.msra.gmra.mxu3 %v11170_v9  ;;  %v7304_v41 = vld [vmem:[#allocation8 + $0x4a0] sm:$0xf0]  ;;  %v10299_v31 = vld [vmem:[#allocation8 + $0x7a4] sm:$0xf0] }
  0x5c   :  { %1777 = vmatpush.bf16.msrb.mxu3 %v7723_v46  ;;  %1752 = vmatpush.bf16.msrb.mxu1 %v7179_v54  ;;  %v10262_v42 = vld [vmem:[#allocation8 + $0x684] sm:$0xf]  ;;  %v7307_v46 = vor.u32 %v10198_v40, %v7304_v41  ;;  %v6894_v35 = vld [vmem:[#allocation8 + $0x148] sm:$0xf] }
  0x5d   :  { %v10062_v47 = vld [vmem:[#allocation8 + $0x44] sm:$0xf]  ;;  %v7563_v50 = vor.u32 %v10262_v42, %v7560_v43  ;;  %v10099_v36 = vld [vmem:[#allocation8 + $0x164] sm:$0xf0] }
  0x5e   :  { %1765 = vmatpush.bf16.msrb.mxu2 %v7435_v55  ;;  %1740 = vmatpush.bf16.msrb.mxu0 %v6891_v0  ;;  %v6760_v48 = vld [vmem:[#allocation8 + $0x60] sm:$0xf0]  ;;  %v7150_v37 = vld [vmem:[#allocation8 + $0x348] sm:$0xf] }
  0x5f   :  { %v10126_v49 = vld [vmem:[#allocation8 + $0x244] sm:$0xf]  ;;  %v6763_v56 = vor.u32 %v10062_v47, %v6760_v48  ;;  %v10163_v39 = vld [vmem:[#allocation8 + $0x364] sm:$0xf0] }
  0x60   :  { %1778 = vmatpush.bf16.msrb.mxu3 %v7691_v59  ;;  %1753 = vmatpush.bf16.msrb.mxu1 %v7147_v1  ;;  %v7016_v51 = vld [vmem:[#allocation8 + $0x260] sm:$0xf0]  ;;  %v7406_v40 = vld [vmem:[#allocation8 + $0x548] sm:$0xf] }
  0x61   :  { %v10190_v52 = vld [vmem:[#allocation8 + $0x444] sm:$0xf]  ;;  %v7019_v59 = vor.u32 %v10126_v49, %v7016_v51  ;;  %v10227_v41 = vld [vmem:[#allocation8 + $0x564] sm:$0xf0] }
  0x62   :  { %1766 = vmatpush.bf16.msrb.mxu2 %v7403_v4  ;;  %1741 = vmatpush.bf16.msrb.mxu0 %v6859_v17  ;;  %v7272_v53 = vld [vmem:[#allocation8 + $0x460] sm:$0xf0]  ;;  %v6958_v4 = vld [vmem:[#allocation8 + $0x1c8] sm:$0xf] }
  0x63   :  { %v10254_v54 = vld [vmem:[#allocation8 + $0x644] sm:$0xf]  ;;  %v7275_v60 = vor.u32 %v10190_v52, %v7272_v53  ;;  %v6959_v19 = vor.u32 %v10115_v5, %v6958_v4  ;;  %v7662_v42 = vld [vmem:[#allocation8 + $0x748] sm:$0xf] }
  0x64   :  { %1779 = vmatpush.bf16.msrb.mxu3 %v7659_v10  ;;  %1754 = vmatpush.bf16.msrb.mxu1 %v7115_v20  ;;  %v7528_v55 = vld [vmem:[#allocation8 + $0x660] sm:$0xf0]  ;;  %v10179_v10 = vld [vmem:[#allocation8 + $0x3e4] sm:$0xf0] }
  0x65   :  { %v10054_v57 = vld [vmem:[#allocation8 + $0x4] sm:$0xf]  ;;  %v7531_v0 = vor.u32 %v10254_v54, %v7528_v55  ;;  %v7215_v20 = vor.u32 %v10179_v10, %v7214_v6  ;;  %v10291_v43 = vld [vmem:[#allocation8 + $0x764] sm:$0xf0] }
  0x66   :  { %1767 = vmatpush.bf16.msrb.mxu2 %v7371_v21  ;;  %1742 = vmatpush.bf16.msrb.mxu0 %v6827_v32  ;;  %v6728_v58 = vld [vmem:[#allocation8 + $0x20] sm:$0xf0]  ;;  %v7471_v21 = vor.u32 %v10243_v12, %v7470_v11  ;;  %v6927_v32 = vor.u32 %v10107_v23, %v6926_v22  ;;  %v6862_v47 = vld [vmem:[#allocation8 + $0x108] sm:$0xf] }
  0x67   :  { %v10118_v61 = vld [vmem:[#allocation8 + $0x204] sm:$0xf]  ;;  %v6731_v7 = vor.u32 %v10054_v57, %v6728_v58  ;;  %v10091_v48 = vld [vmem:[#allocation8 + $0x124] sm:$0xf0] }
  0x68   :  { %1780 = vmatpush.bf16.msrb.mxu3 %v7627_v26  ;;  %1755 = vmatpush.bf16.msrb.mxu1 %v7083_v33  ;;  %v6984_v62 = vld [vmem:[#allocation8 + $0x220] sm:$0xf0]  ;;  %v7727_v26 = vor.u32 %v10307_v16, %v7726_v15  ;;  %v7183_v33 = vor.u32 %v10171_v27, %v7182_v24  ;;  %v7118_v49 = vld [vmem:[#allocation8 + $0x308] sm:$0xf] }
  0x69   :  { %v10182_v63 = vld [vmem:[#allocation8 + $0x404] sm:$0xf]  ;;  %v6987_v13 = vor.u32 %v10118_v61, %v6984_v62  ;;  %v10155_v51 = vld [vmem:[#allocation8 + $0x324] sm:$0xf0] }
  0x6a   :  { %1768 = vmatpush.bf16.msrb.mxu2 %v7339_v34  ;;  %1743 = vmatpush.bf16.msrb.mxu0 %v6795_v44  ;;  %v7240_v1 = vld [vmem:[#allocation8 + $0x420] sm:$0xf0]  ;;  %v7439_v34 = vor.u32 %v10235_v29, %v7438_v28  ;;  %v6895_v44 = vor.u32 %v10099_v36, %v6894_v35  ;;  %v7374_v52 = vld [vmem:[#allocation8 + $0x508] sm:$0xf]  ;;  %v7119_v57 = vor.u32 %v10155_v51, %v7118_v49  ;;  %v10239_v49 = vld [vmem:[#allocation8 + $0x5cc] sm:$0xf] }
  0x6b   :  { %v10246_v2 = vld [vmem:[#allocation8 + $0x604] sm:$0xf]  ;;  %v7243_v14 = vor.u32 %v10182_v63, %v7240_v1  ;;  %v10219_v53 = vld [vmem:[#allocation8 + $0x524] sm:$0xf0] }
  0x6c   :  { %1781 = vmatpush.bf16.msrb.mxu3 %v7595_v38  ;;  %1756 = vmatpush.bf16.msrb.mxu1 %v7051_v45  ;;  %v7496_v3 = vld [vmem:[#allocation8 + $0x620] sm:$0xf0]  ;;  %v7695_v38 = vor.u32 %v10299_v31, %v7694_v30  ;;  %v7151_v45 = vor.u32 %v10163_v39, %v7150_v37  ;;  %v7630_v54 = vld [vmem:[#allocation8 + $0x708] sm:$0xf]  ;;  %v7375_v58 = vor.u32 %v10219_v53, %v7374_v52  ;;  %v10303_v53 = vld [vmem:[#allocation8 + $0x7cc] sm:$0xf] }
  0x6d   :  { %v7499_v17 = vor.u32 %v10246_v2, %v7496_v3  ;;  %v10283_v55 = vld [vmem:[#allocation8 + $0x724] sm:$0xf0] }
  0x6e   :  { %1769 = vmatpush.bf16.msrb.mxu2 %v7307_v46  ;;  %1744 = vmatpush.bf16.msrb.mxu0 %v6763_v56  ;;  %v7407_v46 = vor.u32 %v10227_v41, %v7406_v40  ;;  %v6863_v56 = vor.u32 %v10091_v48, %v6862_v47  ;;  %v7086_v61 = vld [vmem:[#allocation8 + $0x2c8] sm:$0xf]  ;;  %v7631_v62 = vor.u32 %v10283_v55, %v7630_v54  ;;  %v7216_v48 = vld [vmem:[#allocation8 + $0x3e8] sm:$0xf0] }
  0x6f   :  { %v10147_v63 = vld [vmem:[#allocation8 + $0x2e4] sm:$0xf0]  ;;  %v7728_v54 = vld [vmem:[#allocation8 + $0x7e8] sm:$0xf0] }
  0x70   :  { %1782 = vmatpush.bf16.msrb.mxu3 %v7563_v50  ;;  %1757 = vmatpush.bf16.msrb.mxu1 %v7019_v59  ;;  %v7663_v50 = vor.u32 %v10291_v43, %v7662_v42  ;;  %v6830_v59 = vld [vmem:[#allocation8 + $0xc8] sm:$0xf]  ;;  %v7087_v5 = vor.u32 %v10147_v63, %v7086_v61  ;;  %v10167_v61 = vld [vmem:[#allocation8 + $0x38c] sm:$0xf] }
  0x71   :  { %v10211_v1 = vld [vmem:[#allocation8 + $0x4e4] sm:$0xf0]  ;;  %v7184_v63 = vld [vmem:[#allocation8 + $0x3a8] sm:$0xf0] }
  0x72   :  { %1770 = vmatpush.bf16.msrb.mxu2 %v7275_v60  ;;  %1745 = vmatpush.bf16.msrb.mxu0 %v6731_v7  ;;  %v10083_v60 = vld [vmem:[#allocation8 + $0xe4] sm:$0xf0] }
  0x73   :  { %v7598_v2 = vld [vmem:[#allocation8 + $0x6c8] sm:$0xf]  ;;  %v6831_v4 = vor.u32 %v10083_v60, %v6830_v59  ;;  %v10103_v59 = vld [vmem:[#allocation8 + $0x18c] sm:$0xf] }
  0x74   :  { %1783 = vmatpush.bf16.msrb.mxu3 %v7531_v0  ;;  %1758 = vmatpush.bf16.msrb.mxu1 %v6987_v13  ;;  %v7342_v0 = vld [vmem:[#allocation8 + $0x4c8] sm:$0xf]  ;;  %v6928_v60 = vld [vmem:[#allocation8 + $0x1a8] sm:$0xf0] }
  0x75   :  { %1746 = vmatmul.bf16.vlgmr.msrb.gmra.mxu0 %v11174_v18  ;;  %v10275_v3 = vld [vmem:[#allocation8 + $0x6e4] sm:$0xf0]  ;;  %v7343_v6 = vor.u32 %v10211_v1, %v7342_v0  ;;  %v10231_v0 = vld [vmem:[#allocation8 + $0x58c] sm:$0xf] }
  0x76   :  { %1771 = vmatpush.bf16.msrb.mxu2 %v7243_v14  ;;  %1790 = vmatpush.bf16.msra.mxu0 %v6959_v19  ;;  %v6798_v7 = vld [vmem:[#allocation8 + $0x88] sm:$0xf]  ;;  %v7599_v12 = vor.u32 %v10275_v3, %v7598_v2  ;;  %v7440_v1 = vld [vmem:[#allocation8 + $0x5a8] sm:$0xf0] }
  0x77   :  { %1759 = vmatmul.bf16.vlgmr.msrb.gmra.mxu1 %v11176_v25  ;;  %v10075_v10 = vld [vmem:[#allocation8 + $0xa4] sm:$0xf0]  ;;  %v10295_v2 = vld [vmem:[#allocation8 + $0x78c] sm:$0xf] }
  0x78   :  { %1784 = vmatpush.bf16.msrb.mxu3 %v7499_v17  ;;  %1803 = vmatpush.bf16.msra.mxu1 %v7215_v20  ;;  %v7054_v11 = vld [vmem:[#allocation8 + $0x288] sm:$0xf]  ;;  %v6799_v19 = vor.u32 %v10075_v10, %v6798_v7  ;;  %v7696_v3 = vld [vmem:[#allocation8 + $0x7a8] sm:$0xf0] }
  0x79   :  { %1772 = vmatmul.bf16.vlgmr.msrb.gmra.mxu2 %v11168_v8  ;;  %v10139_v13 = vld [vmem:[#allocation8 + $0x2a4] sm:$0xf0]  ;;  %v10095_v7 = vld [vmem:[#allocation8 + $0x14c] sm:$0xf] }
  0x7a   :  { %1816 = vmatpush.bf16.msra.mxu2 %v7471_v21  ;;  %1791 = vmatpush.bf16.msra.mxu0 %v6927_v32  ;;  %v7310_v14 = vld [vmem:[#allocation8 + $0x488] sm:$0xf]  ;;  %v7055_v20 = vor.u32 %v10139_v13, %v7054_v11  ;;  %v6896_v10 = vld [vmem:[#allocation8 + $0x168] sm:$0xf0] }
  0x7b   :  { %1785 = vmatmul.bf16.vlgmr.msrb.gmra.mxu3 %v11170_v9  ;;  %v10203_v15 = vld [vmem:[#allocation8 + $0x4a4] sm:$0xf0]  ;;  %v10159_v11 = vld [vmem:[#allocation8 + $0x34c] sm:$0xf] }
  0x7c   :  { %1829 = vmatpush.bf16.msra.mxu3 %v7727_v26  ;;  %1804 = vmatpush.bf16.msra.mxu1 %v7183_v33  ;;  %v7566_v16 = vld [vmem:[#allocation8 + $0x688] sm:$0xf]  ;;  %v7311_v21 = vor.u32 %v10203_v15, %v7310_v14  ;;  %v7152_v13 = vld [vmem:[#allocation8 + $0x368] sm:$0xf0] }
  0x7d   :  { %v10267_v17 = vld [vmem:[#allocation8 + $0x6a4] sm:$0xf0]  ;;  %v10223_v14 = vld [vmem:[#allocation8 + $0x54c] sm:$0xf] }
  0x7e   :  { %1817 = vmatpush.bf16.msra.mxu2 %v7439_v34  ;;  %1792 = vmatpush.bf16.msra.mxu0 %v6895_v44  ;;  %v6766_v22 = vld [vmem:[#allocation8 + $0x48] sm:$0xf]  ;;  %v7567_v26 = vor.u32 %v10267_v17, %v7566_v16  ;;  %v10111_v44 = vld [vmem:[#allocation8 + $0x1cc] sm:$0xf] }
  0x7f   :  { %v10067_v23 = vld [vmem:[#allocation8 + $0x64] sm:$0xf0]  ;;  %v7408_v15 = vld [vmem:[#allocation8 + $0x568] sm:$0xf0] }
  0x80   :  { %1830 = vmatpush.bf16.msra.mxu3 %v7695_v38  ;;  %1805 = vmatpush.bf16.msra.mxu1 %v7151_v45  ;;  %v7022_v24 = vld [vmem:[#allocation8 + $0x248] sm:$0xf]  ;;  %v6767_v32 = vor.u32 %v10067_v23, %v6766_v22  ;;  %v6960_v45 = vld [vmem:[#allocation8 + $0x1e8] sm:$0xf0] }
  0x81   :  { %v10131_v27 = vld [vmem:[#allocation8 + $0x264] sm:$0xf0]  ;;  %v10287_v16 = vld [vmem:[#allocation8 + $0x74c] sm:$0xf] }
  0x82   :  { %1818 = vmatpush.bf16.msra.mxu2 %v7407_v46  ;;  %1793 = vmatpush.bf16.msra.mxu0 %v6863_v56  ;;  %v7278_v28 = vld [vmem:[#allocation8 + $0x448] sm:$0xf]  ;;  %v7023_v35 = vor.u32 %v10131_v27, %v7022_v24  ;;  %v10175_v46 = vld [vmem:[#allocation8 + $0x3cc] sm:$0xf]  ;;  %v6963_v56 = vor.u32 %v10111_v44, %v6960_v45 }
  0x83   :  { %v10195_v29 = vld [vmem:[#allocation8 + $0x464] sm:$0xf0]  ;;  %v7664_v17 = vld [vmem:[#allocation8 + $0x768] sm:$0xf0] }
  0x84   :  { %1831 = vmatpush.bf16.msra.mxu3 %v7663_v50  ;;  %1806 = vmatpush.bf16.msra.mxu1 %v7119_v57  ;;  %v7534_v30 = vld [vmem:[#allocation8 + $0x648] sm:$0xf]  ;;  %v7279_v36 = vor.u32 %v10195_v29, %v7278_v28  ;;  %v7472_v50 = vld [vmem:[#allocation8 + $0x5e8] sm:$0xf0]  ;;  %v7219_v57 = vor.u32 %v10175_v46, %v7216_v48 }
  0x85   :  { %v10259_v31 = vld [vmem:[#allocation8 + $0x664] sm:$0xf0]  ;;  %v10087_v22 = vld [vmem:[#allocation8 + $0x10c] sm:$0xf] }
  0x86   :  { %1819 = vmatpush.bf16.msra.mxu2 %v7375_v58  ;;  %1794 = vmatpush.bf16.msra.mxu0 %v6831_v4  ;;  %v6734_v33 = vld [vmem:[#allocation8 + $0x8] sm:$0xf]  ;;  %v7535_v40 = vor.u32 %v10259_v31, %v7534_v30  ;;  %v7475_v58 = vor.u32 %v10239_v49, %v7472_v50  ;;  %v6931_v4 = vor.u32 %v10103_v59, %v6928_v60  ;;  %v6864_v23 = vld [vmem:[#allocation8 + $0x128] sm:$0xf0] }
  0x87   :  { %v10059_v34 = vld [vmem:[#allocation8 + $0x24] sm:$0xf0]  ;;  %v10151_v24 = vld [vmem:[#allocation8 + $0x30c] sm:$0xf] }
  0x88   :  { %1832 = vmatpush.bf16.msra.mxu3 %v7631_v62  ;;  %1807 = vmatpush.bf16.msra.mxu1 %v7087_v5  ;;  %v6990_v37 = vld [vmem:[#allocation8 + $0x208] sm:$0xf]  ;;  %v6735_v47 = vor.u32 %v10059_v34, %v6734_v33  ;;  %v7731_v62 = vor.u32 %v10303_v53, %v7728_v54  ;;  %v7187_v5 = vor.u32 %v10167_v61, %v7184_v63  ;;  %v7120_v27 = vld [vmem:[#allocation8 + $0x328] sm:$0xf0] }
  0x89   :  { %v10123_v38 = vld [vmem:[#allocation8 + $0x224] sm:$0xf0]  ;;  %v10215_v28 = vld [vmem:[#allocation8 + $0x50c] sm:$0xf]  ;;  %v7123_v33 = vor.u32 %v10151_v24, %v7120_v27  ;;  %v7478_v24 = vld [vmem:[#allocation8 + $0x5d0] sm:$0xf] }
  0x8a   :  { %1820 = vmatpush.bf16.msra.mxu2 %v7343_v6  ;;  %1795 = vmatpush.bf16.msra.mxu0 %v6799_v19  ;;  %v7246_v39 = vld [vmem:[#allocation8 + $0x408] sm:$0xf]  ;;  %v6991_v51 = vor.u32 %v10123_v38, %v6990_v37  ;;  %v7443_v6 = vor.u32 %v10231_v0, %v7440_v1  ;;  %v6899_v19 = vor.u32 %v10095_v7, %v6896_v10  ;;  %v7376_v29 = vld [vmem:[#allocation8 + $0x528] sm:$0xf0] }
  0x8b   :  { %v10187_v41 = vld [vmem:[#allocation8 + $0x424] sm:$0xf0]  ;;  %v10279_v30 = vld [vmem:[#allocation8 + $0x70c] sm:$0xf]  ;;  %v7379_v34 = vor.u32 %v10215_v28, %v7376_v29  ;;  %v7734_v29 = vld [vmem:[#allocation8 + $0x7d0] sm:$0xf] }
  0x8c   :  { %1833 = vmatpush.bf16.msra.mxu3 %v7599_v12  ;;  %1808 = vmatpush.bf16.msra.mxu1 %v7055_v20  ;;  %v7502_v42 = vld [vmem:[#allocation8 + $0x608] sm:$0xf]  ;;  %v7247_v52 = vor.u32 %v10187_v41, %v7246_v39  ;;  %v7699_v12 = vor.u32 %v10295_v2, %v7696_v3  ;;  %v7155_v20 = vor.u32 %v10159_v11, %v7152_v13  ;;  %v7632_v31 = vld [vmem:[#allocation8 + $0x728] sm:$0xf0] }
  0x8d   :  { %v10251_v43 = vld [vmem:[#allocation8 + $0x624] sm:$0xf0]  ;;  %v10143_v37 = vld [vmem:[#allocation8 + $0x2cc] sm:$0xf]  ;;  %v7635_v38 = vor.u32 %v10279_v30, %v7632_v31  ;;  %v10308_v30 = vld [vmem:[#allocation8 + $0x7ec] sm:$0xf0] }
  0x8e   :  { %1821 = vmatpush.bf16.msra.mxu2 %v7311_v21  ;;  %1796 = vmatpush.bf16.msra.mxu0 %v6767_v32  ;;  %v7503_v55 = vor.u32 %v10251_v43, %v7502_v42  ;;  %v7411_v21 = vor.u32 %v10223_v14, %v7408_v15  ;;  %v6867_v32 = vor.u32 %v10087_v22, %v6864_v23  ;;  %v7088_v39 = vld [vmem:[#allocation8 + $0x2e8] sm:$0xf0]  ;;  %v10180_v23 = vld [vmem:[#allocation8 + $0x3ec] sm:$0xf0] }
  0x8f   :  { %v7344_v41 = vld [vmem:[#allocation8 + $0x4e8] sm:$0xf0]  ;;  %v7091_v45 = vor.u32 %v10143_v37, %v7088_v39  ;;  %v7190_v37 = vld [vmem:[#allocation8 + $0x390] sm:$0xf] }
  0x90   :  { %1834 = vmatpush.bf16.msra.mxu3 %v7567_v26  ;;  %1809 = vmatpush.bf16.msra.mxu1 %v7023_v35  ;;  %v7667_v26 = vor.u32 %v10287_v16, %v7664_v17  ;;  %v10079_v35 = vld [vmem:[#allocation8 + $0xcc] sm:$0xf]  ;;  %v10172_v39 = vld [vmem:[#allocation8 + $0x3ac] sm:$0xf0] }
  0x91   :  { %v10271_v42 = vld [vmem:[#allocation8 + $0x6cc] sm:$0xf] }
  0x92   :  { %1822 = vmatpush.bf16.msra.mxu2 %v7279_v36  ;;  %1797 = vmatpush.bf16.msra.mxu0 %v6735_v47  ;;  %v6832_v36 = vld [vmem:[#allocation8 + $0xe8] sm:$0xf0] }
  0x93   :  { %v7600_v43 = vld [vmem:[#allocation8 + $0x6e8] sm:$0xf0]  ;;  %v6835_v44 = vor.u32 %v10079_v35, %v6832_v36  ;;  %v6934_v35 = vld [vmem:[#allocation8 + $0x190] sm:$0xf] }
  0x94   :  { %1835 = vmatpush.bf16.msra.mxu3 %v7535_v40  ;;  %1810 = vmatpush.bf16.msra.mxu1 %v6991_v51  ;;  %v10207_v40 = vld [vmem:[#allocation8 + $0x4cc] sm:$0xf]  ;;  %v7603_v50 = vor.u32 %v10271_v42, %v7600_v43  ;;  %v10108_v36 = vld [vmem:[#allocation8 + $0x1ac] sm:$0xf0] }
  0x95   :  { %1798 = vmatmul.bf16.vlgmr.msra.gmra.mxu0 %v11174_v18  ;;  %v7347_v46 = vor.u32 %v10207_v40, %v7344_v41  ;;  %v10071_v47 = vld [vmem:[#allocation8 + $0x8c] sm:$0xf]  ;;  %v7446_v40 = vld [vmem:[#allocation8 + $0x590] sm:$0xf] }
  0x96   :  { %1823 = vmatpush.bf16.msra.mxu2 %v7247_v52  ;;  %1842 = vmatpush.bf16.msrb.mxu0 %v6963_v56  ;;  %v6800_v48 = vld [vmem:[#allocation8 + $0xa8] sm:$0xf0]  ;;  %v10236_v41 = vld [vmem:[#allocation8 + $0x5ac] sm:$0xf0] }
  0x97   :  { %1811 = vmatmul.bf16.vlgmr.msra.gmra.mxu1 %v11176_v25  ;;  %v10135_v49 = vld [vmem:[#allocation8 + $0x28c] sm:$0xf]  ;;  %v6803_v56 = vor.u32 %v10071_v47, %v6800_v48  ;;  %v7702_v42 = vld [vmem:[#allocation8 + $0x790] sm:$0xf] }
  0x98   :  { %1836 = vmatpush.bf16.msra.mxu3 %v7503_v55  ;;  %1855 = vmatpush.bf16.msrb.mxu1 %v7219_v57  ;;  %v7056_v51 = vld [vmem:[#allocation8 + $0x2a8] sm:$0xf0]  ;;  %v10300_v43 = vld [vmem:[#allocation8 + $0x7ac] sm:$0xf0] }
  0x99   :  { %1824 = vmatmul.bf16.vlgmr.msra.gmra.mxu2 %v11168_v8  ;;  %v10199_v52 = vld [vmem:[#allocation8 + $0x48c] sm:$0xf]  ;;  %v7059_v57 = vor.u32 %v10135_v49, %v7056_v51  ;;  %v6902_v47 = vld [vmem:[#allocation8 + $0x150] sm:$0xf] }
  0x9a   :  { %1868 = vmatpush.bf16.msrb.mxu2 %v7475_v58  ;;  %1843 = vmatpush.bf16.msrb.mxu0 %v6931_v4  ;;  %v7312_v53 = vld [vmem:[#allocation8 + $0x4a8] sm:$0xf0]  ;;  %v10100_v48 = vld [vmem:[#allocation8 + $0x16c] sm:$0xf0] }
  0x9b   :  { %1837 = vmatmul.bf16.vlgmr.msra.gmra.mxu3 %v11170_v9  ;;  %v10263_v54 = vld [vmem:[#allocation8 + $0x68c] sm:$0xf]  ;;  %v7315_v58 = vor.u32 %v10199_v52, %v7312_v53  ;;  %v7158_v49 = vld [vmem:[#allocation8 + $0x350] sm:$0xf] }
  0x9c   :  { %1881 = vmatpush.bf16.msrb.mxu3 %v7731_v62  ;;  %1856 = vmatpush.bf16.msrb.mxu1 %v7187_v5  ;;  %v7568_v55 = vld [vmem:[#allocation8 + $0x6a8] sm:$0xf0]  ;;  %v10164_v51 = vld [vmem:[#allocation8 + $0x36c] sm:$0xf0] }
  0x9d   :  { %v10063_v59 = vld [vmem:[#allocation8 + $0x4c] sm:$0xf]  ;;  %v7571_v62 = vor.u32 %v10263_v54, %v7568_v55  ;;  %v7414_v52 = vld [vmem:[#allocation8 + $0x550] sm:$0xf] }
  0x9e   :  { %1869 = vmatpush.bf16.msrb.mxu2 %v7443_v6  ;;  %1844 = vmatpush.bf16.msrb.mxu0 %v6899_v19  ;;  %v6768_v60 = vld [vmem:[#allocation8 + $0x68] sm:$0xf0]  ;;  %v6966_v19 = vld [vmem:[#allocation8 + $0x1d0] sm:$0xf] }
  0x9f   :  { %v10127_v61 = vld [vmem:[#allocation8 + $0x24c] sm:$0xf]  ;;  %v6771_v4 = vor.u32 %v10063_v59, %v6768_v60  ;;  %v10228_v53 = vld [vmem:[#allocation8 + $0x56c] sm:$0xf0] }
  0xa0   :  { %1882 = vmatpush.bf16.msrb.mxu3 %v7699_v12  ;;  %1857 = vmatpush.bf16.msrb.mxu1 %v7155_v20  ;;  %v7024_v63 = vld [vmem:[#allocation8 + $0x268] sm:$0xf0]  ;;  %v10116_v20 = vld [vmem:[#allocation8 + $0x1ec] sm:$0xf0] }
  0xa1   :  { %v10191_v0 = vld [vmem:[#allocation8 + $0x44c] sm:$0xf]  ;;  %v7027_v7 = vor.u32 %v10127_v61, %v7024_v63  ;;  %v7670_v54 = vld [vmem:[#allocation8 + $0x750] sm:$0xf] }
  0xa2   :  { %1870 = vmatpush.bf16.msrb.mxu2 %v7411_v21  ;;  %1845 = vmatpush.bf16.msrb.mxu0 %v6867_v32  ;;  %v7280_v1 = vld [vmem:[#allocation8 + $0x468] sm:$0xf0]  ;;  %v7222_v21 = vld [vmem:[#allocation8 + $0x3d0] sm:$0xf]  ;;  %v6967_v32 = vor.u32 %v10116_v20, %v6966_v19 }
  0xa3   :  { %v10255_v2 = vld [vmem:[#allocation8 + $0x64c] sm:$0xf]  ;;  %v7283_v10 = vor.u32 %v10191_v0, %v7280_v1  ;;  %v10292_v55 = vld [vmem:[#allocation8 + $0x76c] sm:$0xf0] }
  0xa4   :  { %1883 = vmatpush.bf16.msrb.mxu3 %v7667_v26  ;;  %1858 = vmatpush.bf16.msrb.mxu1 %v7123_v33  ;;  %v7536_v3 = vld [vmem:[#allocation8 + $0x668] sm:$0xf0]  ;;  %v10244_v26 = vld [vmem:[#allocation8 + $0x5ec] sm:$0xf0]  ;;  %v7223_v33 = vor.u32 %v10180_v23, %v7222_v21 }
  0xa5   :  { %v10055_v5 = vld [vmem:[#allocation8 + $0xc] sm:$0xf]  ;;  %v7539_v14 = vor.u32 %v10255_v2, %v7536_v3  ;;  %v6870_v59 = vld [vmem:[#allocation8 + $0x110] sm:$0xf] }
  0xa6   :  { %1871 = vmatpush.bf16.msrb.mxu2 %v7379_v34  ;;  %1846 = vmatpush.bf16.msrb.mxu0 %v6835_v44  ;;  %v6736_v6 = vld [vmem:[#allocation8 + $0x28] sm:$0xf0]  ;;  %v7479_v34 = vor.u32 %v10244_v26, %v7478_v24  ;;  %v6935_v44 = vor.u32 %v10108_v36, %v6934_v35  ;;  %v10092_v60 = vld [vmem:[#allocation8 + $0x12c] sm:$0xf0] }
  0xa7   :  { %v10119_v11 = vld [vmem:[#allocation8 + $0x20c] sm:$0xf]  ;;  %v6739_v22 = vor.u32 %v10055_v5, %v6736_v6  ;;  %v7126_v61 = vld [vmem:[#allocation8 + $0x310] sm:$0xf] }
  0xa8   :  { %1884 = vmatpush.bf16.msrb.mxu3 %v7635_v38  ;;  %1859 = vmatpush.bf16.msrb.mxu1 %v7091_v45  ;;  %v6992_v12 = vld [vmem:[#allocation8 + $0x228] sm:$0xf0]  ;;  %v7735_v38 = vor.u32 %v10308_v30, %v7734_v29  ;;  %v7191_v45 = vor.u32 %v10172_v39, %v7190_v37  ;;  %v10156_v63 = vld [vmem:[#allocation8 + $0x32c] sm:$0xf0] }
  0xa9   :  { %v10183_v13 = vld [vmem:[#allocation8 + $0x40c] sm:$0xf]  ;;  %v6995_v27 = vor.u32 %v10119_v11, %v6992_v12  ;;  %v7382_v0 = vld [vmem:[#allocation8 + $0x510] sm:$0xf]  ;;  %v7127_v5 = vor.u32 %v10156_v63, %v7126_v61  ;;  %v10240_v61 = vld [vmem:[#allocation8 + $0x5d4] sm:$0xf] }
  0xaa   :  { %1872 = vmatpush.bf16.msrb.mxu2 %v7347_v46  ;;  %1847 = vmatpush.bf16.msrb.mxu0 %v6803_v56  ;;  %v7248_v15 = vld [vmem:[#allocation8 + $0x428] sm:$0xf0]  ;;  %v7447_v46 = vor.u32 %v10236_v41, %v7446_v40  ;;  %v6903_v56 = vor.u32 %v10100_v48, %v6902_v47  ;;  %v10220_v1 = vld [vmem:[#allocation8 + $0x52c] sm:$0xf0] }
  0xab   :  { %v10247_v16 = vld [vmem:[#allocation8 + $0x60c] sm:$0xf]  ;;  %v7251_v28 = vor.u32 %v10183_v13, %v7248_v15  ;;  %v7638_v2 = vld [vmem:[#allocation8 + $0x710] sm:$0xf]  ;;  %v7383_v6 = vor.u32 %v10220_v1, %v7382_v0  ;;  %v10304_v1 = vld [vmem:[#allocation8 + $0x7d4] sm:$0xf] }
  0xac   :  { %1885 = vmatpush.bf16.msrb.mxu3 %v7603_v50  ;;  %1860 = vmatpush.bf16.msrb.mxu1 %v7059_v57  ;;  %v7504_v17 = vld [vmem:[#allocation8 + $0x628] sm:$0xf0]  ;;  %v7703_v50 = vor.u32 %v10300_v43, %v7702_v42  ;;  %v7159_v57 = vor.u32 %v10164_v51, %v7158_v49  ;;  %v10284_v3 = vld [vmem:[#allocation8 + $0x72c] sm:$0xf0] }
  0xad   :  { %v7507_v31 = vor.u32 %v10247_v16, %v7504_v17  ;;  %v7094_v11 = vld [vmem:[#allocation8 + $0x2d0] sm:$0xf]  ;;  %v7639_v12 = vor.u32 %v10284_v3, %v7638_v2  ;;  %v7736_v2 = vld [vmem:[#allocation8 + $0x7f0] sm:$0xf0] }
  0xae   :  { %1873 = vmatpush.bf16.msrb.mxu2 %v7315_v58  ;;  %1848 = vmatpush.bf16.msrb.mxu0 %v6771_v4  ;;  %v7415_v58 = vor.u32 %v10228_v53, %v7414_v52  ;;  %v6871_v4 = vor.u32 %v10092_v60, %v6870_v59  ;;  %v10148_v13 = vld [vmem:[#allocation8 + $0x2ec] sm:$0xf0]  ;;  %v7224_v60 = vld [vmem:[#allocation8 + $0x3f0] sm:$0xf0] }
  0xaf   :  { %v10212_v15 = vld [vmem:[#allocation8 + $0x4ec] sm:$0xf0]  ;;  %v7095_v20 = vor.u32 %v10148_v13, %v7094_v11  ;;  %v10168_v11 = vld [vmem:[#allocation8 + $0x394] sm:$0xf] }
  0xb0   :  { %1886 = vmatpush.bf16.msrb.mxu3 %v7571_v62  ;;  %1861 = vmatpush.bf16.msrb.mxu1 %v7027_v7  ;;  %v7671_v62 = vor.u32 %v10292_v55, %v7670_v54  ;;  %v6838_v7 = vld [vmem:[#allocation8 + $0xd0] sm:$0xf]  ;;  %v7192_v13 = vld [vmem:[#allocation8 + $0x3b0] sm:$0xf0] }
  0xb1   :  { %v7606_v16 = vld [vmem:[#allocation8 + $0x6d0] sm:$0xf] }
  0xb2   :  { %1874 = vmatpush.bf16.msrb.mxu2 %v7283_v10  ;;  %1849 = vmatpush.bf16.msrb.mxu0 %v6739_v22  ;;  %v10084_v10 = vld [vmem:[#allocation8 + $0xec] sm:$0xf0] }
  0xb3   :  { %v10276_v17 = vld [vmem:[#allocation8 + $0x6ec] sm:$0xf0]  ;;  %v6839_v19 = vor.u32 %v10084_v10, %v6838_v7  ;;  %v10104_v7 = vld [vmem:[#allocation8 + $0x194] sm:$0xf] }
  0xb4   :  { %1887 = vmatpush.bf16.msrb.mxu3 %v7539_v14  ;;  %1862 = vmatpush.bf16.msrb.mxu1 %v6995_v27  ;;  %v7350_v14 = vld [vmem:[#allocation8 + $0x4d0] sm:$0xf]  ;;  %v7607_v26 = vor.u32 %v10276_v17, %v7606_v16  ;;  %v6936_v10 = vld [vmem:[#allocation8 + $0x1b0] sm:$0xf0] }
  0xb5   :  { %1850 = vmatmul.bf16.vlgmr.msrb.gmra.mxu0 %v11174_v18  ;;  %v7351_v21 = vor.u32 %v10212_v15, %v7350_v14  ;;  %v6806_v22 = vld [vmem:[#allocation8 + $0x90] sm:$0xf]  ;;  %v10232_v14 = vld [vmem:[#allocation8 + $0x594] sm:$0xf] }
  0xb6   :  { %1875 = vmatpush.bf16.msrb.mxu2 %v7251_v28  ;;  %1894 = vmatpush.bf16.msra.mxu0 %v6967_v32  ;;  %v10076_v23 = vld [vmem:[#allocation8 + $0xac] sm:$0xf0]  ;;  %v7448_v15 = vld [vmem:[#allocation8 + $0x5b0] sm:$0xf0] }
  0xb7   :  { %1863 = vmatmul.bf16.vlgmr.msrb.gmra.mxu1 %v11176_v25  ;;  %v7062_v24 = vld [vmem:[#allocation8 + $0x290] sm:$0xf]  ;;  %v6807_v32 = vor.u32 %v10076_v23, %v6806_v22  ;;  %v10296_v16 = vld [vmem:[#allocation8 + $0x794] sm:$0xf] }
  0xb8   :  { %1888 = vmatpush.bf16.msrb.mxu3 %v7507_v31  ;;  %1907 = vmatpush.bf16.msra.mxu1 %v7223_v33  ;;  %v10140_v27 = vld [vmem:[#allocation8 + $0x2ac] sm:$0xf0]  ;;  %v7704_v17 = vld [vmem:[#allocation8 + $0x7b0] sm:$0xf0] }
  0xb9   :  { %1876 = vmatmul.bf16.vlgmr.msrb.gmra.mxu2 %v11168_v8  ;;  %v7318_v28 = vld [vmem:[#allocation8 + $0x490] sm:$0xf]  ;;  %v7063_v33 = vor.u32 %v10140_v27, %v7062_v24  ;;  %v10096_v22 = vld [vmem:[#allocation8 + $0x154] sm:$0xf] }
  0xba   :  { %1920 = vmatpush.bf16.msra.mxu2 %v7479_v34  ;;  %1895 = vmatpush.bf16.msra.mxu0 %v6935_v44  ;;  %v10204_v29 = vld [vmem:[#allocation8 + $0x4ac] sm:$0xf0]  ;;  %v6904_v23 = vld [vmem:[#allocation8 + $0x170] sm:$0xf0] }
  0xbb   :  { %1889 = vmatmul.bf16.vlgmr.msrb.gmra.mxu3 %v11170_v9  ;;  %v7574_v30 = vld [vmem:[#allocation8 + $0x690] sm:$0xf]  ;;  %v7319_v34 = vor.u32 %v10204_v29, %v7318_v28  ;;  %v10160_v24 = vld [vmem:[#allocation8 + $0x354] sm:$0xf] }
  0xbc   :  { %1933 = vmatpush.bf16.msra.mxu3 %v7735_v38  ;;  %1908 = vmatpush.bf16.msra.mxu1 %v7191_v45  ;;  %v10268_v31 = vld [vmem:[#allocation8 + $0x6ac] sm:$0xf0]  ;;  %v7160_v27 = vld [vmem:[#allocation8 + $0x370] sm:$0xf0] }
  0xbd   :  { %v6774_v35 = vld [vmem:[#allocation8 + $0x50] sm:$0xf]  ;;  %v7575_v38 = vor.u32 %v10268_v31, %v7574_v30  ;;  %v10224_v28 = vld [vmem:[#allocation8 + $0x554] sm:$0xf] }
  0xbe   :  { %1921 = vmatpush.bf16.msra.mxu2 %v7447_v46  ;;  %1896 = vmatpush.bf16.msra.mxu0 %v6903_v56  ;;  %v10068_v36 = vld [vmem:[#allocation8 + $0x6c] sm:$0xf0]  ;;  %v10112_v56 = vld [vmem:[#allocation8 + $0x1d4] sm:$0xf] }
  0xbf   :  { %v7030_v37 = vld [vmem:[#allocation8 + $0x250] sm:$0xf]  ;;  %v6775_v44 = vor.u32 %v10068_v36, %v6774_v35  ;;  %v7416_v29 = vld [vmem:[#allocation8 + $0x570] sm:$0xf0] }
  0xc0   :  { %1934 = vmatpush.bf16.msra.mxu3 %v7703_v50  ;;  %1909 = vmatpush.bf16.msra.mxu1 %v7159_v57  ;;  %v10132_v39 = vld [vmem:[#allocation8 + $0x26c] sm:$0xf0]  ;;  %v6968_v57 = vld [vmem:[#allocation8 + $0x1f0] sm:$0xf0] }
  0xc1   :  { %v7286_v40 = vld [vmem:[#allocation8 + $0x450] sm:$0xf]  ;;  %v7031_v47 = vor.u32 %v10132_v39, %v7030_v37  ;;  %v10288_v30 = vld [vmem:[#allocation8 + $0x754] sm:$0xf] }
  0xc2   :  { %1922 = vmatpush.bf16.msra.mxu2 %v7415_v58  ;;  %1897 = vmatpush.bf16.msra.mxu0 %v6871_v4  ;;  %v10196_v41 = vld [vmem:[#allocation8 + $0x46c] sm:$0xf0]  ;;  %v10176_v58 = vld [vmem:[#allocation8 + $0x3d4] sm:$0xf]  ;;  %v6971_v4 = vor.u32 %v10112_v56, %v6968_v57 }
  0xc3   :  { %v7542_v42 = vld [vmem:[#allocation8 + $0x650] sm:$0xf]  ;;  %v7287_v48 = vor.u32 %v10196_v41, %v7286_v40  ;;  %v7672_v31 = vld [vmem:[#allocation8 + $0x770] sm:$0xf0] }
  0xc4   :  { %1935 = vmatpush.bf16.msra.mxu3 %v7671_v62  ;;  %1910 = vmatpush.bf16.msra.mxu1 %v7127_v5  ;;  %v10260_v43 = vld [vmem:[#allocation8 + $0x66c] sm:$0xf0]  ;;  %v7480_v62 = vld [vmem:[#allocation8 + $0x5f0] sm:$0xf0]  ;;  %v7227_v5 = vor.u32 %v10176_v58, %v7224_v60 }
  0xc5   :  { %v6742_v45 = vld [vmem:[#allocation8 + $0x10] sm:$0xf]  ;;  %v7543_v52 = vor.u32 %v10260_v43, %v7542_v42  ;;  %v10088_v35 = vld [vmem:[#allocation8 + $0x114] sm:$0xf] }
  0xc6   :  { %1923 = vmatpush.bf16.msra.mxu2 %v7383_v6  ;;  %1898 = vmatpush.bf16.msra.mxu0 %v6839_v19  ;;  %v10060_v46 = vld [vmem:[#allocation8 + $0x2c] sm:$0xf0]  ;;  %v7483_v6 = vor.u32 %v10240_v61, %v7480_v62  ;;  %v6939_v19 = vor.u32 %v10104_v7, %v6936_v10  ;;  %v6872_v36 = vld [vmem:[#allocation8 + $0x130] sm:$0xf0] }
  0xc7   :  { %v6998_v49 = vld [vmem:[#allocation8 + $0x210] sm:$0xf]  ;;  %v6743_v59 = vor.u32 %v10060_v46, %v6742_v45  ;;  %v10152_v37 = vld [vmem:[#allocation8 + $0x314] sm:$0xf] }
  0xc8   :  { %1936 = vmatpush.bf16.msra.mxu3 %v7639_v12  ;;  %1911 = vmatpush.bf16.msra.mxu1 %v7095_v20  ;;  %v10124_v50 = vld [vmem:[#allocation8 + $0x22c] sm:$0xf0]  ;;  %v7739_v12 = vor.u32 %v10304_v1, %v7736_v2  ;;  %v7195_v20 = vor.u32 %v10168_v11, %v7192_v13  ;;  %v7128_v39 = vld [vmem:[#allocation8 + $0x330] sm:$0xf0] }
  0xc9   :  { %v7254_v51 = vld [vmem:[#allocation8 + $0x410] sm:$0xf]  ;;  %v6999_v63 = vor.u32 %v10124_v50, %v6998_v49  ;;  %v10216_v40 = vld [vmem:[#allocation8 + $0x514] sm:$0xf]  ;;  %v7131_v46 = vor.u32 %v10152_v37, %v7128_v39  ;;  %v11196_v50 = vld [vmem:[#allocation10] sm:$0xff] }
  0xca   :  { %1924 = vmatpush.bf16.msra.mxu2 %v7351_v21  ;;  %1899 = vmatpush.bf16.msra.mxu0 %v6807_v32  ;;  %v10188_v53 = vld [vmem:[#allocation8 + $0x42c] sm:$0xf0]  ;;  %v7451_v21 = vor.u32 %v10232_v14, %v7448_v15  ;;  %v6907_v32 = vor.u32 %v10096_v22, %v6904_v23  ;;  %v7384_v41 = vld [vmem:[#allocation8 + $0x530] sm:$0xf0]  ;;  %v390_v58 = vperm.slane %v11196_v50, 0 }
  0xcb   :  { %v7510_v54 = vld [vmem:[#allocation8 + $0x610] sm:$0xf]  ;;  %v7255_v0 = vor.u32 %v10188_v53, %v7254_v51  ;;  %v10280_v42 = vld [vmem:[#allocation8 + $0x714] sm:$0xf] }
  0xcc   :  { %1937 = vmatpush.bf16.msra.mxu3 %v7607_v26  ;;  %1912 = vmatpush.bf16.msra.mxu1 %v7063_v33  ;;  %v10252_v55 = vld [vmem:[#allocation8 + $0x62c] sm:$0xf0]  ;;  %v7707_v26 = vor.u32 %v10296_v16, %v7704_v17  ;;  %v7163_v33 = vor.u32 %v10160_v24, %v7160_v27  ;;  %v7640_v43 = vld [vmem:[#allocation8 + $0x730] sm:$0xf0] }
  0xcd   :  { %v7511_v3 = vor.u32 %v10252_v55, %v7510_v54  ;;  %v10080_v45 = vld [vmem:[#allocation8 + $0xd4] sm:$0xf]  ;;  %v7643_v51 = vor.u32 %v10280_v42, %v7640_v43  ;;  %v10117_v43 = vld [vmem:[#allocation8 + $0x1f4] sm:$0xf0] }
  0xce   :  { %1925 = vmatpush.bf16.msra.mxu2 %v7319_v34  ;;  %1900 = vmatpush.bf16.msra.mxu0 %v6775_v44  ;;  %v7419_v34 = vor.u32 %v10224_v28, %v7416_v29  ;;  %v6875_v44 = vor.u32 %v10088_v35, %v6872_v36  ;;  %v10144_v49 = vld [vmem:[#allocation8 + $0x2d4] sm:$0xf] }
  0xcf   :  { %v10208_v53 = vld [vmem:[#allocation8 + $0x4d4] sm:$0xf] }
  0xd0   :  { %1938 = vmatpush.bf16.msra.mxu3 %v7575_v38  ;;  %1913 = vmatpush.bf16.msra.mxu1 %v7031_v47  ;;  %v7675_v38 = vor.u32 %v10288_v30, %v7672_v31  ;;  %v7387_v47 = vor.u32 %v10216_v40, %v7384_v41  ;;  %v7352_v54 = vld [vmem:[#allocation8 + $0x4f0] sm:$0xf0]  ;;  %v6974_v41 = vld [vmem:[#allocation8 + $0x1d8] sm:$0xf] }
  0xd1   :  { %v10272_v55 = vld [vmem:[#allocation8 + $0x6d4] sm:$0xf]  ;;  %v7355_v60 = vor.u32 %v10208_v53, %v7352_v54 }
  0xd2   :  { %1926 = vmatpush.bf16.msra.mxu2 %v7287_v48  ;;  %1901 = vmatpush.bf16.msra.mxu0 %v6743_v59  ;;  %v6840_v48 = vld [vmem:[#allocation8 + $0xf0] sm:$0xf0] }
  0xd3   :  { %v7608_v56 = vld [vmem:[#allocation8 + $0x6f0] sm:$0xf0]  ;;  %v6843_v57 = vor.u32 %v10080_v45, %v6840_v48  ;;  %v10181_v45 = vld [vmem:[#allocation8 + $0x3f4] sm:$0xf0] }
  0xd4   :  { %1939 = vmatpush.bf16.msra.mxu3 %v7543_v52  ;;  %1914 = vmatpush.bf16.msra.mxu1 %v6999_v63  ;;  %v7096_v52 = vld [vmem:[#allocation8 + $0x2f0] sm:$0xf0]  ;;  %v1708_v11 = vpop.f32.mrf.mxu1  ;;  %v7486_v48 = vld [vmem:[#allocation8 + $0x5d8] sm:$0xf] }
  0xd5   :  { %1902 = vmatmul.bf16.vlgmr.msra.gmra.mxu0 %v11174_v18  ;;  %v7099_v59 = vor.u32 %v10144_v49, %v7096_v52  ;;  %v10072_v61 = vld [vmem:[#allocation8 + $0x94] sm:$0xf]  ;;  %v10245_v49 = vld [vmem:[#allocation8 + $0x5f4] sm:$0xf0] }
  0xd6   :  { %1927 = vmatpush.bf16.msra.mxu2 %v7255_v0  ;;  %1946 = vmatpush.bf16.msrb.mxu0 %v6971_v4  ;;  %v6808_v62 = vld [vmem:[#allocation8 + $0xb0] sm:$0xf0]  ;;  %v7611_v0 = vor.u32 %v10272_v55, %v7608_v56  ;;  %v7742_v55 = vld [vmem:[#allocation8 + $0x7d8] sm:$0xf] }
  0xd7   :  { %1915 = vmatmul.bf16.vlgmr.msra.gmra.mxu1 %v11176_v25  ;;  %v10136_v63 = vld [vmem:[#allocation8 + $0x294] sm:$0xf]  ;;  %v6811_v7 = vor.u32 %v10072_v61, %v6808_v62  ;;  %v10309_v56 = vld [vmem:[#allocation8 + $0x7f4] sm:$0xf0]  ;;  %v7487_v62 = vor.u32 %v10245_v49, %v7486_v48 }
  0xd8   :  { %1940 = vmatpush.bf16.msra.mxu3 %v7511_v3  ;;  %1959 = vmatpush.bf16.msrb.mxu1 %v7227_v5  ;;  %v7064_v1 = vld [vmem:[#allocation8 + $0x2b0] sm:$0xf0]  ;;  %v10149_v48 = vld [vmem:[#allocation8 + $0x2f4] sm:$0xf0] }
  0xd9   :  { %1928 = vmatmul.bf16.vlgmr.msra.gmra.mxu2 %v11168_v8  ;;  %v10200_v2 = vld [vmem:[#allocation8 + $0x494] sm:$0xf]  ;;  %v7358_v49 = vld [vmem:[#allocation8 + $0x4d8] sm:$0xf] }
  0xda   :  { %1972 = vmatpush.bf16.msrb.mxu2 %v7483_v6  ;;  %1947 = vmatpush.bf16.msrb.mxu0 %v6939_v19  ;;  %v7320_v3 = vld [vmem:[#allocation8 + $0x4b0] sm:$0xf0]  ;;  %v1695_v6 = vpop.f32.mrf.mxu0 }
  0xdb   :  { %1941 = vmatmul.bf16.vlgmr.msra.gmra.mxu3 %v11170_v9  ;;  %v10264_v4 = vld [vmem:[#allocation8 + $0x694] sm:$0xf]  ;;  %v1696_v10 = vadd.f32 %v1695_v6, %v390_v58  ;;  %v7323_v13 = vor.u32 %v10200_v2, %v7320_v3  ;;  %v6975_v58 = vor.u32 %v10117_v43, %v6974_v41  ;;  %v7743_v2 = vor.u32 %v10309_v56, %v7742_v55  ;;  %v10173_v3 = vld [vmem:[#allocation8 + $0x3b4] sm:$0xf0] }
  0xdc   :  { %1985 = vmatpush.bf16.msrb.mxu3 %v7739_v12  ;;  %1960 = vmatpush.bf16.msrb.mxu1 %v7195_v20  ;;  %v7576_v5 = vld [vmem:[#allocation8 + $0x6b0] sm:$0xf0]  ;;  %v7067_v12 = vor.u32 %v10136_v63, %v7064_v1  ;;  %v1721_v23 = vpop.f32.mrf.mxu2  ;;  %v1710_v52 = vpop.f32.mrf.mxu1  ;;  %v6942_v63 = vld [vmem:[#allocation8 + $0x198] sm:$0xf] }
  0xdd   :  { %v10064_v14 = vld [vmem:[#allocation8 + $0x54] sm:$0xf]  ;;  %v7579_v17 = vor.u32 %v10264_v4, %v7576_v5  ;;  %v1709_v22 = vadd.f32 %v1708_v11, %v1696_v10  ;;  %v7198_v1 = vld [vmem:[#allocation8 + $0x398] sm:$0xf] }
  0xde   :  { %1973 = vmatpush.bf16.msrb.mxu2 %v7451_v21  ;;  %1948 = vmatpush.bf16.msrb.mxu0 %v6907_v32  ;;  %v6776_v15 = vld [vmem:[#allocation8 + $0x70] sm:$0xf0]  ;;  %v1734_v24 = vpop.f32.mrf.mxu3  ;;  %v7454_v4 = vld [vmem:[#allocation8 + $0x598] sm:$0xf]  ;;  %v7199_v11 = vor.u32 %v10173_v3, %v7198_v1 }
  0xdf   :  { %v10128_v16 = vld [vmem:[#allocation8 + $0x254] sm:$0xf]  ;;  %v6779_v28 = vor.u32 %v10064_v14, %v6776_v15  ;;  %v1722_v32 = vadd.f32 %v1721_v23, %v1709_v22  ;;  %v10237_v5 = vld [vmem:[#allocation8 + $0x5b4] sm:$0xf0] }
  0xe0   :  { %1986 = vmatpush.bf16.msrb.mxu3 %v7707_v26  ;;  %1961 = vmatpush.bf16.msrb.mxu1 %v7163_v33  ;;  %v7032_v19 = vld [vmem:[#allocation8 + $0x270] sm:$0xf0]  ;;  %v7710_v6 = vld [vmem:[#allocation8 + $0x798] sm:$0xf] }
  0xe1   :  { %v10192_v20 = vld [vmem:[#allocation8 + $0x454] sm:$0xf]  ;;  %v7035_v33 = vor.u32 %v10128_v16, %v7032_v19  ;;  %v11199_v42 = vadd.f32 %v1734_v24, %v1722_v32  ;;  %v10101_v14 = vld [vmem:[#allocation8 + $0x174] sm:$0xf0] }
  0xe2   :  { %1974 = vmatpush.bf16.msrb.mxu2 %v7419_v34  ;;  %1949 = vmatpush.bf16.msrb.mxu0 %v6875_v44  ;;  %v7288_v21 = vld [vmem:[#allocation8 + $0x470] sm:$0xf0]  ;;  %v7230_v44 = vld [vmem:[#allocation8 + $0x3d8] sm:$0xf] }
  0xe3   :  { %v10256_v26 = vld [vmem:[#allocation8 + $0x654] sm:$0xf]  ;;  %v7291_v34 = vor.u32 %v10192_v20, %v7288_v21  ;;  %v7231_v61 = vor.u32 %v10181_v45, %v7230_v44  ;;  %v7166_v15 = vld [vmem:[#allocation8 + $0x358] sm:$0xf] }
  0xe4   :  { %1987 = vmatpush.bf16.msrb.mxu3 %v7675_v38  ;;  %1962 = vmatpush.bf16.msrb.mxu1 %v7131_v46  ;;  %v7544_v27 = vld [vmem:[#allocation8 + $0x670] sm:$0xf0]  ;;  %v1697_v46 = vpop.f32.mrf.mxu0  ;;  %v7422_v19 = vld [vmem:[#allocation8 + $0x558] sm:$0xf] }
  0xe5   :  { %v10056_v29 = vld [vmem:[#allocation8 + $0x14] sm:$0xf]  ;;  %v7547_v38 = vor.u32 %v10256_v26, %v7544_v27  ;;  %v10229_v20 = vld [vmem:[#allocation8 + $0x574] sm:$0xf0] }
  0xe6   :  { %1975 = vmatpush.bf16.msrb.mxu2 %v7387_v47  ;;  %1950 = vmatpush.bf16.msrb.mxu0 %v6843_v57  ;;  %v6744_v30 = vld [vmem:[#allocation8 + $0x30] sm:$0xf0]  ;;  %v7678_v21 = vld [vmem:[#allocation8 + $0x758] sm:$0xf]  ;;  %v7423_v27 = vor.u32 %v10229_v20, %v7422_v19 }
  0xe7   :  { %v10120_v31 = vld [vmem:[#allocation8 + $0x214] sm:$0xf]  ;;  %v6747_v47 = vor.u32 %v10056_v29, %v6744_v30  ;;  %v10293_v22 = vld [vmem:[#allocation8 + $0x774] sm:$0xf0]  ;;  %v391_v30 = vperm.slane %v11196_v50, 1 }
  0xe8   :  { %1988 = vmatpush.bf16.msrb.mxu3 %v7643_v51  ;;  %1963 = vmatpush.bf16.msrb.mxu1 %v7099_v59  ;;  %v7000_v35 = vld [vmem:[#allocation8 + $0x230] sm:$0xf0]  ;;  %v2102_v51 = vmax.f32 %v11199_v42, 0.0  ;;  %v1723_v59 = vpop.f32.mrf.mxu2  ;;  %v6878_v24 = vld [vmem:[#allocation8 + $0x118] sm:$0xf] }
  0xe9   :  { %v10184_v36 = vld [vmem:[#allocation8 + $0x414] sm:$0xf]  ;;  %v7003_v53 = vor.u32 %v10120_v31, %v7000_v35  ;;  %v7134_v29 = vld [vmem:[#allocation8 + $0x318] sm:$0xf]  ;;  %v7679_v31 = vor.u32 %v10293_v22, %v7678_v21 }
  0xea   :  { %1976 = vmatpush.bf16.msrb.mxu2 %v7355_v60  ;;  %1951 = vmatpush.bf16.msrb.mxu0 %v6811_v7  ;;  %v7256_v37 = vld [vmem:[#allocation8 + $0x430] sm:$0xf0]  ;;  %v1736_v60 = vpop.f32.mrf.mxu3  ;;  %v10301_v7 = vld [vmem:[#allocation8 + $0x7b4] sm:$0xf0] }
  0xeb   :  { %v10248_v39 = vld [vmem:[#allocation8 + $0x614] sm:$0xf]  ;;  %v7259_v54 = vor.u32 %v10184_v36, %v7256_v37  ;;  %v7711_v16 = vor.u32 %v10301_v7, %v7710_v6  ;;  %v10157_v32 = vld [vmem:[#allocation8 + $0x334] sm:$0xf0] }
  0xec   :  { %1989 = vmatpush.bf16.msrb.mxu3 %v7611_v0  ;;  %1964 = vmatpush.bf16.msrb.mxu1 %v7067_v12  ;;  %v7512_v40 = vld [vmem:[#allocation8 + $0x630] sm:$0xf0]  ;;  %v10109_v0 = vld [vmem:[#allocation8 + $0x1b4] sm:$0xf0]  ;;  %v7455_v12 = vor.u32 %v10237_v5, %v7454_v4 }
  0xed   :  { %v7515_v57 = vor.u32 %v10248_v39, %v7512_v40  ;;  %v6943_v10 = vor.u32 %v10109_v0, %v6942_v63  ;;  %v7646_v35 = vld [vmem:[#allocation8 + $0x718] sm:$0xf]  ;;  %v7135_v39 = vor.u32 %v10157_v32, %v7134_v29 }
  0xee   :  { %1977 = vmatpush.bf16.msrb.mxu2 %v7323_v13  ;;  %1952 = vmatpush.bf16.msrb.mxu0 %v6779_v28  ;;  %v6910_v13 = vld [vmem:[#allocation8 + $0x158] sm:$0xf] }
  0xef   :  { %v6911_v23 = vor.u32 %v10101_v14, %v6910_v13  ;;  %v10093_v28 = vld [vmem:[#allocation8 + $0x134] sm:$0xf0] }
  0xf0   :  { %1990 = vmatpush.bf16.msrb.mxu3 %v7579_v17  ;;  %1965 = vmatpush.bf16.msrb.mxu1 %v7035_v33  ;;  %v10165_v17 = vld [vmem:[#allocation8 + $0x374] sm:$0xf0]  ;;  %v6879_v37 = vor.u32 %v10093_v28, %v6878_v24 }
  0xf1   :  { %v7167_v26 = vor.u32 %v10165_v17, %v7166_v15  ;;  %v7390_v33 = vld [vmem:[#allocation8 + $0x518] sm:$0xf] }
  0xf2   :  { %1978 = vmatpush.bf16.msrb.mxu2 %v7291_v34  ;;  %1953 = vmatpush.bf16.msrb.mxu0 %v6747_v47  ;;  %v10221_v34 = vld [vmem:[#allocation8 + $0x534] sm:$0xf0] }
  0xf3   :  { %v10285_v36 = vld [vmem:[#allocation8 + $0x734] sm:$0xf0]  ;;  %v7391_v40 = vor.u32 %v10221_v34, %v7390_v33 }
  0xf4   :  { %1991 = vmatpush.bf16.msrb.mxu3 %v7547_v38  ;;  %1966 = vmatpush.bf16.msrb.mxu1 %v7003_v53  ;;  %v1747_v38 = vpop.f32.mrf.mxu0  ;;  %v6846_v41 = vld [vmem:[#allocation8 + $0xd8] sm:$0xf]  ;;  %v1760_v46 = vpop.f32.mrf.mxu1  ;;  %v7647_v47 = vor.u32 %v10285_v36, %v7646_v35 }
  0xf5   :  { %1954 = vmatmul.bf16.vlgmr.msrb.gmra.mxu0 %v11174_v18  ;;  %v10085_v43 = vld [vmem:[#allocation8 + $0xf4] sm:$0xf0]  ;;  %v1748_v45 = vadd.f32 %v1747_v38, %v391_v30 }
  0xf6   :  { %1979 = vmatpush.bf16.msrb.mxu2 %v7259_v54  ;;  %1998 = vmatpush.bf16.msra.mxu0 %v6975_v58  ;;  %v7102_v44 = vld [vmem:[#allocation8 + $0x2d8] sm:$0xf]  ;;  %v6847_v56 = vor.u32 %v10085_v43, %v6846_v41  ;;  %v10113_v41 = vld [vmem:[#allocation8 + $0x1dc] sm:$0xf] }
  0xf7   :  { %1967 = vmatmul.bf16.vlgmr.msrb.gmra.mxu1 %v11176_v25  ;;  %v10213_v52 = vld [vmem:[#allocation8 + $0x4f4] sm:$0xf0]  ;;  %v1761_v55 = vadd.f32 %v1760_v46, %v1748_v45  ;;  %v6976_v43 = vld [vmem:[#allocation8 + $0x1f8] sm:$0xf0] }
  0xf8   :  { %1992 = vmatpush.bf16.msrb.mxu3 %v7515_v57  ;;  %2011 = vmatpush.bf16.msra.mxu1 %v7231_v61  ;;  %v7614_v53 = vld [vmem:[#allocation8 + $0x6d8] sm:$0xf]  ;;  %v7103_v57 = vor.u32 %v10149_v48, %v7102_v44  ;;  %v7359_v58 = vor.u32 %v10213_v52, %v7358_v49  ;;  %v10177_v44 = vld [vmem:[#allocation8 + $0x3dc] sm:$0xf] }
  0xf9   :  { %1980 = vmatmul.bf16.vlgmr.msrb.gmra.mxu2 %v11168_v8  ;;  %v10277_v54 = vld [vmem:[#allocation8 + $0x6f4] sm:$0xf0]  ;;  %v7232_v46 = vld [vmem:[#allocation8 + $0x3f8] sm:$0xf0] }
  0xfa   :  { %2024 = vmatpush.bf16.msra.mxu2 %v7487_v62  ;;  %1999 = vmatpush.bf16.msra.mxu0 %v6943_v10  ;;  %v6814_v59 = vld [vmem:[#allocation8 + $0x98] sm:$0xf]  ;;  %v7615_v63 = vor.u32 %v10277_v54, %v7614_v53  ;;  %v7488_v48 = vld [vmem:[#allocation8 + $0x5f8] sm:$0xf0] }
  0xfb   :  { %1993 = vmatmul.bf16.vlgmr.msrb.gmra.mxu3 %v11170_v9  ;;  %v10077_v60 = vld [vmem:[#allocation8 + $0xb4] sm:$0xf0]  ;;  %v10305_v53 = vld [vmem:[#allocation8 + $0x7dc] sm:$0xf] }
  0xfc   :  { %2037 = vmatpush.bf16.msra.mxu3 %v7743_v2  ;;  %2012 = vmatpush.bf16.msra.mxu1 %v7199_v11  ;;  %v7070_v61 = vld [vmem:[#allocation8 + $0x298] sm:$0xf]  ;;  %v1773_v62 = vpop.f32.mrf.mxu2  ;;  %v6815_v7 = vor.u32 %v10077_v60, %v6814_v59  ;;  %v1762_v19 = vpop.f32.mrf.mxu1  ;;  %v7744_v54 = vld [vmem:[#allocation8 + $0x7f8] sm:$0xf0] }
  0xfd   :  { %v10141_v0 = vld [vmem:[#allocation8 + $0x2b4] sm:$0xf0]  ;;  %v1774_v3 = vadd.f32 %v1773_v62, %v1761_v55  ;;  %v10105_v59 = vld [vmem:[#allocation8 + $0x19c] sm:$0xf]  ;;  %v7747_v62 = vor.u32 %v10305_v53, %v7744_v54 }
  0xfe   :  { %2025 = vmatpush.bf16.msra.mxu2 %v7455_v12  ;;  %2000 = vmatpush.bf16.msra.mxu0 %v6911_v23  ;;  %v7326_v1 = vld [vmem:[#allocation8 + $0x498] sm:$0xf]  ;;  %v1786_v4 = vpop.f32.mrf.mxu3  ;;  %v1749_v12 = vpop.f32.mrf.mxu0  ;;  %v7071_v13 = vor.u32 %v10141_v0, %v7070_v61  ;;  %v6944_v60 = vld [vmem:[#allocation8 + $0x1b8] sm:$0xf0] }
  0xff   :  { %v10205_v2 = vld [vmem:[#allocation8 + $0x4b4] sm:$0xf0]  ;;  %v11207_v11 = vadd.f32 %v1786_v4, %v1774_v3  ;;  %v10169_v61 = vld [vmem:[#allocation8 + $0x39c] sm:$0xf]  ;;  %v6947_v4 = vor.u32 %v10105_v59, %v6944_v60 }
 0x100   :  { %2038 = vmatpush.bf16.msra.mxu3 %v7711_v16  ;;  %2013 = vmatpush.bf16.msra.mxu1 %v7167_v26  ;;  %v7582_v5 = vld [vmem:[#allocation8 + $0x698] sm:$0xf]  ;;  %v7327_v14 = vor.u32 %v10205_v2, %v7326_v1  ;;  %v10233_v0 = vld [vmem:[#allocation8 + $0x59c] sm:$0xf] }
 0x101   :  { %v10269_v6 = vld [vmem:[#allocation8 + $0x6b4] sm:$0xf0]  ;;  %v2103_v23 = vmax.f32 %v11207_v11, 0.0  ;;  %v7456_v1 = vld [vmem:[#allocation8 + $0x5b8] sm:$0xf0] }
 0x102   :  { %2026 = vmatpush.bf16.msra.mxu2 %v7423_v27  ;;  %2001 = vmatpush.bf16.msra.mxu0 %v6879_v37  ;;  %v6782_v10 = vld [vmem:[#allocation8 + $0x58] sm:$0xf]  ;;  %v7583_v20 = vor.u32 %v10269_v6, %v7582_v5  ;;  %v10297_v2 = vld [vmem:[#allocation8 + $0x79c] sm:$0xf]  ;;  %v7459_v6 = vor.u32 %v10233_v0, %v7456_v1 }
 0x103   :  { %v10069_v15 = vld [vmem:[#allocation8 + $0x74] sm:$0xf0]  ;;  %v7712_v3 = vld [vmem:[#allocation8 + $0x7b8] sm:$0xf0] }
 0x104   :  { %2039 = vmatpush.bf16.msra.mxu3 %v7679_v31  ;;  %2014 = vmatpush.bf16.msra.mxu1 %v7135_v39  ;;  %v7038_v16 = vld [vmem:[#allocation8 + $0x258] sm:$0xf]  ;;  %v6783_v27 = vor.u32 %v10069_v15, %v6782_v10  ;;  %v1775_v35 = vpop.f32.mrf.mxu2  ;;  %v6912_v10 = vld [vmem:[#allocation8 + $0x178] sm:$0xf0] }
 0x105   :  { %v10133_v17 = vld [vmem:[#allocation8 + $0x274] sm:$0xf0]  ;;  %v10161_v12 = vld [vmem:[#allocation8 + $0x35c] sm:$0xf] }
 0x106   :  { %2027 = vmatpush.bf16.msra.mxu2 %v7391_v40  ;;  %2002 = vmatpush.bf16.msra.mxu0 %v6847_v56  ;;  %v7294_v21 = vld [vmem:[#allocation8 + $0x458] sm:$0xf]  ;;  %v7039_v30 = vor.u32 %v10133_v17, %v7038_v16  ;;  %v1788_v40 = vpop.f32.mrf.mxu3  ;;  %v6979_v56 = vor.u32 %v10113_v41, %v6976_v43  ;;  %v10225_v15 = vld [vmem:[#allocation8 + $0x55c] sm:$0xf] }
 0x107   :  { %v10197_v22 = vld [vmem:[#allocation8 + $0x474] sm:$0xf0]  ;;  %v7424_v16 = vld [vmem:[#allocation8 + $0x578] sm:$0xf0] }
 0x108   :  { %2040 = vmatpush.bf16.msra.mxu3 %v7647_v47  ;;  %2015 = vmatpush.bf16.msra.mxu1 %v7103_v57  ;;  %v7550_v24 = vld [vmem:[#allocation8 + $0x658] sm:$0xf]  ;;  %v7295_v31 = vor.u32 %v10197_v22, %v7294_v21  ;;  %v10241_v47 = vld [vmem:[#allocation8 + $0x5dc] sm:$0xf]  ;;  %v7235_v57 = vor.u32 %v10177_v44, %v7232_v46 }
 0x109   :  { %v10261_v26 = vld [vmem:[#allocation8 + $0x674] sm:$0xf0]  ;;  %v10289_v17 = vld [vmem:[#allocation8 + $0x75c] sm:$0xf] }
 0x10a   :  { %2028 = vmatpush.bf16.msra.mxu2 %v7359_v58  ;;  %2003 = vmatpush.bf16.msra.mxu0 %v6815_v7  ;;  %v6750_v28 = vld [vmem:[#allocation8 + $0x18] sm:$0xf]  ;;  %v7551_v36 = vor.u32 %v10261_v26, %v7550_v24  ;;  %v7491_v58 = vor.u32 %v10241_v47, %v7488_v48  ;;  %v10097_v7 = vld [vmem:[#allocation8 + $0x15c] sm:$0xf]  ;;  %v7427_v24 = vor.u32 %v10225_v15, %v7424_v16 }
 0x10b   :  { %v10061_v29 = vld [vmem:[#allocation8 + $0x34] sm:$0xf0]  ;;  %v7680_v19 = vld [vmem:[#allocation8 + $0x778] sm:$0xf0] }
 0x10c   :  { %2041 = vmatpush.bf16.msra.mxu3 %v7615_v63  ;;  %2016 = vmatpush.bf16.msra.mxu1 %v7071_v13  ;;  %v7006_v32 = vld [vmem:[#allocation8 + $0x218] sm:$0xf]  ;;  %v6751_v45 = vor.u32 %v10061_v29, %v6750_v28  ;;  %v7200_v63 = vld [vmem:[#allocation8 + $0x3b8] sm:$0xf0]  ;;  %v7715_v13 = vor.u32 %v10297_v2, %v7712_v3  ;;  %v392_v28 = vperm.slane %v11196_v50, 2  ;;  %v7683_v29 = vor.u32 %v10289_v17, %v7680_v19 }
 0x10d   :  { %v10125_v33 = vld [vmem:[#allocation8 + $0x234] sm:$0xf0]  ;;  %v7203_v5 = vor.u32 %v10169_v61, %v7200_v63  ;;  %v10089_v21 = vld [vmem:[#allocation8 + $0x11c] sm:$0xf] }
 0x10e   :  { %2029 = vmatpush.bf16.msra.mxu2 %v7327_v14  ;;  %v7262_v34 = vld [vmem:[#allocation8 + $0x418] sm:$0xf]  ;;  %2004 = vmatpush.bf16.msra.mxu0 %v6783_v27  ;;  %v7007_v49 = vor.u32 %v10125_v33, %v7006_v32  ;;  %v7168_v14 = vld [vmem:[#allocation8 + $0x378] sm:$0xf0] }
 0x10f   :  { %v10189_v37 = vld [vmem:[#allocation8 + $0x434] sm:$0xf0]  ;;  %v7171_v22 = vor.u32 %v10161_v12, %v7168_v14  ;;  %v6880_v26 = vld [vmem:[#allocation8 + $0x138] sm:$0xf0] }
 0x110   :  { %2042 = vmatpush.bf16.msra.mxu3 %v7583_v20  ;;  %v7518_v38 = vld [vmem:[#allocation8 + $0x618] sm:$0xf]  ;;  %2017 = vmatpush.bf16.msra.mxu1 %v7039_v30  ;;  %v7263_v52 = vor.u32 %v10189_v37, %v7262_v34  ;;  %v6915_v20 = vor.u32 %v10097_v7, %v6912_v10  ;;  %v10153_v27 = vld [vmem:[#allocation8 + $0x31c] sm:$0xf]  ;;  %v6883_v35 = vor.u32 %v10089_v21, %v6880_v26 }
 0x111   :  { %v10253_v39 = vld [vmem:[#allocation8 + $0x634] sm:$0xf0]  ;;  %v7136_v30 = vld [vmem:[#allocation8 + $0x338] sm:$0xf0] }
 0x112   :  { %2030 = vmatpush.bf16.msra.mxu2 %v7295_v31  ;;  %v7519_v55 = vor.u32 %v10253_v39, %v7518_v38  ;;  %2005 = vmatpush.bf16.msra.mxu0 %v6751_v45  ;;  %v10217_v31 = vld [vmem:[#allocation8 + $0x51c] sm:$0xf]  ;;  %v7139_v37 = vor.u32 %v10153_v27, %v7136_v30 }
 0x113   :  { %v7392_v32 = vld [vmem:[#allocation8 + $0x538] sm:$0xf0] }
 0x114   :  { %2043 = vmatpush.bf16.msra.mxu3 %v7551_v36  ;;  %2018 = vmatpush.bf16.msra.mxu1 %v7007_v49  ;;  %v10281_v33 = vld [vmem:[#allocation8 + $0x71c] sm:$0xf]  ;;  %v1799_v36 = vpop.f32.mrf.mxu0  ;;  %v7395_v38 = vor.u32 %v10217_v31, %v7392_v32  ;;  %v1812_v44 = vpop.f32.mrf.mxu1 }
 0x115   :  { %2006 = vmatmul.bf16.vlgmr.msra.gmra.mxu0 %v11174_v18  ;;  %v7648_v34 = vld [vmem:[#allocation8 + $0x738] sm:$0xf0]  ;;  %v1800_v43 = vadd.f32 %v1799_v36, %v392_v28 }
 0x116   :  { %2031 = vmatpush.bf16.msra.mxu2 %v7263_v52  ;;  %2050 = vmatpush.bf16.msrb.mxu0 %v6979_v56  ;;  %v10081_v39 = vld [vmem:[#allocation8 + $0xdc] sm:$0xf]  ;;  %v7651_v45 = vor.u32 %v10281_v33, %v7648_v34 }
 0x117   :  { %2019 = vmatmul.bf16.vlgmr.msra.gmra.mxu1 %v11176_v25  ;;  %v6848_v40 = vld [vmem:[#allocation8 + $0xf8] sm:$0xf0]  ;;  %v1813_v53 = vadd.f32 %v1812_v44, %v1800_v43 }
 0x118   :  { %2044 = vmatpush.bf16.msra.mxu3 %v7519_v55  ;;  %2063 = vmatpush.bf16.msrb.mxu1 %v7235_v57  ;;  %v10145_v41 = vld [vmem:[#allocation8 + $0x2dc] sm:$0xf]  ;;  %v6851_v54 = vor.u32 %v10081_v39, %v6848_v40 }
 0x119   :  { %2032 = vmatmul.bf16.vlgmr.msra.gmra.mxu2 %v11168_v8  ;;  %v7104_v46 = vld [vmem:[#allocation8 + $0x2f8] sm:$0xf0] }
 0x11a   :  { %2076 = vmatpush.bf16.msrb.mxu2 %v7491_v58  ;;  %2051 = vmatpush.bf16.msrb.mxu0 %v6947_v4  ;;  %v10209_v47 = vld [vmem:[#allocation8 + $0x4dc] sm:$0xf]  ;;  %v7107_v55 = vor.u32 %v10145_v41, %v7104_v46  ;;  %v393_v46 = vperm.slane %v11196_v50, 3 }
 0x11b   :  { %2045 = vmatmul.bf16.vlgmr.msra.gmra.mxu3 %v11170_v9  ;;  %v7360_v48 = vld [vmem:[#allocation8 + $0x4f8] sm:$0xf0] }
 0x11c   :  { %2089 = vmatpush.bf16.msrb.mxu3 %v7747_v62  ;;  %2064 = vmatpush.bf16.msrb.mxu1 %v7203_v5  ;;  %v10273_v49 = vld [vmem:[#allocation8 + $0x6dc] sm:$0xf]  ;;  %v7363_v56 = vor.u32 %v10209_v47, %v7360_v48  ;;  %v1825_v60 = vpop.f32.mrf.mxu2  ;;  %v1801_v10 = vpop.f32.mrf.mxu0 }
 0x11d   :  { %v7616_v52 = vld [vmem:[#allocation8 + $0x6f8] sm:$0xf0]  ;;  %v1826_v1 = vadd.f32 %v1825_v60, %v1813_v53  ;;  %v1814_v17 = vpop.f32.mrf.mxu1 }
 0x11e   :  { %2077 = vmatpush.bf16.msrb.mxu2 %v7459_v6  ;;  %2052 = vmatpush.bf16.msrb.mxu0 %v6915_v20  ;;  %v10073_v57 = vld [vmem:[#allocation8 + $0x9c] sm:$0xf]  ;;  %v7619_v61 = vor.u32 %v10273_v49, %v7616_v52  ;;  %v1838_v2 = vpop.f32.mrf.mxu3 }
 0x11f   :  { %v6816_v58 = vld [vmem:[#allocation8 + $0xb8] sm:$0xf0]  ;;  %v11215_v7 = vadd.f32 %v1838_v2, %v1826_v1 }
 0x120   :  { %2090 = vmatpush.bf16.msrb.mxu3 %v7715_v13  ;;  %2065 = vmatpush.bf16.msrb.mxu1 %v7171_v22  ;;  %v10137_v59 = vld [vmem:[#allocation8 + $0x29c] sm:$0xf]  ;;  %v6819_v5 = vor.u32 %v10073_v57, %v6816_v58  ;;  %v394_v58 = vperm.slane %v11196_v50, 4 }
 0x121   :  { %v7072_v62 = vld [vmem:[#allocation8 + $0x2b8] sm:$0xf0]  ;;  %v2104_v22 = vmax.f32 %v11215_v7, 0.0 }
 0x122   :  { %2078 = vmatpush.bf16.msrb.mxu2 %v7427_v24  ;;  %2053 = vmatpush.bf16.msrb.mxu0 %v6883_v35  ;;  %v10201_v63 = vld [vmem:[#allocation8 + $0x49c] sm:$0xf]  ;;  %v7075_v12 = vor.u32 %v10137_v59, %v7072_v62 }
 0x123   :  { %v7328_v0 = vld [vmem:[#allocation8 + $0x4b8] sm:$0xf0] }
 0x124   :  { %2091 = vmatpush.bf16.msrb.mxu3 %v7683_v29  ;;  %2066 = vmatpush.bf16.msrb.mxu1 %v7139_v37  ;;  %v10265_v3 = vld [vmem:[#allocation8 + $0x69c] sm:$0xf]  ;;  %v7331_v13 = vor.u32 %v10201_v63, %v7328_v0  ;;  %v1827_v33 = vpop.f32.mrf.mxu2 }
 0x125   :  { %v7584_v4 = vld [vmem:[#allocation8 + $0x6b8] sm:$0xf0] }
 0x126   :  { %2079 = vmatpush.bf16.msrb.mxu2 %v7395_v38  ;;  %2054 = vmatpush.bf16.msrb.mxu0 %v6851_v54  ;;  %v10065_v6 = vld [vmem:[#allocation8 + $0x5c] sm:$0xf]  ;;  %v7587_v19 = vor.u32 %v10265_v3, %v7584_v4  ;;  %v1840_v38 = vpop.f32.mrf.mxu3 }
 0x127   :  { %v6784_v14 = vld [vmem:[#allocation8 + $0x78] sm:$0xf0] }
 0x128   :  { %2092 = vmatpush.bf16.msrb.mxu3 %v7651_v45  ;;  %2067 = vmatpush.bf16.msrb.mxu1 %v7107_v55  ;;  %v10129_v15 = vld [vmem:[#allocation8 + $0x25c] sm:$0xf]  ;;  %v6787_v27 = vor.u32 %v10065_v6, %v6784_v14 }
 0x129   :  { %v7040_v16 = vld [vmem:[#allocation8 + $0x278] sm:$0xf0] }
 0x12a   :  { %2080 = vmatpush.bf16.msrb.mxu2 %v7363_v56  ;;  %v10193_v20 = vld [vmem:[#allocation8 + $0x45c] sm:$0xf]  ;;  %2055 = vmatpush.bf16.msrb.mxu0 %v6819_v5  ;;  %v7043_v28 = vor.u32 %v10129_v15, %v7040_v16 }
 0x12b   :  { %v7296_v21 = vld [vmem:[#allocation8 + $0x478] sm:$0xf0] }
 0x12c   :  { %2093 = vmatpush.bf16.msrb.mxu3 %v7619_v61  ;;  %v10257_v24 = vld [vmem:[#allocation8 + $0x65c] sm:$0xf]  ;;  %2068 = vmatpush.bf16.msrb.mxu1 %v7075_v12  ;;  %v7299_v29 = vor.u32 %v10193_v20, %v7296_v21  ;;  %v395_v12 = vperm.slane %v11196_v50, 5 }
 0x12d   :  { %v7552_v26 = vld [vmem:[#allocation8 + $0x678] sm:$0xf0] }
 0x12e   :  { %2081 = vmatpush.bf16.msrb.mxu2 %v7331_v13  ;;  %v10057_v30 = vld [vmem:[#allocation8 + $0x1c] sm:$0xf]  ;;  %v7555_v34 = vor.u32 %v10257_v24, %v7552_v26  ;;  %2056 = vmatpush.bf16.msrb.mxu0 %v6787_v27 }
 0x12f   :  { %v6752_v31 = vld [vmem:[#allocation8 + $0x38] sm:$0xf0] }
 0x130   :  { %v10121_v32 = vld [vmem:[#allocation8 + $0x21c] sm:$0xf]  ;;  %2094 = vmatpush.bf16.msrb.mxu3 %v7587_v19  ;;  %v6755_v41 = vor.u32 %v10057_v30, %v6752_v31  ;;  %2069 = vmatpush.bf16.msrb.mxu1 %v7043_v28  ;;  %v396_v30 = vperm.slane %v11196_v50, 6 }
 0x131   :  { %v7008_v35 = vld [vmem:[#allocation8 + $0x238] sm:$0xf0] }
 0x132   :  { %v10185_v36 = vld [vmem:[#allocation8 + $0x41c] sm:$0xf]  ;;  %2082 = vmatpush.bf16.msrb.mxu2 %v7299_v29  ;;  %v7011_v43 = vor.u32 %v10121_v32, %v7008_v35  ;;  %2057 = vmatpush.bf16.msrb.mxu0 %v6755_v41  ;;  %v1851_v47 = vpop.f32.mrf.mxu0 }
 0x133   :  { %v7264_v37 = vld [vmem:[#allocation8 + $0x438] sm:$0xf0]  ;;  %v1852_v48 = vadd.f32 %v1851_v47, %v393_v46 }
 0x134   :  { %v10249_v39 = vld [vmem:[#allocation8 + $0x61c] sm:$0xf]  ;;  %v7267_v44 = vor.u32 %v10185_v36, %v7264_v37  ;;  %2095 = vmatpush.bf16.msrb.mxu3 %v7555_v34  ;;  %2070 = vmatpush.bf16.msrb.mxu1 %v7011_v43  ;;  %v1864_v49 = vpop.f32.mrf.mxu1 }
 0x135   :  { %v7520_v40 = vld [vmem:[#allocation8 + $0x638] sm:$0xf0]  ;;  %2058 = vmatmul.bf16.vlgmr.msrb.gmra.mxu0 %v11174_v18  ;;  %v1865_v52 = vadd.f32 %v1864_v49, %v1852_v48 }
 0x136   :  { %v7523_v45 = vor.u32 %v10249_v39, %v7520_v40  ;;  %2083 = vmatpush.bf16.msrb.mxu2 %v7267_v44 }
 0x137   :  { %2071 = vmatmul.bf16.vlgmr.msrb.gmra.mxu1 %v11176_v25 }
 0x138   :  { %2096 = vmatpush.bf16.msrb.mxu3 %v7523_v45  ;;  %v397_v45 = vperm.slane %v11196_v50, 7 }
 0x139   :  { %2084 = vmatmul.bf16.vlgmr.msrb.gmra.mxu2 %v11168_v8 }
 0x13a   :  { %v1853_v53 = vpop.f32.mrf.mxu0 }
 0x13b   :  { %2097 = vmatmul.bf16.vlgmr.msrb.gmra.mxu3 %v11170_v9 }
 0x13c   :  { %v1877_v8 = vpop.f32.mrf.mxu2  ;;  %v1866_v54 = vpop.f32.mrf.mxu1 }
 0x13d   :  { %v1878_v9 = vadd.f32 %v1877_v8, %v1865_v52 }
 0x13e   :  { %v1890_v18 = vpop.f32.mrf.mxu3 }
 0x13f   :  { %v11229_v25 = vadd.f32 %v1890_v18, %v1878_v9 }
 0x141   :  { %v2105_v55 = vmax.f32 %v11229_v25, 0.0 }
 0x144   :  { %v1879_v56 = vpop.f32.mrf.mxu2 }
 0x146   :  { %v1892_v57 = vpop.f32.mrf.mxu3 }
 0x152   :  { %v1903_v59 = vpop.f32.mrf.mxu0 }
 0x153   :  { %v1904_v60 = vadd.f32 %v1903_v59, %v394_v58 }
 0x154   :  { %v1916_v61 = vpop.f32.mrf.mxu1 }
 0x155   :  { %v1917_v62 = vadd.f32 %v1916_v61, %v1904_v60 }
 0x15a   :  { %v1905_v3 = vpop.f32.mrf.mxu0 }
 0x15c   :  { %v1929_v63 = vpop.f32.mrf.mxu2  ;;  %v1918_v4 = vpop.f32.mrf.mxu1 }
 0x15d   :  { %v1930_v0 = vadd.f32 %v1929_v63, %v1917_v62 }
 0x15e   :  { %v1942_v1 = vpop.f32.mrf.mxu3 }
 0x15f   :  { %v11233_v2 = vadd.f32 %v1942_v1, %v1930_v0 }
 0x161   :  { %v2106_v5 = vmax.f32 %v11233_v2, 0.0 }
 0x164   :  { %v1931_v6 = vpop.f32.mrf.mxu2 }
 0x166   :  { %v1944_v10 = vpop.f32.mrf.mxu3 }
 0x172   :  { %v1955_v13 = vpop.f32.mrf.mxu0 }
 0x173   :  { %v1956_v14 = vadd.f32 %v1955_v13, %v395_v12 }
 0x174   :  { %v1968_v15 = vpop.f32.mrf.mxu1 }
 0x175   :  { %v1969_v16 = vadd.f32 %v1968_v15, %v1956_v14 }
 0x17a   :  { %v1957_v24 = vpop.f32.mrf.mxu0 }
 0x17c   :  { %v1981_v17 = vpop.f32.mrf.mxu2  ;;  %v1970_v26 = vpop.f32.mrf.mxu1 }
 0x17d   :  { %v1982_v19 = vadd.f32 %v1981_v17, %v1969_v16 }
 0x17e   :  { %v1994_v20 = vpop.f32.mrf.mxu3 }
 0x17f   :  { %v11237_v21 = vadd.f32 %v1994_v20, %v1982_v19 }
 0x181   :  { %v2107_v27 = vmax.f32 %v11237_v21, 0.0 }
 0x184   :  { %v1983_v28 = vpop.f32.mrf.mxu2 }
 0x186   :  { %v1996_v29 = vpop.f32.mrf.mxu3 }
 0x192   :  { %v2007_v31 = vpop.f32.mrf.mxu0 }
 0x193   :  { %v2008_v32 = vadd.f32 %v2007_v31, %v396_v30 }
 0x194   :  { %v2020_v33 = vpop.f32.mrf.mxu1 }
 0x195   :  { %v2021_v34 = vadd.f32 %v2020_v33, %v2008_v32 }
 0x19a   :  { %v2009_v39 = vpop.f32.mrf.mxu0 }
 0x19c   :  { %v2033_v35 = vpop.f32.mrf.mxu2  ;;  %v2022_v40 = vpop.f32.mrf.mxu1 }
 0x19d   :  { %v2034_v36 = vadd.f32 %v2033_v35, %v2021_v34 }
 0x19e   :  { %v2046_v37 = vpop.f32.mrf.mxu3 }
 0x19f   :  { %v11241_v38 = vadd.f32 %v2046_v37, %v2034_v36 }
 0x1a1   :  { %v2108_v41 = vmax.f32 %v11241_v38, 0.0 }
 0x1a4   :  { %v2035_v43 = vpop.f32.mrf.mxu2 }
 0x1a6   :  { %v2048_v44 = vpop.f32.mrf.mxu3 }
 0x1b2   :  { %v2059_v46 = vpop.f32.mrf.mxu0 }
 0x1b3   :  { %v2060_v47 = vadd.f32 %v2059_v46, %v397_v45 }
 0x1b4   :  { %v2072_v48 = vpop.f32.mrf.mxu1 }
 0x1b5   :  { %v2073_v49 = vadd.f32 %v2072_v48, %v2060_v47 }
 0x1ba   :  { %v2061_v18 = vpop.f32.mrf.mxu0 }
 0x1bc   :  { %v2085_v52 = vpop.f32.mrf.mxu2  ;;  %v2074_v53 = vpop.f32.mrf.mxu1 }
 0x1bd   :  { %v2086_v8 = vadd.f32 %v2085_v52, %v2073_v49 }
 0x1be   :  { %v2098_v9 = vpop.f32.mrf.mxu3 }
 0x1bf   :  { %v11245_v54 = vadd.f32 %v2098_v9, %v2086_v8 }
 0x1c1   :  { %v2109_v56 = vmax.f32 %v11245_v54, 0.0 }
 0x1c4   :  { %v2087_v57 = vpop.f32.mrf.mxu2 }
 0x1c6   :  { %v2100_v58 = vpop.f32.mrf.mxu3 }
 0x1c7   :  { %11097 = dma.done.wait [#allocation4], 65536 }
 0x1c8   :  { %11098 = vsyncadd [#allocation4], 4294901760  ;;  %v7974_v59 = vld [vmem:[#allocation2 + $0x1c0] sm:$0xf]  ;;  %v10542_v21 = vld [vmem:[#allocation2 + $0x744] sm:$0xf] }
 0x1c9   :  { %v10370_v60 = vld [vmem:[#allocation2 + $0x1dc] sm:$0xf0] }
 0x1ca   :  { %v8230_v50 = vld [vmem:[#allocation2 + $0x3c0] sm:$0xf]  ;;  %v7975_v61 = vor.u32 %v10370_v60, %v7974_v59 }
 0x1cb   :  { %v10434_v62 = vld [vmem:[#allocation2 + $0x3dc] sm:$0xf0] }
 0x1cc   :  { %v8486_v63 = vld [vmem:[#allocation2 + $0x5c0] sm:$0xf]  ;;  %v8231_v1 = vor.u32 %v10434_v62, %v8230_v50  ;;  %5215 = vmatpush.bf16.msra.mxu0 %v7975_v61 }
 0x1cd   :  { %v10498_v0 = vld [vmem:[#allocation2 + $0x5dc] sm:$0xf0] }
 0x1ce   :  { %v8487_v3 = vor.u32 %v10498_v0, %v8486_v63  ;;  %v8742_v4 = vld [vmem:[#allocation2 + $0x7c0] sm:$0xf]  ;;  %5228 = vmatpush.bf16.msra.mxu1 %v8231_v1 }
 0x1cf   :  { %v10562_v6 = vld [vmem:[#allocation2 + $0x7dc] sm:$0xf0] }
 0x1d0   :  { %v7942_v10 = vld [vmem:[#allocation2 + $0x180] sm:$0xf]  ;;  %v8743_v12 = vor.u32 %v10562_v6, %v8742_v4  ;;  %5241 = vmatpush.bf16.msra.mxu2 %v8487_v3 }
 0x1d1   :  { %v10362_v13 = vld [vmem:[#allocation2 + $0x19c] sm:$0xf0] }
 0x1d2   :  { %v8198_v14 = vld [vmem:[#allocation2 + $0x380] sm:$0xf]  ;;  %v7943_v16 = vor.u32 %v10362_v13, %v7942_v10  ;;  %5254 = vmatpush.bf16.msra.mxu3 %v8743_v12 }
 0x1d3   :  { %v10426_v15 = vld [vmem:[#allocation2 + $0x39c] sm:$0xf0] }
 0x1d4   :  { %v8199_v17 = vor.u32 %v10426_v15, %v8198_v14  ;;  %v8454_v19 = vld [vmem:[#allocation2 + $0x580] sm:$0xf]  ;;  %5216 = vmatpush.bf16.msra.mxu0 %v7943_v16 }
 0x1d5   :  { %v10490_v20 = vld [vmem:[#allocation2 + $0x59c] sm:$0xf0] }
 0x1d6   :  { %v8710_v24 = vld [vmem:[#allocation2 + $0x780] sm:$0xf]  ;;  %v8455_v26 = vor.u32 %v10490_v20, %v8454_v19  ;;  %5229 = vmatpush.bf16.msra.mxu1 %v8199_v17 }
 0x1d7   :  { %v10554_v28 = vld [vmem:[#allocation2 + $0x79c] sm:$0xf0] }
 0x1d8   :  { %v7910_v29 = vld [vmem:[#allocation2 + $0x140] sm:$0xf]  ;;  %v8711_v31 = vor.u32 %v10554_v28, %v8710_v24  ;;  %5242 = vmatpush.bf16.msra.mxu2 %v8455_v26 }
 0x1d9   :  { %v10354_v30 = vld [vmem:[#allocation2 + $0x15c] sm:$0xf0] }
 0x1da   :  { %v8166_v32 = vld [vmem:[#allocation2 + $0x340] sm:$0xf]  ;;  %v7911_v35 = vor.u32 %v10354_v30, %v7910_v29  ;;  %5255 = vmatpush.bf16.msra.mxu3 %v8711_v31 }
 0x1db   :  { %v10418_v33 = vld [vmem:[#allocation2 + $0x35c] sm:$0xf0] }
 0x1dc   :  { %v8422_v34 = vld [vmem:[#allocation2 + $0x540] sm:$0xf]  ;;  %v8167_v40 = vor.u32 %v10418_v33, %v8166_v32  ;;  %5217 = vmatpush.bf16.msra.mxu0 %v7911_v35 }
 0x1dd   :  { %v10482_v36 = vld [vmem:[#allocation2 + $0x55c] sm:$0xf0] }
 0x1de   :  { %v8678_v37 = vld [vmem:[#allocation2 + $0x740] sm:$0xf]  ;;  %v8423_v43 = vor.u32 %v10482_v36, %v8422_v34  ;;  %5230 = vmatpush.bf16.msra.mxu1 %v8167_v40 }
 0x1df   :  { %v10546_v39 = vld [vmem:[#allocation2 + $0x75c] sm:$0xf0] }
 0x1e0   :  { %v7878_v44 = vld [vmem:[#allocation2 + $0x100] sm:$0xf]  ;;  %v8679_v47 = vor.u32 %v10546_v39, %v8678_v37  ;;  %5243 = vmatpush.bf16.msra.mxu2 %v8423_v43 }
 0x1e1   :  { %v10346_v45 = vld [vmem:[#allocation2 + $0x11c] sm:$0xf0] }
 0x1e2   :  { %v8134_v46 = vld [vmem:[#allocation2 + $0x300] sm:$0xf]  ;;  %v7879_v18 = vor.u32 %v10346_v45, %v7878_v44  ;;  %5256 = vmatpush.bf16.msra.mxu3 %v8679_v47 }
 0x1e3   :  { %v10410_v48 = vld [vmem:[#allocation2 + $0x31c] sm:$0xf0] }
 0x1e4   :  { %v8390_v49 = vld [vmem:[#allocation2 + $0x500] sm:$0xf]  ;;  %v8135_v53 = vor.u32 %v10410_v48, %v8134_v46  ;;  %5218 = vmatpush.bf16.msra.mxu0 %v7879_v18 }
 0x1e5   :  { %v10474_v52 = vld [vmem:[#allocation2 + $0x51c] sm:$0xf0] }
 0x1e6   :  { %v8646_v8 = vld [vmem:[#allocation2 + $0x700] sm:$0xf]  ;;  %v8391_v57 = vor.u32 %v10474_v52, %v8390_v49  ;;  %5231 = vmatpush.bf16.msra.mxu1 %v8135_v53 }
 0x1e7   :  { %v10538_v9 = vld [vmem:[#allocation2 + $0x71c] sm:$0xf0] }
 0x1e8   :  { %v7846_v58 = vld [vmem:[#allocation2 + $0xc0] sm:$0xf]  ;;  %v8647_v50 = vor.u32 %v10538_v9, %v8646_v8  ;;  %5244 = vmatpush.bf16.msra.mxu2 %v8391_v57 }
 0x1e9   :  { %v10338_v59 = vld [vmem:[#allocation2 + $0xdc] sm:$0xf0] }
 0x1ea   :  { %v8102_v60 = vld [vmem:[#allocation2 + $0x2c0] sm:$0xf]  ;;  %v7847_v3 = vor.u32 %v10338_v59, %v7846_v58  ;;  %5257 = vmatpush.bf16.msra.mxu3 %v8647_v50 }
 0x1eb   :  { %v10402_v61 = vld [vmem:[#allocation2 + $0x2dc] sm:$0xf0] }
 0x1ec   :  { %v8358_v62 = vld [vmem:[#allocation2 + $0x4c0] sm:$0xf]  ;;  %v8103_v4 = vor.u32 %v10402_v61, %v8102_v60  ;;  %5219 = vmatpush.bf16.msra.mxu0 %v7847_v3 }
 0x1ed   :  { %v10466_v63 = vld [vmem:[#allocation2 + $0x4dc] sm:$0xf0] }
 0x1ee   :  { %v8614_v0 = vld [vmem:[#allocation2 + $0x6c0] sm:$0xf]  ;;  %v8359_v6 = vor.u32 %v10466_v63, %v8358_v62  ;;  %5232 = vmatpush.bf16.msra.mxu1 %v8103_v4 }
 0x1ef   :  { %v10530_v1 = vld [vmem:[#allocation2 + $0x6dc] sm:$0xf0] }
 0x1f0   :  { %v7814_v10 = vld [vmem:[#allocation2 + $0x80] sm:$0xf]  ;;  %v8615_v14 = vor.u32 %v10530_v1, %v8614_v0  ;;  %5245 = vmatpush.bf16.msra.mxu2 %v8359_v6 }
 0x1f1   :  { %v10330_v12 = vld [vmem:[#allocation2 + $0x9c] sm:$0xf0] }
 0x1f2   :  { %v8070_v13 = vld [vmem:[#allocation2 + $0x280] sm:$0xf]  ;;  %v7815_v24 = vor.u32 %v10330_v12, %v7814_v10  ;;  %5258 = vmatpush.bf16.msra.mxu3 %v8615_v14 }
 0x1f3   :  { %v10394_v15 = vld [vmem:[#allocation2 + $0x29c] sm:$0xf0] }
 0x1f4   :  { %v8326_v16 = vld [vmem:[#allocation2 + $0x480] sm:$0xf]  ;;  %v8071_v26 = vor.u32 %v10394_v15, %v8070_v13  ;;  %5220 = vmatpush.bf16.msra.mxu0 %v7815_v24 }
 0x1f5   :  { %v10458_v17 = vld [vmem:[#allocation2 + $0x49c] sm:$0xf0] }
 0x1f6   :  { %v8582_v19 = vld [vmem:[#allocation2 + $0x680] sm:$0xf]  ;;  %v8327_v28 = vor.u32 %v10458_v17, %v8326_v16  ;;  %5233 = vmatpush.bf16.msra.mxu1 %v8071_v26  ;;  %v11256_v26 = vpack.c.bf16 %v2102_v51, %v2102_v51 }
 0x1f7   :  { %v10522_v20 = vld [vmem:[#allocation2 + $0x69c] sm:$0xf0] }
 0x1f8   :  { %v7782_v29 = vld [vmem:[#allocation2 + $0x40] sm:$0xf]  ;;  %v8583_v32 = vor.u32 %v10522_v20, %v8582_v19  ;;  %5246 = vmatpush.bf16.msra.mxu2 %v8327_v28  ;;  %v11251_v19 = vpack.c.bf16 %v2104_v22, %v2104_v22  ;;  %v11261_v28 = vpack.c.bf16 %v2105_v55, %v2105_v55  ;;  %v11266_v22 = vpack.c.bf16 %v2103_v23, %v2103_v23 }
 0x1f9   :  { %v10322_v30 = vld [vmem:[#allocation2 + $0x5c] sm:$0xf0] }
 0x1fa   :  { %v8038_v31 = vld [vmem:[#allocation2 + $0x240] sm:$0xf]  ;;  %v7783_v39 = vor.u32 %v10322_v30, %v7782_v29  ;;  %5259 = vmatpush.bf16.msra.mxu3 %v8583_v32 }
 0x1fb   :  { %v10386_v33 = vld [vmem:[#allocation2 + $0x25c] sm:$0xf0] }
 0x1fc   :  { %v8294_v34 = vld [vmem:[#allocation2 + $0x440] sm:$0xf]  ;;  %v8039_v44 = vor.u32 %v10386_v33, %v8038_v31  ;;  %5221 = vmatpush.bf16.msra.mxu0 %v7783_v39 }
 0x1fd   :  { %v10450_v35 = vld [vmem:[#allocation2 + $0x45c] sm:$0xf0] }
 0x1fe   :  { %v8550_v36 = vld [vmem:[#allocation2 + $0x640] sm:$0xf]  ;;  %v8295_v45 = vor.u32 %v10450_v35, %v8294_v34  ;;  %5234 = vmatpush.bf16.msra.mxu1 %v8039_v44 }
 0x1ff   :  { %v10514_v37 = vld [vmem:[#allocation2 + $0x65c] sm:$0xf0] }
 0x200   :  { %v7750_v40 = vld [vmem:[#allocation2] sm:$0xf]  ;;  %v8551_v49 = vor.u32 %v10514_v37, %v8550_v36  ;;  %5247 = vmatpush.bf16.msra.mxu2 %v8295_v45 }
 0x201   :  { %v10314_v43 = vld [vmem:[#allocation2 + $0x1c] sm:$0xf0] }
 0x202   :  { %v8006_v46 = vld [vmem:[#allocation2 + $0x200] sm:$0xf]  ;;  %v7751_v58 = vor.u32 %v10314_v43, %v7750_v40  ;;  %5260 = vmatpush.bf16.msra.mxu3 %v8551_v49 }
 0x203   :  { %v10378_v47 = vld [vmem:[#allocation2 + $0x21c] sm:$0xf0] }
 0x204   :  { %v8262_v48 = vld [vmem:[#allocation2 + $0x400] sm:$0xf]  ;;  %v8007_v61 = vor.u32 %v10378_v47, %v8006_v46  ;;  %5222 = vmatpush.bf16.msra.mxu0 %v7751_v58 }
 0x205   :  { %v10442_v52 = vld [vmem:[#allocation2 + $0x41c] sm:$0xf0] }
 0x206   :  { %v8518_v8 = vld [vmem:[#allocation2 + $0x600] sm:$0xf]  ;;  %v8263_v62 = vor.u32 %v10442_v52, %v8262_v48  ;;  %5235 = vmatpush.bf16.msra.mxu1 %v8007_v61 }
 0x207   :  { %v10506_v9 = vld [vmem:[#allocation2 + $0x61c] sm:$0xf0]  ;;  %5223 = vmatmul.bf16.vlgmr.msra.gmra.mxu0 %v11256_v26 }
 0x208   :  { %v8998_v18 = vld [vmem:[#allocation2 + $0x9c0] sm:$0xf]  ;;  %v8519_v1 = vor.u32 %v10506_v9, %v8518_v8  ;;  %5248 = vmatpush.bf16.msra.mxu2 %v8263_v62 }
 0x209   :  { %v10626_v53 = vld [vmem:[#allocation2 + $0x9dc] sm:$0xf0]  ;;  %5236 = vmatmul.bf16.vlgmr.msra.gmra.mxu1 %v11266_v22 }
 0x20a   :  { %v9254_v57 = vld [vmem:[#allocation2 + $0xbc0] sm:$0xf]  ;;  %v8999_v3 = vor.u32 %v10626_v53, %v8998_v18  ;;  %5261 = vmatpush.bf16.msra.mxu3 %v8519_v1 }
 0x20b   :  { %v10690_v59 = vld [vmem:[#allocation2 + $0xbdc] sm:$0xf0]  ;;  %5249 = vmatmul.bf16.vlgmr.msra.gmra.mxu2 %v11251_v19 }
 0x20c   :  { %v9510_v60 = vld [vmem:[#allocation2 + $0xdc0] sm:$0xf]  ;;  %v9255_v4 = vor.u32 %v10690_v59, %v9254_v57  ;;  %5267 = vmatpush.bf16.msrb.mxu0 %v8999_v3 }
 0x20d   :  { %v10754_v50 = vld [vmem:[#allocation2 + $0xddc] sm:$0xf0]  ;;  %5262 = vmatmul.bf16.vlgmr.msra.gmra.mxu3 %v11261_v28 }
 0x20e   :  { %v9766_v63 = vld [vmem:[#allocation2 + $0xfc0] sm:$0xf]  ;;  %v9511_v6 = vor.u32 %v10754_v50, %v9510_v60  ;;  %5280 = vmatpush.bf16.msrb.mxu1 %v9255_v4 }
 0x20f   :  { %v10818_v0 = vld [vmem:[#allocation2 + $0xfdc] sm:$0xf0] }
 0x210   :  { %v8966_v10 = vld [vmem:[#allocation2 + $0x980] sm:$0xf]  ;;  %v9767_v14 = vor.u32 %v10818_v0, %v9766_v63  ;;  %5293 = vmatpush.bf16.msrb.mxu2 %v9511_v6 }
 0x211   :  { %v10618_v12 = vld [vmem:[#allocation2 + $0x99c] sm:$0xf0] }
 0x212   :  { %v9222_v13 = vld [vmem:[#allocation2 + $0xb80] sm:$0xf]  ;;  %v8967_v7 = vor.u32 %v10618_v12, %v8966_v10  ;;  %5306 = vmatpush.bf16.msrb.mxu3 %v9767_v14 }
 0x213   :  { %v10682_v15 = vld [vmem:[#allocation2 + $0xb9c] sm:$0xf0] }
 0x214   :  { %v9478_v16 = vld [vmem:[#allocation2 + $0xd80] sm:$0xf]  ;;  %v9223_v29 = vor.u32 %v10682_v15, %v9222_v13  ;;  %5268 = vmatpush.bf16.msrb.mxu0 %v8967_v7 }
 0x215   :  { %v10746_v17 = vld [vmem:[#allocation2 + $0xd9c] sm:$0xf0] }
 0x216   :  { %v9734_v20 = vld [vmem:[#allocation2 + $0xf80] sm:$0xf]  ;;  %v9479_v42 = vor.u32 %v10746_v17, %v9478_v16  ;;  %5281 = vmatpush.bf16.msrb.mxu1 %v9223_v29 }
 0x217   :  { %v10810_v24 = vld [vmem:[#allocation2 + $0xf9c] sm:$0xf0] }
 0x218   :  { %v8934_v30 = vld [vmem:[#allocation2 + $0x940] sm:$0xf]  ;;  %v9735_v25 = vor.u32 %v10810_v24, %v9734_v20  ;;  %5294 = vmatpush.bf16.msrb.mxu2 %v9479_v42 }
 0x219   :  { %v10610_v51 = vld [vmem:[#allocation2 + $0x95c] sm:$0xf0] }
 0x21a   :  { %v9190_v31 = vld [vmem:[#allocation2 + $0xb40] sm:$0xf]  ;;  %v8935_v11 = vor.u32 %v10610_v51, %v8934_v30  ;;  %5307 = vmatpush.bf16.msrb.mxu3 %v9735_v25 }
 0x21b   :  { %v10674_v32 = vld [vmem:[#allocation2 + $0xb5c] sm:$0xf0] }
 0x21c   :  { %v9446_v55 = vld [vmem:[#allocation2 + $0xd40] sm:$0xf]  ;;  %v9191_v23 = vor.u32 %v10674_v32, %v9190_v31  ;;  %5269 = vmatpush.bf16.msrb.mxu0 %v8935_v11 }
 0x21d   :  { %v10738_v33 = vld [vmem:[#allocation2 + $0xd5c] sm:$0xf0] }
 0x21e   :  { %v9702_v34 = vld [vmem:[#allocation2 + $0xf40] sm:$0xf]  ;;  %v9447_v36 = vor.u32 %v10738_v33, %v9446_v55  ;;  %5282 = vmatpush.bf16.msrb.mxu1 %v9191_v23 }
 0x21f   :  { %v10802_v35 = vld [vmem:[#allocation2 + $0xf5c] sm:$0xf0] }
 0x220   :  { %v8902_v37 = vld [vmem:[#allocation2 + $0x900] sm:$0xf]  ;;  %v9703_v43 = vor.u32 %v10802_v35, %v9702_v34  ;;  %5295 = vmatpush.bf16.msrb.mxu2 %v9447_v36 }
 0x221   :  { %v10602_v39 = vld [vmem:[#allocation2 + $0x91c] sm:$0xf0] }
 0x222   :  { %v9158_v40 = vld [vmem:[#allocation2 + $0xb00] sm:$0xf]  ;;  %v8903_v49 = vor.u32 %v10602_v39, %v8902_v37  ;;  %5308 = vmatpush.bf16.msrb.mxu3 %v9703_v43 }
 0x223   :  { %v10666_v44 = vld [vmem:[#allocation2 + $0xb1c] sm:$0xf0] }
 0x224   :  { %v9414_v45 = vld [vmem:[#allocation2 + $0xd00] sm:$0xf]  ;;  %v9159_v52 = vor.u32 %v10666_v44, %v9158_v40  ;;  %5270 = vmatpush.bf16.msrb.mxu0 %v8903_v49  ;;  %v8232_v49 = vld [vmem:[#allocation2 + $0x3e0] sm:$0xf0] }
 0x225   :  { %v10730_v46 = vld [vmem:[#allocation2 + $0xd1c] sm:$0xf0] }
 0x226   :  { %v9670_v47 = vld [vmem:[#allocation2 + $0xf00] sm:$0xf]  ;;  %v9415_v8 = vor.u32 %v10730_v46, %v9414_v45  ;;  %5283 = vmatpush.bf16.msrb.mxu1 %v9159_v52  ;;  %v10366_v45 = vld [vmem:[#allocation2 + $0x1c4] sm:$0xf] }
 0x227   :  { %v10794_v48 = vld [vmem:[#allocation2 + $0xf1c] sm:$0xf0]  ;;  %v7976_v46 = vld [vmem:[#allocation2 + $0x1e0] sm:$0xf0] }
 0x228   :  { %v8870_v9 = vld [vmem:[#allocation2 + $0x8c0] sm:$0xf]  ;;  %v9671_v57 = vor.u32 %v10794_v48, %v9670_v47  ;;  %5296 = vmatpush.bf16.msrb.mxu2 %v9415_v8  ;;  %v10430_v47 = vld [vmem:[#allocation2 + $0x3c4] sm:$0xf] }
 0x229   :  { %v10594_v18 = vld [vmem:[#allocation2 + $0x8dc] sm:$0xf0]  ;;  %v10494_v52 = vld [vmem:[#allocation2 + $0x5c4] sm:$0xf] }
 0x22a   :  { %v9126_v53 = vld [vmem:[#allocation2 + $0xac0] sm:$0xf]  ;;  %v8871_v62 = vor.u32 %v10594_v18, %v8870_v9  ;;  %5309 = vmatpush.bf16.msrb.mxu3 %v9671_v57  ;;  %v8488_v8 = vld [vmem:[#allocation2 + $0x5e0] sm:$0xf0] }
 0x22b   :  { %v10658_v58 = vld [vmem:[#allocation2 + $0xadc] sm:$0xf0]  ;;  %v8744_v57 = vld [vmem:[#allocation2 + $0x7e0] sm:$0xf0] }
 0x22c   :  { %v9382_v59 = vld [vmem:[#allocation2 + $0xcc0] sm:$0xf]  ;;  %v9127_v63 = vor.u32 %v10658_v58, %v9126_v53  ;;  %5271 = vmatpush.bf16.msrb.mxu0 %v8871_v62  ;;  %v10558_v53 = vld [vmem:[#allocation2 + $0x7c4] sm:$0xf] }
 0x22d   :  { %v10722_v60 = vld [vmem:[#allocation2 + $0xcdc] sm:$0xf0]  ;;  %v7944_v62 = vld [vmem:[#allocation2 + $0x1a0] sm:$0xf0] }
 0x22e   :  { %v9638_v50 = vld [vmem:[#allocation2 + $0xec0] sm:$0xf]  ;;  %v9383_v0 = vor.u32 %v10722_v60, %v9382_v59  ;;  %5284 = vmatpush.bf16.msrb.mxu1 %v9127_v63  ;;  %v7979_v59 = vor.u32 %v10366_v45, %v7976_v46  ;;  %v8235_v60 = vor.u32 %v10430_v47, %v8232_v49  ;;  %v10422_v63 = vld [vmem:[#allocation2 + $0x384] sm:$0xf] }
 0x22f   :  { %v10786_v61 = vld [vmem:[#allocation2 + $0xedc] sm:$0xf0]  ;;  %v10462_v45 = vld [vmem:[#allocation2 + $0x4c4] sm:$0xf] }
 0x230   :  { %v8838_v1 = vld [vmem:[#allocation2 + $0x880] sm:$0xf]  ;;  %v9639_v6 = vor.u32 %v10786_v61, %v9638_v50  ;;  %5297 = vmatpush.bf16.msrb.mxu2 %v9383_v0  ;;  %v8491_v50 = vor.u32 %v10494_v52, %v8488_v8  ;;  %v10358_v61 = vld [vmem:[#allocation2 + $0x184] sm:$0xf]  ;;  %v8747_v0 = vor.u32 %v10558_v53, %v8744_v57 }
 0x231   :  { %v10586_v3 = vld [vmem:[#allocation2 + $0x89c] sm:$0xf0]  ;;  %v7947_v38 = vor.u32 %v10358_v61, %v7944_v62  ;;  %v8360_v46 = vld [vmem:[#allocation2 + $0x4e0] sm:$0xf0] }
 0x232   :  { %v9094_v4 = vld [vmem:[#allocation2 + $0xa80] sm:$0xf]  ;;  %v8839_v16 = vor.u32 %v10586_v3, %v8838_v1  ;;  %5310 = vmatpush.bf16.msrb.mxu3 %v9639_v6  ;;  %v8200_v1 = vld [vmem:[#allocation2 + $0x3a0] sm:$0xf0]  ;;  %v11275_v6 = vpack.c.bf16 %v2108_v41, %v2108_v41  ;;  %v11290_v41 = vpack.c.bf16 %v2107_v27, %v2107_v27  ;;  %v8363_v8 = vor.u32 %v10462_v45, %v8360_v46 }
 0x233   :  { %v10650_v10 = vld [vmem:[#allocation2 + $0xa9c] sm:$0xf0]  ;;  %v10486_v3 = vld [vmem:[#allocation2 + $0x584] sm:$0xf] }
 0x234   :  { %v9350_v12 = vld [vmem:[#allocation2 + $0xc80] sm:$0xf]  ;;  %v9095_v17 = vor.u32 %v10650_v10, %v9094_v4  ;;  %5272 = vmatpush.bf16.msrb.mxu0 %v8839_v16  ;;  %v8456_v4 = vld [vmem:[#allocation2 + $0x5a0] sm:$0xf0] }
 0x235   :  { %v10714_v13 = vld [vmem:[#allocation2 + $0xc9c] sm:$0xf0]  ;;  %v10550_v10 = vld [vmem:[#allocation2 + $0x784] sm:$0xf]  ;;  %v8459_v2 = vor.u32 %v10486_v3, %v8456_v4 }
 0x236   :  { %v9606_v14 = vld [vmem:[#allocation2 + $0xe80] sm:$0xf]  ;;  %v9351_v20 = vor.u32 %v10714_v13, %v9350_v12  ;;  %5285 = vmatpush.bf16.msrb.mxu1 %v9095_v17  ;;  %v8712_v12 = vld [vmem:[#allocation2 + $0x7a0] sm:$0xf0]  ;;  %v11280_v13 = vpack.c.bf16 %v2106_v5, %v2106_v5 }
 0x237   :  { %v10778_v15 = vld [vmem:[#allocation2 + $0xe9c] sm:$0xf0]  ;;  %v10350_v16 = vld [vmem:[#allocation2 + $0x144] sm:$0xf]  ;;  %v8715_v54 = vor.u32 %v10550_v10, %v8712_v12 }
 0x238   :  { %v8806_v24 = vld [vmem:[#allocation2 + $0x840] sm:$0xf]  ;;  %v9607_v42 = vor.u32 %v10778_v15, %v9606_v14  ;;  %5298 = vmatpush.bf16.msrb.mxu2 %v9351_v20  ;;  %v11285_v14 = vpack.c.bf16 %v2109_v56, %v2109_v56  ;;  %v8203_v15 = vor.u32 %v10422_v63, %v8200_v1  ;;  %v7912_v5 = vld [vmem:[#allocation2 + $0x160] sm:$0xf0] }
 0x239   :  { %v10578_v7 = vld [vmem:[#allocation2 + $0x85c] sm:$0xf0]  ;;  %v10414_v17 = vld [vmem:[#allocation2 + $0x344] sm:$0xf] }
 0x23a   :  { %v9062_v29 = vld [vmem:[#allocation2 + $0xa40] sm:$0xf]  ;;  %v8807_v55 = vor.u32 %v10578_v7, %v8806_v24  ;;  %5311 = vmatpush.bf16.msrb.mxu3 %v9607_v42  ;;  %v8168_v56 = vld [vmem:[#allocation2 + $0x360] sm:$0xf0]  ;;  %v7915_v7 = vor.u32 %v10350_v16, %v7912_v5 }
 0x23b   :  { %v10642_v30 = vld [vmem:[#allocation2 + $0xa5c] sm:$0xf0]  ;;  %v10478_v20 = vld [vmem:[#allocation2 + $0x544] sm:$0xf] }
 0x23c   :  { %v9318_v51 = vld [vmem:[#allocation2 + $0xc40] sm:$0xf]  ;;  %v9063_v35 = vor.u32 %v10642_v30, %v9062_v29  ;;  %5273 = vmatpush.bf16.msrb.mxu0 %v8807_v55  ;;  %v8424_v24 = vld [vmem:[#allocation2 + $0x560] sm:$0xf0]  ;;  %v8171_v29 = vor.u32 %v10414_v17, %v8168_v56 }
 0x23d   :  { %v10706_v31 = vld [vmem:[#allocation2 + $0xc5c] sm:$0xf0]  ;;  %v8680_v27 = vld [vmem:[#allocation2 + $0x760] sm:$0xf0]  ;;  %v8427_v42 = vor.u32 %v10478_v20, %v8424_v24 }
 0x23e   :  { %v9574_v25 = vld [vmem:[#allocation2 + $0xe40] sm:$0xf]  ;;  %v9319_v11 = vor.u32 %v10706_v31, %v9318_v51  ;;  %5286 = vmatpush.bf16.msrb.mxu1 %v9063_v35  ;;  %v10342_v30 = vld [vmem:[#allocation2 + $0x104] sm:$0xf] }
 0x23f   :  { %v10770_v32 = vld [vmem:[#allocation2 + $0xe5c] sm:$0xf0]  ;;  %v7880_v51 = vld [vmem:[#allocation2 + $0x120] sm:$0xf0] }
 0x240   :  { %v8774_v33 = vld [vmem:[#allocation2 + $0x800] sm:$0xf]  ;;  %v9575_v39 = vor.u32 %v10770_v32, %v9574_v25  ;;  %5299 = vmatpush.bf16.msrb.mxu2 %v9319_v11  ;;  %v10406_v31 = vld [vmem:[#allocation2 + $0x304] sm:$0xf]  ;;  %v8683_v25 = vor.u32 %v10542_v21, %v8680_v27  ;;  %v7883_v11 = vor.u32 %v10342_v30, %v7880_v51 }
 0x241   :  { %v10570_v34 = vld [vmem:[#allocation2 + $0x81c] sm:$0xf0]  ;;  %v8136_v32 = vld [vmem:[#allocation2 + $0x320] sm:$0xf0] }
 0x242   :  { %v9030_v23 = vld [vmem:[#allocation2 + $0xa00] sm:$0xf]  ;;  %v8775_v48 = vor.u32 %v10570_v34, %v8774_v33  ;;  %5312 = vmatpush.bf16.msrb.mxu3 %v9575_v39  ;;  %v10470_v55 = vld [vmem:[#allocation2 + $0x504] sm:$0xf] }
 0x243   :  { %v10634_v36 = vld [vmem:[#allocation2 + $0xa1c] sm:$0xf0]  ;;  %v8392_v33 = vld [vmem:[#allocation2 + $0x520] sm:$0xf0] }
 0x244   :  { %v9286_v37 = vld [vmem:[#allocation2 + $0xc00] sm:$0xf]  ;;  %v9031_v9 = vor.u32 %v10634_v36, %v9030_v23  ;;  %5274 = vmatpush.bf16.msrb.mxu0 %v8775_v48  ;;  %v10534_v34 = vld [vmem:[#allocation2 + $0x704] sm:$0xf]  ;;  %v8139_v23 = vor.u32 %v10406_v31, %v8136_v32  ;;  %v8395_v36 = vor.u32 %v10470_v55, %v8392_v33 }
 0x245   :  { %v10698_v40 = vld [vmem:[#allocation2 + $0xc1c] sm:$0xf0]  ;;  %v8648_v35 = vld [vmem:[#allocation2 + $0x720] sm:$0xf0] }
 0x246   :  { %v9542_v43 = vld [vmem:[#allocation2 + $0xe00] sm:$0xf]  ;;  %v9287_v18 = vor.u32 %v10698_v40, %v9286_v37  ;;  %5287 = vmatpush.bf16.msrb.mxu1 %v9031_v9  ;;  %v10334_v37 = vld [vmem:[#allocation2 + $0xc4] sm:$0xf] }
 0x247   :  { %v10762_v44 = vld [vmem:[#allocation2 + $0xe1c] sm:$0xf0]  ;;  %5275 = vmatmul.bf16.vlgmr.msrb.gmra.mxu0 %v11280_v13  ;;  %v7848_v39 = vld [vmem:[#allocation2 + $0xe0] sm:$0xf0] }
 0x248   :  { %v9543_v58 = vor.u32 %v10762_v44, %v9542_v43  ;;  %5300 = vmatpush.bf16.msrb.mxu2 %v9287_v18  ;;  %5319 = vmatpush.bf16.msra.mxu0 %v7979_v59  ;;  %v10398_v40 = vld [vmem:[#allocation2 + $0x2c4] sm:$0xf]  ;;  %v8651_v43 = vor.u32 %v10534_v34, %v8648_v35  ;;  %v7851_v49 = vor.u32 %v10334_v37, %v7848_v39 }
 0x249   :  { %5288 = vmatmul.bf16.vlgmr.msrb.gmra.mxu1 %v11290_v41  ;;  %v8104_v44 = vld [vmem:[#allocation2 + $0x2e0] sm:$0xf0] }
 0x24a   :  { %5313 = vmatpush.bf16.msrb.mxu3 %v9543_v58  ;;  %5332 = vmatpush.bf16.msra.mxu1 %v8235_v60  ;;  %v10526_v47 = vld [vmem:[#allocation2 + $0x6c4] sm:$0xf]  ;;  %v8107_v52 = vor.u32 %v10398_v40, %v8104_v44 }
 0x24b   :  { %5301 = vmatmul.bf16.vlgmr.msrb.gmra.mxu2 %v11275_v6  ;;  %v8616_v48 = vld [vmem:[#allocation2 + $0x6e0] sm:$0xf0] }
 0x24c   :  { %5345 = vmatpush.bf16.msra.mxu2 %v8491_v50  ;;  %5320 = vmatpush.bf16.msra.mxu0 %v7947_v38  ;;  %v10326_v9 = vld [vmem:[#allocation2 + $0x84] sm:$0xf]  ;;  %v8619_v57 = vor.u32 %v10526_v47, %v8616_v48 }
 0x24d   :  { %5314 = vmatmul.bf16.vlgmr.msrb.gmra.mxu3 %v11285_v14  ;;  %v7816_v18 = vld [vmem:[#allocation2 + $0xa0] sm:$0xf0] }
 0x24e   :  { %5358 = vmatpush.bf16.msra.mxu3 %v8747_v0  ;;  %5333 = vmatpush.bf16.msra.mxu1 %v8203_v15  ;;  %v10390_v53 = vld [vmem:[#allocation2 + $0x284] sm:$0xf]  ;;  %v7819_v62 = vor.u32 %v10326_v9, %v7816_v18 }
 0x24f   :  { %v8072_v58 = vld [vmem:[#allocation2 + $0x2a0] sm:$0xf0] }
 0x250   :  { %5346 = vmatpush.bf16.msra.mxu2 %v8459_v2  ;;  %5321 = vmatpush.bf16.msra.mxu0 %v7915_v7  ;;  %v10454_v59 = vld [vmem:[#allocation2 + $0x484] sm:$0xf]  ;;  %v8075_v63 = vor.u32 %v10390_v53, %v8072_v58 }
 0x251   :  { %v8328_v60 = vld [vmem:[#allocation2 + $0x4a0] sm:$0xf0] }
 0x252   :  { %5359 = vmatpush.bf16.msra.mxu3 %v8715_v54  ;;  %5334 = vmatpush.bf16.msra.mxu1 %v8171_v29  ;;  %v10518_v50 = vld [vmem:[#allocation2 + $0x684] sm:$0xf]  ;;  %v8331_v0 = vor.u32 %v10454_v59, %v8328_v60 }
 0x253   :  { %v8584_v61 = vld [vmem:[#allocation2 + $0x6a0] sm:$0xf0] }
 0x254   :  { %5347 = vmatpush.bf16.msra.mxu2 %v8427_v42  ;;  %5322 = vmatpush.bf16.msra.mxu0 %v7883_v11  ;;  %v10318_v1 = vld [vmem:[#allocation2 + $0x44] sm:$0xf]  ;;  %v8587_v10 = vor.u32 %v10518_v50, %v8584_v61 }
 0x255   :  { %v7784_v3 = vld [vmem:[#allocation2 + $0x60] sm:$0xf0] }
 0x256   :  { %5360 = vmatpush.bf16.msra.mxu3 %v8683_v25  ;;  %5335 = vmatpush.bf16.msra.mxu1 %v8139_v23  ;;  %v10382_v4 = vld [vmem:[#allocation2 + $0x244] sm:$0xf]  ;;  %v7787_v5 = vor.u32 %v10318_v1, %v7784_v3 }
 0x257   :  { %v8040_v12 = vld [vmem:[#allocation2 + $0x260] sm:$0xf0] }
 0x258   :  { %5348 = vmatpush.bf16.msra.mxu2 %v8395_v36  ;;  %5323 = vmatpush.bf16.msra.mxu0 %v7851_v49  ;;  %v10446_v38 = vld [vmem:[#allocation2 + $0x444] sm:$0xf]  ;;  %v8043_v56 = vor.u32 %v10382_v4, %v8040_v12 }
 0x259   :  { %v8296_v15 = vld [vmem:[#allocation2 + $0x460] sm:$0xf0] }
 0x25a   :  { %5361 = vmatpush.bf16.msra.mxu3 %v8651_v43  ;;  %5336 = vmatpush.bf16.msra.mxu1 %v8107_v52  ;;  %v10510_v2 = vld [vmem:[#allocation2 + $0x644] sm:$0xf]  ;;  %v8299_v20 = vor.u32 %v10446_v38, %v8296_v15 }
 0x25b   :  { %v8552_v16 = vld [vmem:[#allocation2 + $0x660] sm:$0xf0] }
 0x25c   :  { %5349 = vmatpush.bf16.msra.mxu2 %v8363_v8  ;;  %5324 = vmatpush.bf16.msra.mxu0 %v7819_v62  ;;  %v10310_v17 = vld [vmem:[#allocation2 + $0x4] sm:$0xf]  ;;  %v8555_v7 = vor.u32 %v10510_v2, %v8552_v16 }
 0x25d   :  { %v7752_v54 = vld [vmem:[#allocation2 + $0x20] sm:$0xf0] }
 0x25e   :  { %5362 = vmatpush.bf16.msra.mxu3 %v8619_v57  ;;  %5337 = vmatpush.bf16.msra.mxu1 %v8075_v63  ;;  %v10374_v24 = vld [vmem:[#allocation2 + $0x204] sm:$0xf]  ;;  %v7755_v32 = vor.u32 %v10310_v17, %v7752_v54 }
 0x25f   :  { %v8008_v21 = vld [vmem:[#allocation2 + $0x220] sm:$0xf0] }
 0x260   :  { %5350 = vmatpush.bf16.msra.mxu2 %v8331_v0  ;;  %v10438_v27 = vld [vmem:[#allocation2 + $0x404] sm:$0xf]  ;;  %5325 = vmatpush.bf16.msra.mxu0 %v7787_v5  ;;  %v8011_v35 = vor.u32 %v10374_v24, %v8008_v21 }
 0x261   :  { %v8264_v29 = vld [vmem:[#allocation2 + $0x420] sm:$0xf0] }
 0x262   :  { %5363 = vmatpush.bf16.msra.mxu3 %v8587_v10  ;;  %v10502_v42 = vld [vmem:[#allocation2 + $0x604] sm:$0xf]  ;;  %5338 = vmatpush.bf16.msra.mxu1 %v8043_v56  ;;  %v8267_v11 = vor.u32 %v10438_v27, %v8264_v29 }
 0x263   :  { %v8520_v30 = vld [vmem:[#allocation2 + $0x620] sm:$0xf0] }
 0x264   :  { %v10622_v51 = vld [vmem:[#allocation2 + $0x9c4] sm:$0xf]  ;;  %5351 = vmatpush.bf16.msra.mxu2 %v8299_v20  ;;  %v8523_v37 = vor.u32 %v10502_v42, %v8520_v30  ;;  %5326 = vmatpush.bf16.msra.mxu0 %v7755_v32 }
 0x265   :  { %v9000_v31 = vld [vmem:[#allocation2 + $0x9e0] sm:$0xf0] }
 0x266   :  { %v10686_v25 = vld [vmem:[#allocation2 + $0xbc4] sm:$0xf]  ;;  %5364 = vmatpush.bf16.msra.mxu3 %v8555_v7  ;;  %v9003_v39 = vor.u32 %v10622_v51, %v9000_v31  ;;  %5339 = vmatpush.bf16.msra.mxu1 %v8011_v35 }
 0x267   :  { %v9256_v55 = vld [vmem:[#allocation2 + $0xbe0] sm:$0xf0]  ;;  %5327 = vmatmul.bf16.vlgmr.msra.gmra.mxu0 %v11256_v26 }
 0x268   :  { %v10750_v33 = vld [vmem:[#allocation2 + $0xdc4] sm:$0xf]  ;;  %v9259_v40 = vor.u32 %v10686_v25, %v9256_v55  ;;  %5352 = vmatpush.bf16.msra.mxu2 %v8267_v11  ;;  %5371 = vmatpush.bf16.msrb.mxu0 %v9003_v39 }
 0x269   :  { %v9512_v34 = vld [vmem:[#allocation2 + $0xde0] sm:$0xf0]  ;;  %5340 = vmatmul.bf16.vlgmr.msra.gmra.mxu1 %v11266_v22 }
 0x26a   :  { %v10814_v23 = vld [vmem:[#allocation2 + $0xfc4] sm:$0xf]  ;;  %v9515_v43 = vor.u32 %v10750_v33, %v9512_v34  ;;  %5365 = vmatpush.bf16.msra.mxu3 %v8523_v37  ;;  %5384 = vmatpush.bf16.msrb.mxu1 %v9259_v40 }
 0x26b   :  { %v9768_v36 = vld [vmem:[#allocation2 + $0xfe0] sm:$0xf0]  ;;  %5353 = vmatmul.bf16.vlgmr.msra.gmra.mxu2 %v11251_v19 }
 0x26c   :  { %v10614_v44 = vld [vmem:[#allocation2 + $0x984] sm:$0xf]  ;;  %v9771_v47 = vor.u32 %v10814_v23, %v9768_v36  ;;  %5397 = vmatpush.bf16.msrb.mxu2 %v9515_v43 }
 0x26d   :  { %v8968_v45 = vld [vmem:[#allocation2 + $0x9a0] sm:$0xf0]  ;;  %5366 = vmatmul.bf16.vlgmr.msra.gmra.mxu3 %v11261_v28 }
 0x26e   :  { %v10678_v46 = vld [vmem:[#allocation2 + $0xb84] sm:$0xf]  ;;  %v8971_v18 = vor.u32 %v10614_v44, %v8968_v45  ;;  %5410 = vmatpush.bf16.msrb.mxu3 %v9771_v47 }
 0x26f   :  { %v9224_v48 = vld [vmem:[#allocation2 + $0xba0] sm:$0xf0] }
 0x270   :  { %v10742_v49 = vld [vmem:[#allocation2 + $0xd84] sm:$0xf]  ;;  %v9227_v53 = vor.u32 %v10678_v46, %v9224_v48  ;;  %5372 = vmatpush.bf16.msrb.mxu0 %v8971_v18 }
 0x271   :  { %v9480_v52 = vld [vmem:[#allocation2 + $0xda0] sm:$0xf0] }
 0x272   :  { %v10806_v8 = vld [vmem:[#allocation2 + $0xf84] sm:$0xf]  ;;  %v9483_v57 = vor.u32 %v10742_v49, %v9480_v52  ;;  %5385 = vmatpush.bf16.msrb.mxu1 %v9227_v53 }
 0x273   :  { %v9736_v9 = vld [vmem:[#allocation2 + $0xfa0] sm:$0xf0] }
 0x274   :  { %v10606_v58 = vld [vmem:[#allocation2 + $0x944] sm:$0xf]  ;;  %v9739_v50 = vor.u32 %v10806_v8, %v9736_v9  ;;  %5398 = vmatpush.bf16.msrb.mxu2 %v9483_v57 }
 0x275   :  { %v8936_v59 = vld [vmem:[#allocation2 + $0x960] sm:$0xf0] }
 0x276   :  { %v10670_v60 = vld [vmem:[#allocation2 + $0xb44] sm:$0xf]  ;;  %v8939_v3 = vor.u32 %v10606_v58, %v8936_v59  ;;  %5411 = vmatpush.bf16.msrb.mxu3 %v9739_v50 }
 0x277   :  { %v9192_v61 = vld [vmem:[#allocation2 + $0xb60] sm:$0xf0] }
 0x278   :  { %v10734_v62 = vld [vmem:[#allocation2 + $0xd44] sm:$0xf]  ;;  %v9195_v4 = vor.u32 %v10670_v60, %v9192_v61  ;;  %5373 = vmatpush.bf16.msrb.mxu0 %v8939_v3 }
 0x279   :  { %v9448_v63 = vld [vmem:[#allocation2 + $0xd60] sm:$0xf0] }
 0x27a   :  { %v10798_v0 = vld [vmem:[#allocation2 + $0xf44] sm:$0xf]  ;;  %v9451_v10 = vor.u32 %v10734_v62, %v9448_v63  ;;  %5386 = vmatpush.bf16.msrb.mxu1 %v9195_v4 }
 0x27b   :  { %v9704_v1 = vld [vmem:[#allocation2 + $0xf60] sm:$0xf0] }
 0x27c   :  { %v10598_v12 = vld [vmem:[#allocation2 + $0x904] sm:$0xf]  ;;  %v9707_v2 = vor.u32 %v10798_v0, %v9704_v1  ;;  %5399 = vmatpush.bf16.msrb.mxu2 %v9451_v10 }
 0x27d   :  { %v8904_v38 = vld [vmem:[#allocation2 + $0x920] sm:$0xf0] }
 0x27e   :  { %v10662_v15 = vld [vmem:[#allocation2 + $0xb04] sm:$0xf]  ;;  %v8907_v20 = vor.u32 %v10598_v12, %v8904_v38  ;;  %5412 = vmatpush.bf16.msrb.mxu3 %v9707_v2  ;;  %v7982_v38 = vld [vmem:[#allocation2 + $0x1c8] sm:$0xf] }
 0x27f   :  { %v9160_v16 = vld [vmem:[#allocation2 + $0xb20] sm:$0xf0]  ;;  %v8238_v2 = vld [vmem:[#allocation2 + $0x3c8] sm:$0xf] }
 0x280   :  { %v10726_v5 = vld [vmem:[#allocation2 + $0xd04] sm:$0xf]  ;;  %v9163_v24 = vor.u32 %v10662_v15, %v9160_v16  ;;  %5374 = vmatpush.bf16.msrb.mxu0 %v8907_v20  ;;  %v10371_v15 = vld [vmem:[#allocation2 + $0x1e4] sm:$0xf0] }
 0x281   :  { %v9416_v17 = vld [vmem:[#allocation2 + $0xd20] sm:$0xf0] }
 0x282   :  { %v10790_v54 = vld [vmem:[#allocation2 + $0xf04] sm:$0xf]  ;;  %v9419_v21 = vor.u32 %v10726_v5, %v9416_v17  ;;  %5387 = vmatpush.bf16.msrb.mxu1 %v9163_v24  ;;  %v10435_v5 = vld [vmem:[#allocation2 + $0x3e4] sm:$0xf0] }
 0x283   :  { %v9672_v56 = vld [vmem:[#allocation2 + $0xf20] sm:$0xf0]  ;;  %v8494_v17 = vld [vmem:[#allocation2 + $0x5c8] sm:$0xf] }
 0x284   :  { %v10590_v27 = vld [vmem:[#allocation2 + $0x8c4] sm:$0xf]  ;;  %v9675_v42 = vor.u32 %v10790_v54, %v9672_v56  ;;  %5400 = vmatpush.bf16.msrb.mxu2 %v9419_v21  ;;  %v10499_v54 = vld [vmem:[#allocation2 + $0x5e4] sm:$0xf0] }
 0x285   :  { %v8872_v7 = vld [vmem:[#allocation2 + $0x8e0] sm:$0xf0]  ;;  %v8750_v24 = vld [vmem:[#allocation2 + $0x7c8] sm:$0xf] }
 0x286   :  { %v10654_v29 = vld [vmem:[#allocation2 + $0xac4] sm:$0xf]  ;;  %v8875_v55 = vor.u32 %v10590_v27, %v8872_v7  ;;  %5413 = vmatpush.bf16.msrb.mxu3 %v9675_v42  ;;  %v10563_v21 = vld [vmem:[#allocation2 + $0x7e4] sm:$0xf0]  ;;  %v7983_v7 = vor.u32 %v10371_v15, %v7982_v38  ;;  %v8495_v42 = vor.u32 %v10499_v54, %v8494_v17 }
 0x287   :  { %v9128_v30 = vld [vmem:[#allocation2 + $0xae0] sm:$0xf0]  ;;  %v8366_v38 = vld [vmem:[#allocation2 + $0x4c8] sm:$0xf] }
 0x288   :  { %v10718_v51 = vld [vmem:[#allocation2 + $0xcc4] sm:$0xf]  ;;  %v9131_v33 = vor.u32 %v10654_v29, %v9128_v30  ;;  %5375 = vmatpush.bf16.msrb.mxu0 %v8875_v55  ;;  %v8239_v29 = vor.u32 %v10435_v5, %v8238_v2  ;;  %v7950_v30 = vld [vmem:[#allocation2 + $0x188] sm:$0xf] }
 0x289   :  { %v9384_v31 = vld [vmem:[#allocation2 + $0xce0] sm:$0xf0]  ;;  %v8462_v55 = vld [vmem:[#allocation2 + $0x588] sm:$0xf] }
 0x28a   :  { %v10782_v25 = vld [vmem:[#allocation2 + $0xec4] sm:$0xf]  ;;  %v9387_v34 = vor.u32 %v10718_v51, %v9384_v31  ;;  %5388 = vmatpush.bf16.msrb.mxu1 %v9131_v33  ;;  %v10363_v51 = vld [vmem:[#allocation2 + $0x1a4] sm:$0xf0] }
 0x28b   :  { %v9640_v32 = vld [vmem:[#allocation2 + $0xee0] sm:$0xf0]  ;;  %v8206_v31 = vld [vmem:[#allocation2 + $0x388] sm:$0xf] }
 0x28c   :  { %v10582_v35 = vld [vmem:[#allocation2 + $0x884] sm:$0xf]  ;;  %v9643_v36 = vor.u32 %v10782_v25, %v9640_v32  ;;  %5401 = vmatpush.bf16.msrb.mxu2 %v9387_v34  ;;  %v8751_v25 = vor.u32 %v10563_v21, %v8750_v24  ;;  %v10427_v32 = vld [vmem:[#allocation2 + $0x3a4] sm:$0xf0] }
 0x28d   :  { %v8840_v11 = vld [vmem:[#allocation2 + $0x8a0] sm:$0xf0]  ;;  %v10491_v33 = vld [vmem:[#allocation2 + $0x5a4] sm:$0xf0] }
 0x28e   :  { %v10646_v23 = vld [vmem:[#allocation2 + $0xa84] sm:$0xf]  ;;  %v8843_v45 = vor.u32 %v10582_v35, %v8840_v11  ;;  %5414 = vmatpush.bf16.msrb.mxu3 %v9643_v36  ;;  %v8718_v34 = vld [vmem:[#allocation2 + $0x788] sm:$0xf]  ;;  %v7951_v11 = vor.u32 %v10363_v51, %v7950_v30  ;;  %v8463_v36 = vor.u32 %v10491_v33, %v8462_v55 }
 0x28f   :  { %v9096_v37 = vld [vmem:[#allocation2 + $0xaa0] sm:$0xf0]  ;;  %v10555_v35 = vld [vmem:[#allocation2 + $0x7a4] sm:$0xf0] }
 0x290   :  { %v10710_v39 = vld [vmem:[#allocation2 + $0xc84] sm:$0xf]  ;;  %v9099_v46 = vor.u32 %v10646_v23, %v9096_v37  ;;  %5376 = vmatpush.bf16.msrb.mxu0 %v8843_v45  ;;  %v8207_v23 = vor.u32 %v10427_v32, %v8206_v31  ;;  %v7918_v37 = vld [vmem:[#allocation2 + $0x148] sm:$0xf] }
 0x291   :  { %v9352_v40 = vld [vmem:[#allocation2 + $0xca0] sm:$0xf0]  ;;  %v8430_v45 = vld [vmem:[#allocation2 + $0x548] sm:$0xf] }
 0x292   :  { %v10774_v43 = vld [vmem:[#allocation2 + $0xe84] sm:$0xf]  ;;  %v9355_v47 = vor.u32 %v10710_v39, %v9352_v40  ;;  %5389 = vmatpush.bf16.msrb.mxu1 %v9099_v46  ;;  %v10355_v39 = vld [vmem:[#allocation2 + $0x164] sm:$0xf0] }
 0x293   :  { %v9608_v44 = vld [vmem:[#allocation2 + $0xea0] sm:$0xf0]  ;;  %v8174_v40 = vld [vmem:[#allocation2 + $0x348] sm:$0xf] }
 0x294   :  { %v10574_v48 = vld [vmem:[#allocation2 + $0x844] sm:$0xf]  ;;  %v9611_v8 = vor.u32 %v10774_v43, %v9608_v44  ;;  %5402 = vmatpush.bf16.msrb.mxu2 %v9355_v47  ;;  %v8719_v43 = vor.u32 %v10555_v35, %v8718_v34  ;;  %v10419_v44 = vld [vmem:[#allocation2 + $0x364] sm:$0xf0] }
 0x295   :  { %v8808_v49 = vld [vmem:[#allocation2 + $0x860] sm:$0xf0]  ;;  %v10483_v46 = vld [vmem:[#allocation2 + $0x564] sm:$0xf0] }
 0x296   :  { %v10638_v52 = vld [vmem:[#allocation2 + $0xa44] sm:$0xf]  ;;  %v8811_v59 = vor.u32 %v10574_v48, %v8808_v49  ;;  %5415 = vmatpush.bf16.msrb.mxu3 %v9611_v8  ;;  %v8686_v47 = vld [vmem:[#allocation2 + $0x748] sm:$0xf]  ;;  %v7919_v49 = vor.u32 %v10355_v39, %v7918_v37  ;;  %v8431_v8 = vor.u32 %v10483_v46, %v8430_v45 }
 0x297   :  { %v9064_v9 = vld [vmem:[#allocation2 + $0xa60] sm:$0xf0]  ;;  %v10547_v48 = vld [vmem:[#allocation2 + $0x764] sm:$0xf0] }
 0x298   :  { %v10702_v18 = vld [vmem:[#allocation2 + $0xc44] sm:$0xf]  ;;  %v9067_v61 = vor.u32 %v10638_v52, %v9064_v9  ;;  %5377 = vmatpush.bf16.msrb.mxu0 %v8811_v59  ;;  %v8175_v52 = vor.u32 %v10419_v44, %v8174_v40  ;;  %v7886_v9 = vld [vmem:[#allocation2 + $0x108] sm:$0xf] }
 0x299   :  { %v9320_v53 = vld [vmem:[#allocation2 + $0xc60] sm:$0xf0]  ;;  %v8398_v59 = vld [vmem:[#allocation2 + $0x508] sm:$0xf] }
 0x29a   :  { %v10766_v57 = vld [vmem:[#allocation2 + $0xe44] sm:$0xf]  ;;  %v9323_v62 = vor.u32 %v10702_v18, %v9320_v53  ;;  %5390 = vmatpush.bf16.msrb.mxu1 %v9067_v61  ;;  %v10347_v18 = vld [vmem:[#allocation2 + $0x124] sm:$0xf0] }
 0x29b   :  { %v9576_v58 = vld [vmem:[#allocation2 + $0xe60] sm:$0xf0]  ;;  %v8142_v53 = vld [vmem:[#allocation2 + $0x308] sm:$0xf] }
 0x29c   :  { %v10566_v60 = vld [vmem:[#allocation2 + $0x804] sm:$0xf]  ;;  %v9579_v3 = vor.u32 %v10766_v57, %v9576_v58  ;;  %5403 = vmatpush.bf16.msrb.mxu2 %v9323_v62  ;;  %v8687_v57 = vor.u32 %v10547_v48, %v8686_v47  ;;  %v10411_v58 = vld [vmem:[#allocation2 + $0x324] sm:$0xf0]  ;;  %v7887_v62 = vor.u32 %v10347_v18, %v7886_v9 }
 0x29d   :  { %v8776_v50 = vld [vmem:[#allocation2 + $0x820] sm:$0xf0]  ;;  %v10539_v61 = vld [vmem:[#allocation2 + $0x724] sm:$0xf0] }
 0x29e   :  { %v10630_v63 = vld [vmem:[#allocation2 + $0xa04] sm:$0xf]  ;;  %v8779_v16 = vor.u32 %v10566_v60, %v8776_v50  ;;  %5416 = vmatpush.bf16.msrb.mxu3 %v9579_v3  ;;  %v10475_v60 = vld [vmem:[#allocation2 + $0x524] sm:$0xf0] }
 0x29f   :  { %v9032_v0 = vld [vmem:[#allocation2 + $0xa20] sm:$0xf0]  ;;  %v8654_v50 = vld [vmem:[#allocation2 + $0x708] sm:$0xf] }
 0x2a0   :  { %v10694_v1 = vld [vmem:[#allocation2 + $0xc04] sm:$0xf]  ;;  %v9035_v56 = vor.u32 %v10630_v63, %v9032_v0  ;;  %5378 = vmatpush.bf16.msrb.mxu0 %v8779_v16  ;;  %v8143_v63 = vor.u32 %v10411_v58, %v8142_v53  ;;  %v8399_v0 = vor.u32 %v10475_v60, %v8398_v59  ;;  %v10339_v3 = vld [vmem:[#allocation2 + $0xe4] sm:$0xf0] }
 0x2a1   :  { %v9288_v4 = vld [vmem:[#allocation2 + $0xc20] sm:$0xf0]  ;;  %v10467_v15 = vld [vmem:[#allocation2 + $0x4e4] sm:$0xf0] }
 0x2a2   :  { %v10758_v10 = vld [vmem:[#allocation2 + $0xe04] sm:$0xf]  ;;  %v9291_v20 = vor.u32 %v10694_v1, %v9288_v4  ;;  %5391 = vmatpush.bf16.msrb.mxu1 %v9035_v56  ;;  %v7854_v1 = vld [vmem:[#allocation2 + $0xc8] sm:$0xf]  ;;  %v8367_v54 = vor.u32 %v10467_v15, %v8366_v38 }
 0x2a3   :  { %v9544_v12 = vld [vmem:[#allocation2 + $0xe20] sm:$0xf0]  ;;  %5379 = vmatmul.bf16.vlgmr.msrb.gmra.mxu0 %v11280_v13  ;;  %v8110_v4 = vld [vmem:[#allocation2 + $0x2c8] sm:$0xf]  ;;  %v7855_v5 = vor.u32 %v10339_v3, %v7854_v1 }
 0x2a4   :  { %v9547_v27 = vor.u32 %v10758_v10, %v9544_v12  ;;  %5404 = vmatpush.bf16.msrb.mxu2 %v9291_v20  ;;  %5423 = vmatpush.bf16.msra.mxu0 %v7983_v7  ;;  %v8655_v10 = vor.u32 %v10539_v61, %v8654_v50  ;;  %v10403_v12 = vld [vmem:[#allocation2 + $0x2e4] sm:$0xf0] }
 0x2a5   :  { %5392 = vmatmul.bf16.vlgmr.msrb.gmra.mxu1 %v11290_v41  ;;  %v8622_v2 = vld [vmem:[#allocation2 + $0x6c8] sm:$0xf]  ;;  %v8111_v17 = vor.u32 %v10403_v12, %v8110_v4 }
 0x2a6   :  { %5417 = vmatpush.bf16.msrb.mxu3 %v9547_v27  ;;  %5436 = vmatpush.bf16.msra.mxu1 %v8239_v29  ;;  %v10531_v16 = vld [vmem:[#allocation2 + $0x6e4] sm:$0xf0] }
 0x2a7   :  { %5405 = vmatmul.bf16.vlgmr.msrb.gmra.mxu2 %v11275_v6  ;;  %v7822_v56 = vld [vmem:[#allocation2 + $0x88] sm:$0xf]  ;;  %v8623_v21 = vor.u32 %v10531_v16, %v8622_v2 }
 0x2a8   :  { %5449 = vmatpush.bf16.msra.mxu2 %v8495_v42  ;;  %5424 = vmatpush.bf16.msra.mxu0 %v7951_v11  ;;  %v10331_v20 = vld [vmem:[#allocation2 + $0xa4] sm:$0xf0] }
 0x2a9   :  { %5418 = vmatmul.bf16.vlgmr.msrb.gmra.mxu3 %v11285_v14  ;;  %v8078_v24 = vld [vmem:[#allocation2 + $0x288] sm:$0xf]  ;;  %v7823_v51 = vor.u32 %v10331_v20, %v7822_v56 }
 0x2aa   :  { %5462 = vmatpush.bf16.msra.mxu3 %v8751_v25  ;;  %5437 = vmatpush.bf16.msra.mxu1 %v8207_v23  ;;  %v10395_v27 = vld [vmem:[#allocation2 + $0x2a4] sm:$0xf0] }
 0x2ab   :  { %v8334_v7 = vld [vmem:[#allocation2 + $0x488] sm:$0xf]  ;;  %v8079_v31 = vor.u32 %v10395_v27, %v8078_v24 }
 0x2ac   :  { %5450 = vmatpush.bf16.msra.mxu2 %v8463_v36  ;;  %5425 = vmatpush.bf16.msra.mxu0 %v7919_v49  ;;  %v10459_v29 = vld [vmem:[#allocation2 + $0x4a4] sm:$0xf0] }
 0x2ad   :  { %v8590_v42 = vld [vmem:[#allocation2 + $0x688] sm:$0xf]  ;;  %v8335_v25 = vor.u32 %v10459_v29, %v8334_v7 }
 0x2ae   :  { %5463 = vmatpush.bf16.msra.mxu3 %v8719_v43  ;;  %5438 = vmatpush.bf16.msra.mxu1 %v8175_v52  ;;  %v10523_v30 = vld [vmem:[#allocation2 + $0x6a4] sm:$0xf0] }
 0x2af   :  { %v7790_v32 = vld [vmem:[#allocation2 + $0x48] sm:$0xf]  ;;  %v8591_v34 = vor.u32 %v10523_v30, %v8590_v42 }
 0x2b0   :  { %5451 = vmatpush.bf16.msra.mxu2 %v8431_v8  ;;  %5426 = vmatpush.bf16.msra.mxu0 %v7887_v62  ;;  %v10323_v55 = vld [vmem:[#allocation2 + $0x64] sm:$0xf0] }
 0x2b1   :  { %v8046_v33 = vld [vmem:[#allocation2 + $0x248] sm:$0xf]  ;;  %v7791_v39 = vor.u32 %v10323_v55, %v7790_v32 }
 0x2b2   :  { %5464 = vmatpush.bf16.msra.mxu3 %v8687_v57  ;;  %5439 = vmatpush.bf16.msra.mxu1 %v8143_v63  ;;  %v10387_v35 = vld [vmem:[#allocation2 + $0x264] sm:$0xf0] }
 0x2b3   :  { %v8302_v11 = vld [vmem:[#allocation2 + $0x448] sm:$0xf]  ;;  %v8047_v44 = vor.u32 %v10387_v35, %v8046_v33 }
 0x2b4   :  { %5452 = vmatpush.bf16.msra.mxu2 %v8399_v0  ;;  %5427 = vmatpush.bf16.msra.mxu0 %v7855_v5  ;;  %v10451_v23 = vld [vmem:[#allocation2 + $0x464] sm:$0xf0] }
 0x2b5   :  { %v8558_v36 = vld [vmem:[#allocation2 + $0x648] sm:$0xf]  ;;  %v8303_v45 = vor.u32 %v10451_v23, %v8302_v11 }
 0x2b6   :  { %5465 = vmatpush.bf16.msra.mxu3 %v8655_v10  ;;  %5440 = vmatpush.bf16.msra.mxu1 %v8111_v17  ;;  %v10515_v37 = vld [vmem:[#allocation2 + $0x664] sm:$0xf0] }
 0x2b7   :  { %v7758_v40 = vld [vmem:[#allocation2 + $0x8] sm:$0xf]  ;;  %v8559_v49 = vor.u32 %v10515_v37, %v8558_v36 }
 0x2b8   :  { %5453 = vmatpush.bf16.msra.mxu2 %v8367_v54  ;;  %5428 = vmatpush.bf16.msra.mxu0 %v7823_v51  ;;  %v10315_v43 = vld [vmem:[#allocation2 + $0x24] sm:$0xf0] }
 0x2b9   :  { %v8014_v46 = vld [vmem:[#allocation2 + $0x208] sm:$0xf]  ;;  %v7759_v58 = vor.u32 %v10315_v43, %v7758_v40 }
 0x2ba   :  { %5466 = vmatpush.bf16.msra.mxu3 %v8623_v21  ;;  %5441 = vmatpush.bf16.msra.mxu1 %v8079_v31  ;;  %v10379_v47 = vld [vmem:[#allocation2 + $0x224] sm:$0xf0] }
 0x2bb   :  { %v8270_v48 = vld [vmem:[#allocation2 + $0x408] sm:$0xf]  ;;  %v8015_v61 = vor.u32 %v10379_v47, %v8014_v46 }
 0x2bc   :  { %5454 = vmatpush.bf16.msra.mxu2 %v8335_v25  ;;  %v10443_v52 = vld [vmem:[#allocation2 + $0x424] sm:$0xf0]  ;;  %5429 = vmatpush.bf16.msra.mxu0 %v7791_v39 }
 0x2bd   :  { %v8526_v8 = vld [vmem:[#allocation2 + $0x608] sm:$0xf]  ;;  %v8271_v62 = vor.u32 %v10443_v52, %v8270_v48  ;;  %v5224_v48 = vpop.f32.mrf.mxu0 }
 0x2be   :  { %5467 = vmatpush.bf16.msra.mxu3 %v8591_v34  ;;  %v10507_v9 = vld [vmem:[#allocation2 + $0x624] sm:$0xf0]  ;;  %5442 = vmatpush.bf16.msra.mxu1 %v8047_v44 }
 0x2bf   :  { %v9006_v18 = vld [vmem:[#allocation2 + $0x9c8] sm:$0xf]  ;;  %v8527_v1 = vor.u32 %v10507_v9, %v8526_v8 }
 0x2c0   :  { %v10627_v53 = vld [vmem:[#allocation2 + $0x9e4] sm:$0xf0]  ;;  %5455 = vmatpush.bf16.msra.mxu2 %v8303_v45  ;;  %5430 = vmatpush.bf16.msra.mxu0 %v7759_v58 }
 0x2c1   :  { %v9262_v57 = vld [vmem:[#allocation2 + $0xbc8] sm:$0xf]  ;;  %v9007_v3 = vor.u32 %v10627_v53, %v9006_v18 }
 0x2c2   :  { %v10691_v59 = vld [vmem:[#allocation2 + $0xbe4] sm:$0xf0]  ;;  %5468 = vmatpush.bf16.msra.mxu3 %v8559_v49  ;;  %5443 = vmatpush.bf16.msra.mxu1 %v8015_v61 }
 0x2c3   :  { %v9518_v60 = vld [vmem:[#allocation2 + $0xdc8] sm:$0xf]  ;;  %v9263_v4 = vor.u32 %v10691_v59, %v9262_v57  ;;  %5431 = vmatmul.bf16.vlgmr.msra.gmra.mxu0 %v11256_v26  ;;  %v5237_v57 = vpop.f32.mrf.mxu1 }
 0x2c4   :  { %v10755_v50 = vld [vmem:[#allocation2 + $0xde4] sm:$0xf0]  ;;  %5456 = vmatpush.bf16.msra.mxu2 %v8271_v62  ;;  %5475 = vmatpush.bf16.msrb.mxu0 %v9007_v3 }
 0x2c5   :  { %v9774_v63 = vld [vmem:[#allocation2 + $0xfc8] sm:$0xf]  ;;  %v9519_v10 = vor.u32 %v10755_v50, %v9518_v60  ;;  %5444 = vmatmul.bf16.vlgmr.msra.gmra.mxu1 %v11266_v22 }
 0x2c6   :  { %v10819_v0 = vld [vmem:[#allocation2 + $0xfe4] sm:$0xf0]  ;;  %5469 = vmatpush.bf16.msra.mxu3 %v8527_v1  ;;  %5488 = vmatpush.bf16.msrb.mxu1 %v9263_v4 }
 0x2c7   :  { %v8974_v12 = vld [vmem:[#allocation2 + $0x988] sm:$0xf]  ;;  %v9775_v2 = vor.u32 %v10819_v0, %v9774_v63  ;;  %5457 = vmatmul.bf16.vlgmr.msra.gmra.mxu2 %v11251_v19 }
 0x2c8   :  { %v10619_v38 = vld [vmem:[#allocation2 + $0x9a4] sm:$0xf0]  ;;  %5501 = vmatpush.bf16.msrb.mxu2 %v9519_v10 }
 0x2c9   :  { %v9230_v15 = vld [vmem:[#allocation2 + $0xb88] sm:$0xf]  ;;  %v8975_v20 = vor.u32 %v10619_v38, %v8974_v12  ;;  %5470 = vmatmul.bf16.vlgmr.msra.gmra.mxu3 %v11261_v28  ;;  %v5250_v38 = vpop.f32.mrf.mxu2 }
 0x2ca   :  { %v10683_v16 = vld [vmem:[#allocation2 + $0xba4] sm:$0xf0]  ;;  %5514 = vmatpush.bf16.msrb.mxu3 %v9775_v2 }
 0x2cb   :  { %v9486_v5 = vld [vmem:[#allocation2 + $0xd88] sm:$0xf]  ;;  %v9231_v21 = vor.u32 %v10683_v16, %v9230_v15  ;;  %5476 = vmatpush.bf16.msrb.mxu0 %v8975_v20 }
 0x2cc   :  { %v10747_v17 = vld [vmem:[#allocation2 + $0xda4] sm:$0xf0] }
 0x2cd   :  { %v9742_v54 = vld [vmem:[#allocation2 + $0xf88] sm:$0xf]  ;;  %v9487_v27 = vor.u32 %v10747_v17, %v9486_v5  ;;  %5489 = vmatpush.bf16.msrb.mxu1 %v9231_v21 }
 0x2ce   :  { %v10811_v56 = vld [vmem:[#allocation2 + $0xfa4] sm:$0xf0] }
 0x2cf   :  { %v8942_v24 = vld [vmem:[#allocation2 + $0x948] sm:$0xf]  ;;  %v9743_v30 = vor.u32 %v10811_v56, %v9742_v54  ;;  %5502 = vmatpush.bf16.msrb.mxu2 %v9487_v27  ;;  %v5263_v54 = vpop.f32.mrf.mxu3  ;;  %v5226_v27 = vpop.f32.mrf.mxu0 }
 0x2d0   :  { %v10611_v7 = vld [vmem:[#allocation2 + $0x964] sm:$0xf0]  ;;  %v10351_v27 = vld [vmem:[#allocation2 + $0x14c] sm:$0xf] }
 0x2d1   :  { %v9198_v29 = vld [vmem:[#allocation2 + $0xb48] sm:$0xf]  ;;  %v8943_v33 = vor.u32 %v10611_v7, %v8942_v24  ;;  %5515 = vmatpush.bf16.msrb.mxu3 %v9743_v30 }
 0x2d2   :  { %v10675_v42 = vld [vmem:[#allocation2 + $0xb64] sm:$0xf0] }
 0x2d3   :  { %v9454_v51 = vld [vmem:[#allocation2 + $0xd48] sm:$0xf]  ;;  %v9199_v35 = vor.u32 %v10675_v42, %v9198_v29  ;;  %5477 = vmatpush.bf16.msrb.mxu0 %v8943_v33 }
 0x2d4   :  { %v10739_v31 = vld [vmem:[#allocation2 + $0xd64] sm:$0xf0] }
 0x2d5   :  { %v11305_v25 = vld [vmem:[#allocation11] sm:$0xff]  ;;  %v9455_v11 = vor.u32 %v10739_v31, %v9454_v51  ;;  %5490 = vmatpush.bf16.msrb.mxu1 %v9199_v35  ;;  %v5239_v31 = vpop.f32.mrf.mxu1 }
 0x2d6   :  { %v9710_v32 = vld [vmem:[#allocation2 + $0xf48] sm:$0xf]  ;;  %v2639_v37 = vperm.slane %v11305_v25, 0  ;;  %v8432_v31 = vld [vmem:[#allocation2 + $0x568] sm:$0xf0] }
 0x2d7   :  { %v10803_v55 = vld [vmem:[#allocation2 + $0xf64] sm:$0xf0]  ;;  %5503 = vmatpush.bf16.msrb.mxu2 %v9455_v11 }
 0x2d8   :  { %v8910_v34 = vld [vmem:[#allocation2 + $0x908] sm:$0xf]  ;;  %v9711_v39 = vor.u32 %v10803_v55, %v9710_v32  ;;  %v5225_v53 = vadd.f32 %v5224_v48, %v2639_v37 }
 0x2d9   :  { %v10603_v23 = vld [vmem:[#allocation2 + $0x924] sm:$0xf0] }
 0x2da   :  { %v9166_v36 = vld [vmem:[#allocation2 + $0xb08] sm:$0xf]  ;;  %v8911_v47 = vor.u32 %v10603_v23, %v8910_v34  ;;  %5516 = vmatpush.bf16.msrb.mxu3 %v9711_v39  ;;  %v5238_v63 = vadd.f32 %v5237_v57, %v5225_v53  ;;  %v10431_v53 = vld [vmem:[#allocation2 + $0x3cc] sm:$0xf] }
 0x2db   :  { %v10667_v40 = vld [vmem:[#allocation2 + $0xb24] sm:$0xf0] }
 0x2dc   :  { %v9422_v43 = vld [vmem:[#allocation2 + $0xd08] sm:$0xf]  ;;  %v9167_v49 = vor.u32 %v10667_v40, %v9166_v36  ;;  %5478 = vmatpush.bf16.msrb.mxu0 %v8911_v47  ;;  %v5251_v17 = vadd.f32 %v5250_v38, %v5238_v63  ;;  %v8752_v63 = vld [vmem:[#allocation2 + $0x7e8] sm:$0xf0] }
 0x2dd   :  { %v10731_v44 = vld [vmem:[#allocation2 + $0xd24] sm:$0xf0]  ;;  %v10423_v38 = vld [vmem:[#allocation2 + $0x38c] sm:$0xf] }
 0x2de   :  { %v9678_v45 = vld [vmem:[#allocation2 + $0xf08] sm:$0xf]  ;;  %v9423_v52 = vor.u32 %v10731_v44, %v9422_v43  ;;  %5491 = vmatpush.bf16.msrb.mxu1 %v9167_v49  ;;  %v11311_v21 = vadd.f32 %v5263_v54, %v5251_v17  ;;  %v10551_v17 = vld [vmem:[#allocation2 + $0x78c] sm:$0xf] }
 0x2df   :  { %v10795_v46 = vld [vmem:[#allocation2 + $0xf24] sm:$0xf0]  ;;  %v8720_v54 = vld [vmem:[#allocation2 + $0x7a8] sm:$0xf0] }
 0x2e0   :  { %v8878_v8 = vld [vmem:[#allocation2 + $0x8c8] sm:$0xf]  ;;  %v9679_v58 = vor.u32 %v10795_v46, %v9678_v45  ;;  %5504 = vmatpush.bf16.msrb.mxu2 %v9423_v52  ;;  %v5252_v46 = vpop.f32.mrf.mxu2 }
 0x2e1   :  { %v10595_v9 = vld [vmem:[#allocation2 + $0x8e4] sm:$0xf0] }
 0x2e2   :  { %v9134_v18 = vld [vmem:[#allocation2 + $0xac8] sm:$0xf]  ;;  %v8879_v0 = vor.u32 %v10595_v9, %v8878_v8  ;;  %5517 = vmatpush.bf16.msrb.mxu3 %v9679_v58  ;;  %v5265_v8 = vpop.f32.mrf.mxu3  ;;  %v10367_v9 = vld [vmem:[#allocation2 + $0x1cc] sm:$0xf] }
 0x2e3   :  { %v10659_v59 = vld [vmem:[#allocation2 + $0xae4] sm:$0xf0]  ;;  %v8240_v58 = vld [vmem:[#allocation2 + $0x3e8] sm:$0xf0] }
 0x2e4   :  { %v9390_v60 = vld [vmem:[#allocation2 + $0xcc8] sm:$0xf]  ;;  %v9135_v1 = vor.u32 %v10659_v59, %v9134_v18  ;;  %5479 = vmatpush.bf16.msrb.mxu0 %v8879_v0  ;;  %v7984_v18 = vld [vmem:[#allocation2 + $0x1e8] sm:$0xf0] }
 0x2e5   :  { %v10723_v50 = vld [vmem:[#allocation2 + $0xce4] sm:$0xf0]  ;;  %v10495_v59 = vld [vmem:[#allocation2 + $0x5cc] sm:$0xf] }
 0x2e6   :  { %v9646_v61 = vld [vmem:[#allocation2 + $0xec8] sm:$0xf]  ;;  %v9391_v3 = vor.u32 %v10723_v50, %v9390_v60  ;;  %5492 = vmatpush.bf16.msrb.mxu1 %v9135_v1  ;;  %v8496_v60 = vld [vmem:[#allocation2 + $0x5e8] sm:$0xf0]  ;;  %v7987_v1 = vor.u32 %v10367_v9, %v7984_v18 }
 0x2e7   :  { %v10787_v62 = vld [vmem:[#allocation2 + $0xee4] sm:$0xf0]  ;;  %v7856_v8 = vld [vmem:[#allocation2 + $0xe8] sm:$0xf0] }
 0x2e8   :  { %v8846_v4 = vld [vmem:[#allocation2 + $0x888] sm:$0xf]  ;;  %v9647_v15 = vor.u32 %v10787_v62, %v9646_v61  ;;  %5505 = vmatpush.bf16.msrb.mxu2 %v9391_v3  ;;  %v10559_v62 = vld [vmem:[#allocation2 + $0x7cc] sm:$0xf]  ;;  %v8243_v3 = vor.u32 %v10431_v53, %v8240_v58  ;;  %v5289_v53 = vpop.f32.mrf.mxu1 }
 0x2e9   :  { %v10587_v10 = vld [vmem:[#allocation2 + $0x8a4] sm:$0xf0]  ;;  %v10399_v9 = vld [vmem:[#allocation2 + $0x2cc] sm:$0xf] }
 0x2ea   :  { %v9102_v12 = vld [vmem:[#allocation2 + $0xa88] sm:$0xf]  ;;  %v8847_v24 = vor.u32 %v10587_v10, %v8846_v4  ;;  %5518 = vmatpush.bf16.msrb.mxu3 %v9647_v15  ;;  %v8499_v4 = vor.u32 %v10495_v59, %v8496_v60  ;;  %v10359_v10 = vld [vmem:[#allocation2 + $0x18c] sm:$0xf]  ;;  %v8755_v15 = vor.u32 %v10559_v62, %v8752_v63 }
 0x2eb   :  { %v10651_v2 = vld [vmem:[#allocation2 + $0xaa4] sm:$0xf0]  ;;  %v8112_v58 = vld [vmem:[#allocation2 + $0x2e8] sm:$0xf0] }
 0x2ec   :  { %v9358_v16 = vld [vmem:[#allocation2 + $0xc88] sm:$0xf]  ;;  %v9103_v7 = vor.u32 %v10651_v2, %v9102_v12  ;;  %5480 = vmatpush.bf16.msrb.mxu0 %v8847_v24  ;;  %v7952_v12 = vld [vmem:[#allocation2 + $0x1a8] sm:$0xf0] }
 0x2ed   :  { %v10715_v5 = vld [vmem:[#allocation2 + $0xca4] sm:$0xf0]  ;;  %v8208_v2 = vld [vmem:[#allocation2 + $0x3a8] sm:$0xf0] }
 0x2ee   :  { %v9614_v56 = vld [vmem:[#allocation2 + $0xe88] sm:$0xf]  ;;  %v9359_v29 = vor.u32 %v10715_v5, %v9358_v16  ;;  %5493 = vmatpush.bf16.msrb.mxu1 %v9103_v7  ;;  %v10487_v16 = vld [vmem:[#allocation2 + $0x58c] sm:$0xf] }
 0x2ef   :  { %v10779_v20 = vld [vmem:[#allocation2 + $0xea4] sm:$0xf0]  ;;  %v8464_v5 = vld [vmem:[#allocation2 + $0x5a8] sm:$0xf0] }
 0x2f0   :  { %v8814_v42 = vld [vmem:[#allocation2 + $0x848] sm:$0xf]  ;;  %v9615_v32 = vor.u32 %v10779_v20, %v9614_v56  ;;  %5506 = vmatpush.bf16.msrb.mxu2 %v9359_v29  ;;  %v7955_v56 = vor.u32 %v10359_v10, %v7952_v12  ;;  %v8211_v20 = vor.u32 %v10423_v38, %v8208_v2  ;;  %v8467_v24 = vor.u32 %v10487_v16, %v8464_v5  ;;  %v7920_v7 = vld [vmem:[#allocation2 + $0x168] sm:$0xf0]  ;;  %v5302_v12 = vpop.f32.mrf.mxu2  ;;  %v5315_v5 = vpop.f32.mrf.mxu3 }
 0x2f1   :  { %v10579_v30 = vld [vmem:[#allocation2 + $0x864] sm:$0xf0]  ;;  %v10415_v29 = vld [vmem:[#allocation2 + $0x34c] sm:$0xf] }
 0x2f2   :  { %v9070_v51 = vld [vmem:[#allocation2 + $0xa48] sm:$0xf]  ;;  %v8815_v23 = vor.u32 %v10579_v30, %v8814_v42  ;;  %5519 = vmatpush.bf16.msrb.mxu3 %v9615_v32  ;;  %v8723_v42 = vor.u32 %v10551_v17, %v8720_v54  ;;  %v8176_v30 = vld [vmem:[#allocation2 + $0x368] sm:$0xf0] }
 0x2f3   :  { %v10643_v55 = vld [vmem:[#allocation2 + $0xa64] sm:$0xf0]  ;;  %v10543_v32 = vld [vmem:[#allocation2 + $0x74c] sm:$0xf] }
 0x2f4   :  { %v9326_v33 = vld [vmem:[#allocation2 + $0xc48] sm:$0xf]  ;;  %v9071_v39 = vor.u32 %v10643_v55, %v9070_v51  ;;  %5481 = vmatpush.bf16.msrb.mxu0 %v8815_v23  ;;  %v10479_v51 = vld [vmem:[#allocation2 + $0x54c] sm:$0xf] }
 0x2f5   :  { %v10707_v34 = vld [vmem:[#allocation2 + $0xc64] sm:$0xf0]  ;;  %v8688_v55 = vld [vmem:[#allocation2 + $0x768] sm:$0xf0] }
 0x2f6   :  { %v9582_v35 = vld [vmem:[#allocation2 + $0xe48] sm:$0xf]  ;;  %v9327_v40 = vor.u32 %v10707_v34, %v9326_v33  ;;  %5494 = vmatpush.bf16.msrb.mxu1 %v9071_v39  ;;  %v7923_v33 = vor.u32 %v10351_v27, %v7920_v7  ;;  %v8179_v34 = vor.u32 %v10415_v29, %v8176_v30  ;;  %v7888_v23 = vld [vmem:[#allocation2 + $0x128] sm:$0xf0] }
 0x2f7   :  { %v10771_v11 = vld [vmem:[#allocation2 + $0xe64] sm:$0xf0]  ;;  %v8144_v39 = vld [vmem:[#allocation2 + $0x328] sm:$0xf0] }
 0x2f8   :  { %v8782_v36 = vld [vmem:[#allocation2 + $0x808] sm:$0xf]  ;;  %v9583_v47 = vor.u32 %v10771_v11, %v9582_v35  ;;  %5507 = vmatpush.bf16.msrb.mxu2 %v9327_v40  ;;  %v8435_v35 = vor.u32 %v10479_v51, %v8432_v31  ;;  %v10343_v11 = vld [vmem:[#allocation2 + $0x10c] sm:$0xf]  ;;  %v5291_v31 = vpop.f32.mrf.mxu1 }
 0x2f9   :  { %v10571_v37 = vld [vmem:[#allocation2 + $0x824] sm:$0xf0]  ;;  %v10471_v40 = vld [vmem:[#allocation2 + $0x50c] sm:$0xf]  ;;  %v7891_v46 = vor.u32 %v10343_v11, %v7888_v23 }
 0x2fa   :  { %v9038_v43 = vld [vmem:[#allocation2 + $0xa08] sm:$0xf]  ;;  %v8783_v57 = vor.u32 %v10571_v37, %v8782_v36  ;;  %5520 = vmatpush.bf16.msrb.mxu3 %v9583_v47  ;;  %v10407_v36 = vld [vmem:[#allocation2 + $0x30c] sm:$0xf]  ;;  %v8691_v37 = vor.u32 %v10543_v32, %v8688_v55  ;;  %v5276_v47 = vpop.f32.mrf.mxu0 }
 0x2fb   :  { %v10635_v44 = vld [vmem:[#allocation2 + $0xa24] sm:$0xf0]  ;;  %v5277_v18 = vadd.f32 %v5276_v47, %v11311_v21  ;;  %v10463_v59 = vld [vmem:[#allocation2 + $0x4cc] sm:$0xf] }
 0x2fc   :  { %v9294_v45 = vld [vmem:[#allocation2 + $0xc08] sm:$0xf]  ;;  %v9039_v50 = vor.u32 %v10635_v44, %v9038_v43  ;;  %5482 = vmatpush.bf16.msrb.mxu0 %v8783_v57  ;;  %v8400_v43 = vld [vmem:[#allocation2 + $0x528] sm:$0xf0] }
 0x2fd   :  { %v10699_v48 = vld [vmem:[#allocation2 + $0xc24] sm:$0xf0]  ;;  %v10535_v44 = vld [vmem:[#allocation2 + $0x70c] sm:$0xf]  ;;  %v5290_v62 = vadd.f32 %v5289_v53, %v5277_v18 }
 0x2fe   :  { %v9550_v49 = vld [vmem:[#allocation2 + $0xe08] sm:$0xf]  ;;  %v9295_v61 = vor.u32 %v10699_v48, %v9294_v45  ;;  %5495 = vmatpush.bf16.msrb.mxu1 %v9039_v50  ;;  %v8656_v45 = vld [vmem:[#allocation2 + $0x728] sm:$0xf0]  ;;  %v8147_v48 = vor.u32 %v10407_v36, %v8144_v39 }
 0x2ff   :  { %v10763_v52 = vld [vmem:[#allocation2 + $0xe24] sm:$0xf0]  ;;  %5483 = vmatmul.bf16.vlgmr.msrb.gmra.mxu0 %v11280_v13  ;;  %v8659_v57 = vor.u32 %v10535_v44, %v8656_v45  ;;  %v8368_v60 = vld [vmem:[#allocation2 + $0x4e8] sm:$0xf0]  ;;  %v5303_v16 = vadd.f32 %v5302_v12, %v5290_v62 }
 0x300   :  { %v9551_v0 = vor.u32 %v10763_v52, %v9550_v49  ;;  %5508 = vmatpush.bf16.msrb.mxu2 %v9295_v61  ;;  %5527 = vmatpush.bf16.msra.mxu0 %v7987_v1  ;;  %v8403_v49 = vor.u32 %v10471_v40, %v8400_v43  ;;  %v10335_v52 = vld [vmem:[#allocation2 + $0xcc] sm:$0xf]  ;;  %v8371_v1 = vor.u32 %v10463_v59, %v8368_v60 }
 0x301   :  { %5496 = vmatmul.bf16.vlgmr.msrb.gmra.mxu1 %v11290_v41  ;;  %v10527_v50 = vld [vmem:[#allocation2 + $0x6cc] sm:$0xf]  ;;  %v7859_v63 = vor.u32 %v10335_v52, %v7856_v8  ;;  %v5317_v8 = vpop.f32.mrf.mxu3 }
 0x302   :  { %5521 = vmatpush.bf16.msrb.mxu3 %v9551_v0  ;;  %5540 = vmatpush.bf16.msra.mxu1 %v8243_v3  ;;  %v8624_v61 = vld [vmem:[#allocation2 + $0x6e8] sm:$0xf0]  ;;  %v8115_v0 = vor.u32 %v10399_v9, %v8112_v58  ;;  %v5278_v27 = vpop.f32.mrf.mxu0 }
 0x303   :  { %5509 = vmatmul.bf16.vlgmr.msrb.gmra.mxu2 %v11275_v6  ;;  %v10327_v3 = vld [vmem:[#allocation2 + $0x8c] sm:$0xf]  ;;  %v8627_v21 = vor.u32 %v10527_v50, %v8624_v61 }
 0x304   :  { %5553 = vmatpush.bf16.msra.mxu2 %v8499_v4  ;;  %5528 = vmatpush.bf16.msra.mxu0 %v7955_v56  ;;  %v7824_v4 = vld [vmem:[#allocation2 + $0xa8] sm:$0xf0] }
 0x305   :  { %5522 = vmatmul.bf16.vlgmr.msrb.gmra.mxu3 %v11285_v14  ;;  %v10391_v10 = vld [vmem:[#allocation2 + $0x28c] sm:$0xf]  ;;  %v7827_v56 = vor.u32 %v10327_v3, %v7824_v4 }
 0x306   :  { %5566 = vmatpush.bf16.msra.mxu3 %v8755_v15  ;;  %5541 = vmatpush.bf16.msra.mxu1 %v8211_v20  ;;  %v8080_v38 = vld [vmem:[#allocation2 + $0x2a8] sm:$0xf0]  ;;  %v11318_v20 = vadd.f32 %v5315_v5, %v5303_v16 }
 0x307   :  { %v10455_v15 = vld [vmem:[#allocation2 + $0x48c] sm:$0xf]  ;;  %v8083_v7 = vor.u32 %v10391_v10, %v8080_v38 }
 0x308   :  { %5554 = vmatpush.bf16.msra.mxu2 %v8467_v24  ;;  %5529 = vmatpush.bf16.msra.mxu0 %v7923_v33  ;;  %v8336_v2 = vld [vmem:[#allocation2 + $0x4a8] sm:$0xf0]  ;;  %v6047_v55 = vmax.f32 %v11318_v20, 0.0 }
 0x309   :  { %v10519_v17 = vld [vmem:[#allocation2 + $0x68c] sm:$0xf]  ;;  %v8339_v29 = vor.u32 %v10455_v15, %v8336_v2 }
 0x30a   :  { %5567 = vmatpush.bf16.msra.mxu3 %v8723_v42  ;;  %5542 = vmatpush.bf16.msra.mxu1 %v8179_v34  ;;  %v8592_v54 = vld [vmem:[#allocation2 + $0x6a8] sm:$0xf0] }
 0x30b   :  { %v10319_v24 = vld [vmem:[#allocation2 + $0x4c] sm:$0xf]  ;;  %v8595_v32 = vor.u32 %v10519_v17, %v8592_v54 }
 0x30c   :  { %5555 = vmatpush.bf16.msra.mxu2 %v8435_v35  ;;  %5530 = vmatpush.bf16.msra.mxu0 %v7891_v46  ;;  %v7792_v42 = vld [vmem:[#allocation2 + $0x68] sm:$0xf0]  ;;  %v5304_v46 = vpop.f32.mrf.mxu2 }
 0x30d   :  { %v10383_v30 = vld [vmem:[#allocation2 + $0x24c] sm:$0xf]  ;;  %v7795_v23 = vor.u32 %v10319_v24, %v7792_v42 }
 0x30e   :  { %5568 = vmatpush.bf16.msra.mxu3 %v8691_v37  ;;  %5543 = vmatpush.bf16.msra.mxu1 %v8147_v48  ;;  %v8048_v51 = vld [vmem:[#allocation2 + $0x268] sm:$0xf0] }
 0x30f   :  { %v10447_v33 = vld [vmem:[#allocation2 + $0x44c] sm:$0xf]  ;;  %v8051_v39 = vor.u32 %v10383_v30, %v8048_v51 }
 0x310   :  { %5556 = vmatpush.bf16.msra.mxu2 %v8403_v49  ;;  %5531 = vmatpush.bf16.msra.mxu0 %v7859_v63  ;;  %v8304_v34 = vld [vmem:[#allocation2 + $0x468] sm:$0xf0] }
 0x311   :  { %v10511_v35 = vld [vmem:[#allocation2 + $0x64c] sm:$0xf]  ;;  %v8307_v40 = vor.u32 %v10447_v33, %v8304_v34 }
 0x312   :  { %5569 = vmatpush.bf16.msra.mxu3 %v8659_v57  ;;  %5544 = vmatpush.bf16.msra.mxu1 %v8115_v0  ;;  %v8560_v11 = vld [vmem:[#allocation2 + $0x668] sm:$0xf0] }
 0x313   :  { %v10311_v36 = vld [vmem:[#allocation2 + $0xc] sm:$0xf]  ;;  %v8563_v47 = vor.u32 %v10511_v35, %v8560_v11 }
 0x314   :  { %5557 = vmatpush.bf16.msra.mxu2 %v8371_v1  ;;  %5532 = vmatpush.bf16.msra.mxu0 %v7827_v56  ;;  %v7760_v37 = vld [vmem:[#allocation2 + $0x28] sm:$0xf0] }
 0x315   :  { %v10375_v43 = vld [vmem:[#allocation2 + $0x20c] sm:$0xf]  ;;  %v7763_v57 = vor.u32 %v10311_v36, %v7760_v37 }
 0x316   :  { %5570 = vmatpush.bf16.msra.mxu3 %v8627_v21  ;;  %5545 = vmatpush.bf16.msra.mxu1 %v8083_v7  ;;  %v8016_v44 = vld [vmem:[#allocation2 + $0x228] sm:$0xf0] }
 0x317   :  { %v10439_v45 = vld [vmem:[#allocation2 + $0x40c] sm:$0xf]  ;;  %v8019_v50 = vor.u32 %v10375_v43, %v8016_v44 }
 0x318   :  { %5558 = vmatpush.bf16.msra.mxu2 %v8339_v29  ;;  %v8272_v48 = vld [vmem:[#allocation2 + $0x428] sm:$0xf0]  ;;  %5533 = vmatpush.bf16.msra.mxu0 %v7795_v23 }
 0x319   :  { %v10503_v49 = vld [vmem:[#allocation2 + $0x60c] sm:$0xf]  ;;  %v8275_v61 = vor.u32 %v10439_v45, %v8272_v48 }
 0x31a   :  { %5571 = vmatpush.bf16.msra.mxu3 %v8595_v32  ;;  %v8528_v52 = vld [vmem:[#allocation2 + $0x628] sm:$0xf0]  ;;  %5546 = vmatpush.bf16.msra.mxu1 %v8051_v39  ;;  %v2640_v39 = vperm.slane %v11305_v25, 1 }
 0x31b   :  { %v10623_v9 = vld [vmem:[#allocation2 + $0x9cc] sm:$0xf]  ;;  %v8531_v0 = vor.u32 %v10503_v49, %v8528_v52  ;;  %v5328_v49 = vpop.f32.mrf.mxu0 }
 0x31c   :  { %v9008_v18 = vld [vmem:[#allocation2 + $0x9e8] sm:$0xf0]  ;;  %5559 = vmatpush.bf16.msra.mxu2 %v8307_v40  ;;  %5534 = vmatpush.bf16.msra.mxu0 %v7763_v57  ;;  %v5329_v57 = vadd.f32 %v5328_v49, %v2640_v39 }
 0x31d   :  { %v10687_v53 = vld [vmem:[#allocation2 + $0xbcc] sm:$0xf]  ;;  %v9011_v1 = vor.u32 %v10623_v9, %v9008_v18 }
 0x31e   :  { %v9264_v58 = vld [vmem:[#allocation2 + $0xbe8] sm:$0xf0]  ;;  %5572 = vmatpush.bf16.msra.mxu3 %v8563_v47  ;;  %5547 = vmatpush.bf16.msra.mxu1 %v8019_v50 }
 0x31f   :  { %v10751_v59 = vld [vmem:[#allocation2 + $0xdcc] sm:$0xf]  ;;  %v9267_v3 = vor.u32 %v10687_v53, %v9264_v58  ;;  %5535 = vmatmul.bf16.vlgmr.msra.gmra.mxu0 %v11256_v26  ;;  %v5341_v58 = vpop.f32.mrf.mxu1 }
 0x320   :  { %v9520_v60 = vld [vmem:[#allocation2 + $0xde8] sm:$0xf0]  ;;  %5560 = vmatpush.bf16.msra.mxu2 %v8275_v61  ;;  %5579 = vmatpush.bf16.msrb.mxu0 %v9011_v1 }
 0x321   :  { %v10815_v62 = vld [vmem:[#allocation2 + $0xfcc] sm:$0xf]  ;;  %v9523_v4 = vor.u32 %v10751_v59, %v9520_v60  ;;  %5548 = vmatmul.bf16.vlgmr.msra.gmra.mxu1 %v11266_v22 }
 0x322   :  { %v9776_v63 = vld [vmem:[#allocation2 + $0xfe8] sm:$0xf0]  ;;  %5573 = vmatpush.bf16.msra.mxu3 %v8531_v0  ;;  %5592 = vmatpush.bf16.msrb.mxu1 %v9267_v3 }
 0x323   :  { %v10615_v10 = vld [vmem:[#allocation2 + $0x98c] sm:$0xf]  ;;  %v9779_v38 = vor.u32 %v10815_v62, %v9776_v63  ;;  %5561 = vmatmul.bf16.vlgmr.msra.gmra.mxu2 %v11251_v19  ;;  %v5342_v63 = vadd.f32 %v5341_v58, %v5329_v57  ;;  %v10372_v57 = vld [vmem:[#allocation2 + $0x1ec] sm:$0xf0] }
 0x324   :  { %v8976_v12 = vld [vmem:[#allocation2 + $0x9a8] sm:$0xf0]  ;;  %5605 = vmatpush.bf16.msrb.mxu2 %v9523_v4  ;;  %v8246_v58 = vld [vmem:[#allocation2 + $0x3d0] sm:$0xf] }
 0x325   :  { %v10679_v21 = vld [vmem:[#allocation2 + $0xb8c] sm:$0xf]  ;;  %v8979_v54 = vor.u32 %v10615_v10, %v8976_v12  ;;  %5574 = vmatmul.bf16.vlgmr.msra.gmra.mxu3 %v11261_v28 }
 0x326   :  { %v9232_v15 = vld [vmem:[#allocation2 + $0xba8] sm:$0xf0]  ;;  %5618 = vmatpush.bf16.msrb.mxu3 %v9779_v38 }
 0x327   :  { %v10743_v2 = vld [vmem:[#allocation2 + $0xd8c] sm:$0xf]  ;;  %v9235_v56 = vor.u32 %v10679_v21, %v9232_v15  ;;  %5580 = vmatpush.bf16.msrb.mxu0 %v8979_v54  ;;  %v5354_v21 = vpop.f32.mrf.mxu2 }
 0x328   :  { %v9488_v16 = vld [vmem:[#allocation2 + $0xda8] sm:$0xf0] }
 0x329   :  { %v10807_v5 = vld [vmem:[#allocation2 + $0xf8c] sm:$0xf]  ;;  %v9491_v24 = vor.u32 %v10743_v2, %v9488_v16  ;;  %5593 = vmatpush.bf16.msrb.mxu1 %v9235_v56 }
 0x32a   :  { %v9744_v17 = vld [vmem:[#allocation2 + $0xfa8] sm:$0xf0] }
 0x32b   :  { %v10607_v27 = vld [vmem:[#allocation2 + $0x94c] sm:$0xf]  ;;  %v9747_v42 = vor.u32 %v10807_v5, %v9744_v17  ;;  %5606 = vmatpush.bf16.msrb.mxu2 %v9491_v24  ;;  %v5355_v5 = vadd.f32 %v5354_v21, %v5342_v63  ;;  %v5367_v17 = vpop.f32.mrf.mxu3  ;;  %v8758_v63 = vld [vmem:[#allocation2 + $0x7d0] sm:$0xf] }
 0x32c   :  { %v8944_v7 = vld [vmem:[#allocation2 + $0x968] sm:$0xf0]  ;;  %v10364_v21 = vld [vmem:[#allocation2 + $0x1ac] sm:$0xf0] }
 0x32d   :  { %v10671_v29 = vld [vmem:[#allocation2 + $0xb4c] sm:$0xf]  ;;  %v8947_v34 = vor.u32 %v10607_v27, %v8944_v7  ;;  %5619 = vmatpush.bf16.msrb.mxu3 %v9747_v42  ;;  %v11326_v27 = vadd.f32 %v5367_v17, %v5355_v5  ;;  %v5330_v7 = vpop.f32.mrf.mxu0  ;;  %v10492_v5 = vld [vmem:[#allocation2 + $0x5ac] sm:$0xf0] }
 0x32e   :  { %v9200_v30 = vld [vmem:[#allocation2 + $0xb68] sm:$0xf0]  ;;  %v8726_v17 = vld [vmem:[#allocation2 + $0x790] sm:$0xf] }
 0x32f   :  { %v10735_v51 = vld [vmem:[#allocation2 + $0xd4c] sm:$0xf]  ;;  %v9203_v11 = vor.u32 %v10671_v29, %v9200_v30  ;;  %5581 = vmatpush.bf16.msrb.mxu0 %v8947_v34 }
 0x330   :  { %v9456_v31 = vld [vmem:[#allocation2 + $0xd68] sm:$0xf0] }
 0x331   :  { %v10799_v32 = vld [vmem:[#allocation2 + $0xf4c] sm:$0xf]  ;;  %v9459_v23 = vor.u32 %v10735_v51, %v9456_v31  ;;  %5594 = vmatpush.bf16.msrb.mxu1 %v9203_v11 }
 0x332   :  { %v9712_v33 = vld [vmem:[#allocation2 + $0xf68] sm:$0xf0] }
 0x333   :  { %v10599_v35 = vld [vmem:[#allocation2 + $0x90c] sm:$0xf]  ;;  %v9715_v40 = vor.u32 %v10799_v32, %v9712_v33  ;;  %5607 = vmatpush.bf16.msrb.mxu2 %v9459_v23  ;;  %v5343_v32 = vpop.f32.mrf.mxu1 }
 0x334   :  { %v8912_v36 = vld [vmem:[#allocation2 + $0x928] sm:$0xf0]  ;;  %v8438_v32 = vld [vmem:[#allocation2 + $0x550] sm:$0xf] }
 0x335   :  { %v10663_v37 = vld [vmem:[#allocation2 + $0xb0c] sm:$0xf]  ;;  %v8915_v48 = vor.u32 %v10599_v35, %v8912_v36  ;;  %5620 = vmatpush.bf16.msrb.mxu3 %v9715_v40 }
 0x336   :  { %v9168_v43 = vld [vmem:[#allocation2 + $0xb28] sm:$0xf0] }
 0x337   :  { %v10727_v44 = vld [vmem:[#allocation2 + $0xd0c] sm:$0xf]  ;;  %v9171_v52 = vor.u32 %v10663_v37, %v9168_v43  ;;  %5582 = vmatpush.bf16.msrb.mxu0 %v8915_v48  ;;  %v5356_v48 = vpop.f32.mrf.mxu2 }
 0x338   :  { %v9424_v45 = vld [vmem:[#allocation2 + $0xd28] sm:$0xf0]  ;;  %v10540_v48 = vld [vmem:[#allocation2 + $0x72c] sm:$0xf0] }
 0x339   :  { %v10791_v46 = vld [vmem:[#allocation2 + $0xf0c] sm:$0xf]  ;;  %v9427_v8 = vor.u32 %v10727_v44, %v9424_v45  ;;  %5595 = vmatpush.bf16.msrb.mxu1 %v9171_v52 }
 0x33a   :  { %v9680_v47 = vld [vmem:[#allocation2 + $0xf28] sm:$0xf0] }
 0x33b   :  { %v10591_v9 = vld [vmem:[#allocation2 + $0x8cc] sm:$0xf]  ;;  %v9683_v25 = vor.u32 %v10791_v46, %v9680_v47  ;;  %5608 = vmatpush.bf16.msrb.mxu2 %v9427_v8 }
 0x33c   :  { %v8880_v18 = vld [vmem:[#allocation2 + $0x8e8] sm:$0xf0] }
 0x33d   :  { %v10655_v53 = vld [vmem:[#allocation2 + $0xacc] sm:$0xf]  ;;  %v8883_v0 = vor.u32 %v10591_v9, %v8880_v18  ;;  %5621 = vmatpush.bf16.msrb.mxu3 %v9683_v25  ;;  %v5369_v18 = vpop.f32.mrf.mxu3 }
 0x33e   :  { %v9136_v59 = vld [vmem:[#allocation2 + $0xae8] sm:$0xf0]  ;;  %v7862_v18 = vld [vmem:[#allocation2 + $0xd0] sm:$0xf] }
 0x33f   :  { %v10719_v60 = vld [vmem:[#allocation2 + $0xccc] sm:$0xf]  ;;  %v9139_v1 = vor.u32 %v10655_v53, %v9136_v59  ;;  %5583 = vmatpush.bf16.msrb.mxu0 %v8883_v0  ;;  %v7990_v53 = vld [vmem:[#allocation2 + $0x1d0] sm:$0xf] }
 0x340   :  { %v9392_v50 = vld [vmem:[#allocation2 + $0xce8] sm:$0xf0]  ;;  %v10436_v59 = vld [vmem:[#allocation2 + $0x3ec] sm:$0xf0] }
 0x341   :  { %v10783_v61 = vld [vmem:[#allocation2 + $0xecc] sm:$0xf]  ;;  %v9395_v3 = vor.u32 %v10719_v60, %v9392_v50  ;;  %5596 = vmatpush.bf16.msrb.mxu1 %v9139_v1  ;;  %v8502_v60 = vld [vmem:[#allocation2 + $0x5d0] sm:$0xf] }
 0x342   :  { %v9648_v62 = vld [vmem:[#allocation2 + $0xee8] sm:$0xf0]  ;;  %v10500_v50 = vld [vmem:[#allocation2 + $0x5ec] sm:$0xf0] }
 0x343   :  { %v10583_v4 = vld [vmem:[#allocation2 + $0x88c] sm:$0xf]  ;;  %v9651_v38 = vor.u32 %v10783_v61, %v9648_v62  ;;  %5609 = vmatpush.bf16.msrb.mxu2 %v9395_v3  ;;  %v10564_v0 = vld [vmem:[#allocation2 + $0x7ec] sm:$0xf0]  ;;  %v7991_v3 = vor.u32 %v10372_v57, %v7990_v53 }
 0x344   :  { %v8848_v10 = vld [vmem:[#allocation2 + $0x8a8] sm:$0xf0]  ;;  %v10340_v53 = vld [vmem:[#allocation2 + $0xec] sm:$0xf0] }
 0x345   :  { %v10647_v12 = vld [vmem:[#allocation2 + $0xa8c] sm:$0xf]  ;;  %v8851_v24 = vor.u32 %v10583_v4, %v8848_v10  ;;  %5622 = vmatpush.bf16.msrb.mxu3 %v9651_v38  ;;  %v8247_v4 = vor.u32 %v10436_v59, %v8246_v58  ;;  %v8503_v10 = vor.u32 %v10500_v50, %v8502_v60  ;;  %v8214_v38 = vld [vmem:[#allocation2 + $0x390] sm:$0xf] }
 0x346   :  { %v9104_v15 = vld [vmem:[#allocation2 + $0xaa8] sm:$0xf0]  ;;  %v8118_v57 = vld [vmem:[#allocation2 + $0x2d0] sm:$0xf] }
 0x347   :  { %v10711_v2 = vld [vmem:[#allocation2 + $0xc8c] sm:$0xf]  ;;  %v9107_v29 = vor.u32 %v10647_v12, %v9104_v15  ;;  %5584 = vmatpush.bf16.msrb.mxu0 %v8851_v24  ;;  %v7958_v12 = vld [vmem:[#allocation2 + $0x190] sm:$0xf]  ;;  %v8759_v15 = vor.u32 %v10564_v0, %v8758_v63 }
 0x348   :  { %v9360_v16 = vld [vmem:[#allocation2 + $0xca8] sm:$0xf0]  ;;  %v10404_v60 = vld [vmem:[#allocation2 + $0x2ec] sm:$0xf0] }
 0x349   :  { %v10775_v54 = vld [vmem:[#allocation2 + $0xe8c] sm:$0xf]  ;;  %v9363_v42 = vor.u32 %v10711_v2, %v9360_v16  ;;  %5597 = vmatpush.bf16.msrb.mxu1 %v9107_v29  ;;  %v10428_v2 = vld [vmem:[#allocation2 + $0x3ac] sm:$0xf0] }
 0x34a   :  { %v9616_v56 = vld [vmem:[#allocation2 + $0xea8] sm:$0xf0]  ;;  %v8470_v16 = vld [vmem:[#allocation2 + $0x590] sm:$0xf]  ;;  %v8215_v24 = vor.u32 %v10428_v2, %v8214_v38  ;;  %v5406_v38 = vpop.f32.mrf.mxu2 }
 0x34b   :  { %v10575_v30 = vld [vmem:[#allocation2 + $0x84c] sm:$0xf]  ;;  %v9619_v33 = vor.u32 %v10775_v54, %v9616_v56  ;;  %5610 = vmatpush.bf16.msrb.mxu2 %v9363_v42  ;;  %v10556_v54 = vld [vmem:[#allocation2 + $0x7ac] sm:$0xf0]  ;;  %v7959_v56 = vor.u32 %v10364_v21, %v7958_v12  ;;  %v8471_v7 = vor.u32 %v10492_v5, %v8470_v16 }
 0x34c   :  { %v8816_v51 = vld [vmem:[#allocation2 + $0x868] sm:$0xf0]  ;;  %v7926_v29 = vld [vmem:[#allocation2 + $0x150] sm:$0xf] }
 0x34d   :  { %v10639_v31 = vld [vmem:[#allocation2 + $0xa4c] sm:$0xf]  ;;  %v8819_v37 = vor.u32 %v10575_v30, %v8816_v51  ;;  %5623 = vmatpush.bf16.msrb.mxu3 %v9619_v33  ;;  %v10356_v42 = vld [vmem:[#allocation2 + $0x16c] sm:$0xf0]  ;;  %v8727_v51 = vor.u32 %v10556_v54, %v8726_v17  ;;  %v5419_v17 = vpop.f32.mrf.mxu3 }
 0x34e   :  { %v9072_v34 = vld [vmem:[#allocation2 + $0xa68] sm:$0xf0]  ;;  %v8182_v30 = vld [vmem:[#allocation2 + $0x350] sm:$0xf] }
 0x34f   :  { %v10703_v35 = vld [vmem:[#allocation2 + $0xc4c] sm:$0xf]  ;;  %v9075_v43 = vor.u32 %v10639_v31, %v9072_v34  ;;  %5585 = vmatpush.bf16.msrb.mxu0 %v8819_v37  ;;  %v10420_v31 = vld [vmem:[#allocation2 + $0x36c] sm:$0xf0] }
 0x350   :  { %v9328_v11 = vld [vmem:[#allocation2 + $0xc68] sm:$0xf0]  ;;  %v10484_v33 = vld [vmem:[#allocation2 + $0x56c] sm:$0xf0] }
 0x351   :  { %v10767_v23 = vld [vmem:[#allocation2 + $0xe4c] sm:$0xf]  ;;  %v9331_v44 = vor.u32 %v10703_v35, %v9328_v11  ;;  %5598 = vmatpush.bf16.msrb.mxu1 %v9075_v43  ;;  %v8694_v34 = vld [vmem:[#allocation2 + $0x750] sm:$0xf]  ;;  %v7927_v11 = vor.u32 %v10356_v42, %v7926_v29 }
 0x352   :  { %v9584_v36 = vld [vmem:[#allocation2 + $0xe68] sm:$0xf0]  ;;  %v10548_v35 = vld [vmem:[#allocation2 + $0x76c] sm:$0xf0] }
 0x353   :  { %v10567_v39 = vld [vmem:[#allocation2 + $0x80c] sm:$0xf]  ;;  %v9587_v49 = vor.u32 %v10767_v23, %v9584_v36  ;;  %5611 = vmatpush.bf16.msrb.mxu2 %v9331_v44  ;;  %v8183_v23 = vor.u32 %v10420_v31, %v8182_v30  ;;  %v8439_v36 = vor.u32 %v10484_v33, %v8438_v32  ;;  %v7894_v37 = vld [vmem:[#allocation2 + $0x110] sm:$0xf]  ;;  %v8695_v43 = vor.u32 %v10548_v35, %v8694_v34 }
 0x354   :  { %v8784_v40 = vld [vmem:[#allocation2 + $0x828] sm:$0xf0]  ;;  %v10412_v44 = vld [vmem:[#allocation2 + $0x32c] sm:$0xf0] }
 0x355   :  { %v10631_v45 = vld [vmem:[#allocation2 + $0xa0c] sm:$0xf]  ;;  %v8787_v25 = vor.u32 %v10567_v39, %v8784_v40  ;;  %5624 = vmatpush.bf16.msrb.mxu3 %v9587_v49  ;;  %v10348_v39 = vld [vmem:[#allocation2 + $0x12c] sm:$0xf0] }
 0x356   :  { %v9040_v46 = vld [vmem:[#allocation2 + $0xa28] sm:$0xf0]  ;;  %v8150_v40 = vld [vmem:[#allocation2 + $0x310] sm:$0xf]  ;;  %v7895_v49 = vor.u32 %v10348_v39, %v7894_v37 }
 0x357   :  { %v10695_v47 = vld [vmem:[#allocation2 + $0xc0c] sm:$0xf]  ;;  %v9043_v61 = vor.u32 %v10631_v45, %v9040_v46  ;;  %5586 = vmatpush.bf16.msrb.mxu0 %v8787_v25  ;;  %v8406_v45 = vld [vmem:[#allocation2 + $0x510] sm:$0xf]  ;;  %v5393_v25 = vpop.f32.mrf.mxu1 }
 0x358   :  { %v9296_v52 = vld [vmem:[#allocation2 + $0xc28] sm:$0xf0]  ;;  %v10476_v46 = vld [vmem:[#allocation2 + $0x52c] sm:$0xf0] }
 0x359   :  { %v10759_v8 = vld [vmem:[#allocation2 + $0xe0c] sm:$0xf]  ;;  %v9299_v62 = vor.u32 %v10695_v47, %v9296_v52  ;;  %5599 = vmatpush.bf16.msrb.mxu1 %v9043_v61  ;;  %v8662_v47 = vld [vmem:[#allocation2 + $0x710] sm:$0xf]  ;;  %v5380_v52 = vpop.f32.mrf.mxu0 }
 0x35a   :  { %v9552_v9 = vld [vmem:[#allocation2 + $0xe28] sm:$0xf0]  ;;  %5587 = vmatmul.bf16.vlgmr.msrb.gmra.mxu0 %v11280_v13  ;;  %v5381_v58 = vadd.f32 %v5380_v52, %v11326_v27  ;;  %v8663_v59 = vor.u32 %v10540_v48, %v8662_v47  ;;  %v8374_v50 = vld [vmem:[#allocation2 + $0x4d0] sm:$0xf]  ;;  %v5408_v52 = vpop.f32.mrf.mxu2 }
 0x35b   :  { %v9555_v1 = vor.u32 %v10759_v8, %v9552_v9  ;;  %5612 = vmatpush.bf16.msrb.mxu2 %v9299_v62  ;;  %5631 = vmatpush.bf16.msra.mxu0 %v7991_v3  ;;  %v8151_v8 = vor.u32 %v10412_v44, %v8150_v40  ;;  %v8407_v9 = vor.u32 %v10476_v46, %v8406_v45  ;;  %v10468_v61 = vld [vmem:[#allocation2 + $0x4ec] sm:$0xf0] }
 0x35c   :  { %5600 = vmatmul.bf16.vlgmr.msrb.gmra.mxu1 %v11290_v41  ;;  %v8630_v62 = vld [vmem:[#allocation2 + $0x6d0] sm:$0xf]  ;;  %v5394_v0 = vadd.f32 %v5393_v25, %v5381_v58  ;;  %v8119_v3 = vor.u32 %v10404_v60, %v8118_v57  ;;  %v5421_v57 = vpop.f32.mrf.mxu3 }
 0x35d   :  { %5625 = vmatpush.bf16.msrb.mxu3 %v9555_v1  ;;  %5644 = vmatpush.bf16.msra.mxu1 %v8247_v4  ;;  %v10532_v63 = vld [vmem:[#allocation2 + $0x6ec] sm:$0xf0]  ;;  %v7863_v1 = vor.u32 %v10340_v53, %v7862_v18  ;;  %v8375_v4 = vor.u32 %v10468_v61, %v8374_v50 }
 0x35e   :  { %5613 = vmatmul.bf16.vlgmr.msrb.gmra.mxu2 %v11275_v6  ;;  %v10332_v12 = vld [vmem:[#allocation2 + $0xac] sm:$0xf0]  ;;  %v8631_v27 = vor.u32 %v10532_v63, %v8630_v62  ;;  %v5407_v5 = vadd.f32 %v5406_v38, %v5394_v0 }
 0x35f   :  { %5657 = vmatpush.bf16.msra.mxu2 %v8503_v10  ;;  %5632 = vmatpush.bf16.msra.mxu0 %v7959_v56  ;;  %v7830_v10 = vld [vmem:[#allocation2 + $0x90] sm:$0xf]  ;;  %v5395_v34 = vpop.f32.mrf.mxu1 }
 0x360   :  { %5626 = vmatmul.bf16.vlgmr.msrb.gmra.mxu3 %v11285_v14  ;;  %v8086_v21 = vld [vmem:[#allocation2 + $0x290] sm:$0xf] }
 0x361   :  { %5670 = vmatpush.bf16.msra.mxu3 %v8759_v15  ;;  %5645 = vmatpush.bf16.msra.mxu1 %v8215_v24  ;;  %v10396_v15 = vld [vmem:[#allocation2 + $0x2ac] sm:$0xf0]  ;;  %v7831_v24 = vor.u32 %v10332_v12, %v7830_v10  ;;  %v5382_v42 = vpop.f32.mrf.mxu0 }
 0x362   :  { %v8342_v2 = vld [vmem:[#allocation2 + $0x490] sm:$0xf]  ;;  %v8087_v30 = vor.u32 %v10396_v15, %v8086_v21 }
 0x363   :  { %5658 = vmatpush.bf16.msra.mxu2 %v8471_v7  ;;  %5633 = vmatpush.bf16.msra.mxu0 %v7927_v11  ;;  %v10460_v16 = vld [vmem:[#allocation2 + $0x4ac] sm:$0xf0]  ;;  %v11333_v7 = vadd.f32 %v5419_v17, %v5407_v5 }
 0x364   :  { %v8598_v54 = vld [vmem:[#allocation2 + $0x690] sm:$0xf] }
 0x365   :  { %5671 = vmatpush.bf16.msra.mxu3 %v8727_v51  ;;  %5646 = vmatpush.bf16.msra.mxu1 %v8183_v23  ;;  %v10524_v56 = vld [vmem:[#allocation2 + $0x6ac] sm:$0xf0]  ;;  %v8343_v51 = vor.u32 %v10460_v16, %v8342_v2  ;;  %v6048_v11 = vmax.f32 %v11333_v7, 0.0 }
 0x366   :  { %v7798_v29 = vld [vmem:[#allocation2 + $0x50] sm:$0xf]  ;;  %v8599_v35 = vor.u32 %v10524_v56, %v8598_v54 }
 0x367   :  { %5659 = vmatpush.bf16.msra.mxu2 %v8439_v36  ;;  %5634 = vmatpush.bf16.msra.mxu0 %v7895_v49  ;;  %v10324_v31 = vld [vmem:[#allocation2 + $0x6c] sm:$0xf0] }
 0x368   :  { %v8054_v32 = vld [vmem:[#allocation2 + $0x250] sm:$0xf]  ;;  %v7799_v40 = vor.u32 %v10324_v31, %v7798_v29 }
 0x369   :  { %5672 = vmatpush.bf16.msra.mxu3 %v8695_v43  ;;  %5647 = vmatpush.bf16.msra.mxu1 %v8151_v8  ;;  %v10388_v33 = vld [vmem:[#allocation2 + $0x26c] sm:$0xf0]  ;;  %v5432_v57 = vpop.f32.mrf.mxu0 }
 0x36a   :  { %v8310_v23 = vld [vmem:[#allocation2 + $0x450] sm:$0xf]  ;;  %v8055_v45 = vor.u32 %v10388_v33, %v8054_v32 }
 0x36b   :  { %5660 = vmatpush.bf16.msra.mxu2 %v8407_v9  ;;  %5635 = vmatpush.bf16.msra.mxu0 %v7863_v1  ;;  %v10452_v36 = vld [vmem:[#allocation2 + $0x46c] sm:$0xf0] }
 0x36c   :  { %v8566_v37 = vld [vmem:[#allocation2 + $0x650] sm:$0xf]  ;;  %v8311_v46 = vor.u32 %v10452_v36, %v8310_v23 }
 0x36d   :  { %5673 = vmatpush.bf16.msra.mxu3 %v8663_v59  ;;  %5648 = vmatpush.bf16.msra.mxu1 %v8119_v3  ;;  %v10516_v39 = vld [vmem:[#allocation2 + $0x66c] sm:$0xf0] }
 0x36e   :  { %v7766_v43 = vld [vmem:[#allocation2 + $0x10] sm:$0xf]  ;;  %v8567_v8 = vor.u32 %v10516_v39, %v8566_v37 }
 0x36f   :  { %5661 = vmatpush.bf16.msra.mxu2 %v8375_v4  ;;  %5636 = vmatpush.bf16.msra.mxu0 %v7831_v24  ;;  %v10316_v44 = vld [vmem:[#allocation2 + $0x2c] sm:$0xf0] }
 0x370   :  { %v8022_v47 = vld [vmem:[#allocation2 + $0x210] sm:$0xf]  ;;  %v7767_v60 = vor.u32 %v10316_v44, %v7766_v43 }
 0x371   :  { %5674 = vmatpush.bf16.msra.mxu3 %v8631_v27  ;;  %5649 = vmatpush.bf16.msra.mxu1 %v8087_v30  ;;  %v10380_v48 = vld [vmem:[#allocation2 + $0x22c] sm:$0xf0] }
 0x372   :  { %v8278_v49 = vld [vmem:[#allocation2 + $0x410] sm:$0xf]  ;;  %v8023_v63 = vor.u32 %v10380_v48, %v8022_v47 }
 0x373   :  { %5662 = vmatpush.bf16.msra.mxu2 %v8343_v51  ;;  %v10444_v9 = vld [vmem:[#allocation2 + $0x42c] sm:$0xf0]  ;;  %5637 = vmatpush.bf16.msra.mxu0 %v7799_v40 }
 0x374   :  { %v8534_v18 = vld [vmem:[#allocation2 + $0x610] sm:$0xf]  ;;  %v8279_v0 = vor.u32 %v10444_v9, %v8278_v49 }
 0x375   :  { %5675 = vmatpush.bf16.msra.mxu3 %v8599_v35  ;;  %v10508_v53 = vld [vmem:[#allocation2 + $0x62c] sm:$0xf0]  ;;  %5650 = vmatpush.bf16.msra.mxu1 %v8055_v45 }
 0x376   :  { %v9014_v58 = vld [vmem:[#allocation2 + $0x9d0] sm:$0xf]  ;;  %v8535_v4 = vor.u32 %v10508_v53, %v8534_v18 }
 0x377   :  { %v10628_v25 = vld [vmem:[#allocation2 + $0x9ec] sm:$0xf0]  ;;  %5663 = vmatpush.bf16.msra.mxu2 %v8311_v46  ;;  %5638 = vmatpush.bf16.msra.mxu0 %v7767_v60  ;;  %v11340_v46 = vld [vmem:[#allocation11] sm:$0xff] }
 0x378   :  { %v9270_v59 = vld [vmem:[#allocation2 + $0xbd0] sm:$0xf]  ;;  %v9015_v10 = vor.u32 %v10628_v25, %v9014_v58  ;;  %v2641_v47 = vperm.slane %v11340_v46, 2 }
 0x379   :  { %v10692_v50 = vld [vmem:[#allocation2 + $0xbec] sm:$0xf0]  ;;  %5676 = vmatpush.bf16.msra.mxu3 %v8567_v8  ;;  %5651 = vmatpush.bf16.msra.mxu1 %v8023_v63 }
 0x37a   :  { %v9526_v61 = vld [vmem:[#allocation2 + $0xdd0] sm:$0xf]  ;;  %v9271_v12 = vor.u32 %v10692_v50, %v9270_v59  ;;  %5639 = vmatmul.bf16.vlgmr.msra.gmra.mxu0 %v11256_v26 }
 0x37b   :  { %v10756_v62 = vld [vmem:[#allocation2 + $0xdec] sm:$0xf0]  ;;  %5664 = vmatpush.bf16.msra.mxu2 %v8279_v0  ;;  %5683 = vmatpush.bf16.msrb.mxu0 %v9015_v10 }
 0x37c   :  { %v9782_v1 = vld [vmem:[#allocation2 + $0xfd0] sm:$0xf]  ;;  %v9527_v21 = vor.u32 %v10756_v62, %v9526_v61  ;;  %5652 = vmatmul.bf16.vlgmr.msra.gmra.mxu1 %v11266_v22  ;;  %v5433_v61 = vadd.f32 %v5432_v57, %v2641_v47  ;;  %v5445_v62 = vpop.f32.mrf.mxu1 }
 0x37d   :  { %v10820_v3 = vld [vmem:[#allocation2 + $0xfec] sm:$0xf0]  ;;  %5677 = vmatpush.bf16.msra.mxu3 %v8535_v4  ;;  %5696 = vmatpush.bf16.msrb.mxu1 %v9271_v12 }
 0x37e   :  { %v8982_v38 = vld [vmem:[#allocation2 + $0x990] sm:$0xf]  ;;  %v9783_v2 = vor.u32 %v10820_v3, %v9782_v1  ;;  %5665 = vmatmul.bf16.vlgmr.msra.gmra.mxu2 %v11251_v19  ;;  %v5446_v12 = vadd.f32 %v5445_v62, %v5433_v61 }
 0x37f   :  { %v10620_v27 = vld [vmem:[#allocation2 + $0x9ac] sm:$0xf0]  ;;  %5709 = vmatpush.bf16.msrb.mxu2 %v9527_v21 }
 0x380   :  { %v9238_v15 = vld [vmem:[#allocation2 + $0xb90] sm:$0xf]  ;;  %v8983_v24 = vor.u32 %v10620_v27, %v8982_v38  ;;  %5678 = vmatmul.bf16.vlgmr.msra.gmra.mxu3 %v11261_v28 }
 0x381   :  { %v10684_v16 = vld [vmem:[#allocation2 + $0xbac] sm:$0xf0]  ;;  %5722 = vmatpush.bf16.msrb.mxu3 %v9783_v2 }
 0x382   :  { %v9494_v5 = vld [vmem:[#allocation2 + $0xd90] sm:$0xf]  ;;  %v9239_v29 = vor.u32 %v10684_v16, %v9238_v15  ;;  %5684 = vmatpush.bf16.msrb.mxu0 %v8983_v24 }
 0x383   :  { %v10748_v17 = vld [vmem:[#allocation2 + $0xdac] sm:$0xf0] }
 0x384   :  { %v9750_v54 = vld [vmem:[#allocation2 + $0xf90] sm:$0xf]  ;;  %v9495_v42 = vor.u32 %v10748_v17, %v9494_v5  ;;  %5697 = vmatpush.bf16.msrb.mxu1 %v9239_v29  ;;  %v5458_v5 = vpop.f32.mrf.mxu2 }
 0x385   :  { %v10812_v56 = vld [vmem:[#allocation2 + $0xfac] sm:$0xf0]  ;;  %v5459_v29 = vadd.f32 %v5458_v5, %v5446_v12  ;;  %v8504_v12 = vld [vmem:[#allocation2 + $0x5f0] sm:$0xf0] }
 0x386   :  { %v8950_v30 = vld [vmem:[#allocation2 + $0x950] sm:$0xf]  ;;  %v9751_v32 = vor.u32 %v10812_v56, %v9750_v54  ;;  %5710 = vmatpush.bf16.msrb.mxu2 %v9495_v42  ;;  %v5471_v42 = vpop.f32.mrf.mxu3 }
 0x387   :  { %v10612_v51 = vld [vmem:[#allocation2 + $0x96c] sm:$0xf0] }
 0x388   :  { %v9206_v31 = vld [vmem:[#allocation2 + $0xb50] sm:$0xf]  ;;  %v8951_v37 = vor.u32 %v10612_v51, %v8950_v30  ;;  %5723 = vmatpush.bf16.msrb.mxu3 %v9751_v32  ;;  %v11343_v32 = vadd.f32 %v5471_v42, %v5459_v29  ;;  %v8216_v42 = vld [vmem:[#allocation2 + $0x3b0] sm:$0xf0] }
 0x389   :  { %v10676_v33 = vld [vmem:[#allocation2 + $0xb6c] sm:$0xf0] }
 0x38a   :  { %v9462_v34 = vld [vmem:[#allocation2 + $0xd50] sm:$0xf]  ;;  %v9207_v40 = vor.u32 %v10676_v33, %v9206_v31  ;;  %5685 = vmatpush.bf16.msrb.mxu0 %v8951_v37  ;;  %v5434_v33 = vpop.f32.mrf.mxu0 }
 0x38b   :  { %v10740_v35 = vld [vmem:[#allocation2 + $0xd6c] sm:$0xf0]  ;;  %v8728_v33 = vld [vmem:[#allocation2 + $0x7b0] sm:$0xf0] }
 0x38c   :  { %v9718_v23 = vld [vmem:[#allocation2 + $0xf50] sm:$0xf]  ;;  %v9463_v43 = vor.u32 %v10740_v35, %v9462_v34  ;;  %5698 = vmatpush.bf16.msrb.mxu1 %v9207_v40 }
 0x38d   :  { %v10804_v36 = vld [vmem:[#allocation2 + $0xf6c] sm:$0xf0] }
 0x38e   :  { %v8918_v39 = vld [vmem:[#allocation2 + $0x910] sm:$0xf]  ;;  %v9719_v48 = vor.u32 %v10804_v36, %v9718_v23  ;;  %5711 = vmatpush.bf16.msrb.mxu2 %v9463_v43  ;;  %v5473_v62 = vpop.f32.mrf.mxu3 }
 0x38f   :  { %v10604_v44 = vld [vmem:[#allocation2 + $0x92c] sm:$0xf0] }
 0x390   :  { %v9174_v45 = vld [vmem:[#allocation2 + $0xb10] sm:$0xf]  ;;  %v8919_v53 = vor.u32 %v10604_v44, %v8918_v39  ;;  %5724 = vmatpush.bf16.msrb.mxu3 %v9719_v48  ;;  %v5447_v39 = vpop.f32.mrf.mxu1 }
 0x391   :  { %v10668_v49 = vld [vmem:[#allocation2 + $0xb2c] sm:$0xf0]  ;;  %v10416_v39 = vld [vmem:[#allocation2 + $0x354] sm:$0xf] }
 0x392   :  { %v9430_v52 = vld [vmem:[#allocation2 + $0xd10] sm:$0xf]  ;;  %v9175_v58 = vor.u32 %v10668_v49, %v9174_v45  ;;  %5686 = vmatpush.bf16.msrb.mxu0 %v8919_v53  ;;  %v5484_v62 = vpop.f32.mrf.mxu0 }
 0x393   :  { %v10732_v8 = vld [vmem:[#allocation2 + $0xd2c] sm:$0xf0] }
 0x394   :  { %v9686_v9 = vld [vmem:[#allocation2 + $0xf10] sm:$0xf]  ;;  %v9431_v25 = vor.u32 %v10732_v8, %v9430_v52  ;;  %5699 = vmatpush.bf16.msrb.mxu1 %v9175_v58 }
 0x395   :  { %v10796_v18 = vld [vmem:[#allocation2 + $0xf2c] sm:$0xf0] }
 0x396   :  { %v8886_v59 = vld [vmem:[#allocation2 + $0x8d0] sm:$0xf]  ;;  %v9687_v63 = vor.u32 %v10796_v18, %v9686_v9  ;;  %5712 = vmatpush.bf16.msrb.mxu2 %v9431_v25  ;;  %v5460_v25 = vpop.f32.mrf.mxu2 }
 0x397   :  { %v10596_v60 = vld [vmem:[#allocation2 + $0x8ec] sm:$0xf0]  ;;  %v10472_v25 = vld [vmem:[#allocation2 + $0x514] sm:$0xf] }
 0x398   :  { %v9142_v50 = vld [vmem:[#allocation2 + $0xad0] sm:$0xf]  ;;  %v8887_v21 = vor.u32 %v10596_v60, %v8886_v59  ;;  %5725 = vmatpush.bf16.msrb.mxu3 %v9687_v63  ;;  %v10368_v63 = vld [vmem:[#allocation2 + $0x1d4] sm:$0xf] }
 0x399   :  { %v10660_v0 = vld [vmem:[#allocation2 + $0xaec] sm:$0xf0] }
 0x39a   :  { %v9398_v1 = vld [vmem:[#allocation2 + $0xcd0] sm:$0xf]  ;;  %v9143_v38 = vor.u32 %v10660_v0, %v9142_v50  ;;  %5687 = vmatpush.bf16.msrb.mxu0 %v8887_v21  ;;  %v7992_v0 = vld [vmem:[#allocation2 + $0x1f0] sm:$0xf0] }
 0x39b   :  { %v10724_v3 = vld [vmem:[#allocation2 + $0xcec] sm:$0xf0] }
 0x39c   :  { %v9654_v4 = vld [vmem:[#allocation2 + $0xed0] sm:$0xf]  ;;  %v9399_v27 = vor.u32 %v10724_v3, %v9398_v1  ;;  %5700 = vmatpush.bf16.msrb.mxu1 %v9143_v38  ;;  %v10432_v1 = vld [vmem:[#allocation2 + $0x3d4] sm:$0xf] }
 0x39d   :  { %v10788_v10 = vld [vmem:[#allocation2 + $0xeec] sm:$0xf0] }
 0x39e   :  { %v8854_v15 = vld [vmem:[#allocation2 + $0x890] sm:$0xf]  ;;  %v9655_v17 = vor.u32 %v10788_v10, %v9654_v4  ;;  %5713 = vmatpush.bf16.msrb.mxu2 %v9399_v27  ;;  %v8248_v4 = vld [vmem:[#allocation2 + $0x3f0] sm:$0xf0] }
 0x39f   :  { %v10588_v2 = vld [vmem:[#allocation2 + $0x8ac] sm:$0xf0]  ;;  %v10496_v10 = vld [vmem:[#allocation2 + $0x5d4] sm:$0xf]  ;;  %v8251_v5 = vor.u32 %v10432_v1, %v8248_v4 }
 0x3a0   :  { %v9110_v16 = vld [vmem:[#allocation2 + $0xa90] sm:$0xf]  ;;  %v8855_v31 = vor.u32 %v10588_v2, %v8854_v15  ;;  %5726 = vmatpush.bf16.msrb.mxu3 %v9655_v17  ;;  %v10560_v27 = vld [vmem:[#allocation2 + $0x7d4] sm:$0xf]  ;;  %v8507_v17 = vor.u32 %v10496_v10, %v8504_v12  ;;  %v5485_v10 = vadd.f32 %v5484_v62, %v11343_v32  ;;  %v5497_v12 = vpop.f32.mrf.mxu1 }
 0x3a1   :  { %v10652_v54 = vld [vmem:[#allocation2 + $0xaac] sm:$0xf0]  ;;  %v8760_v15 = vld [vmem:[#allocation2 + $0x7f0] sm:$0xf0] }
 0x3a2   :  { %v9366_v56 = vld [vmem:[#allocation2 + $0xc90] sm:$0xf]  ;;  %v9111_v34 = vor.u32 %v10652_v54, %v9110_v16  ;;  %5688 = vmatpush.bf16.msrb.mxu0 %v8855_v31  ;;  %v7995_v16 = vor.u32 %v10368_v63, %v7992_v0  ;;  %v10360_v54 = vld [vmem:[#allocation2 + $0x194] sm:$0xf]  ;;  %v8763_v29 = vor.u32 %v10560_v27, %v8760_v15 }
 0x3a3   :  { %v10716_v24 = vld [vmem:[#allocation2 + $0xcac] sm:$0xf0]  ;;  %v10552_v31 = vld [vmem:[#allocation2 + $0x794] sm:$0xf] }
 0x3a4   :  { %v9622_v30 = vld [vmem:[#allocation2 + $0xe90] sm:$0xf]  ;;  %v9367_v35 = vor.u32 %v10716_v24, %v9366_v56  ;;  %5701 = vmatpush.bf16.msrb.mxu1 %v9111_v34  ;;  %v7960_v56 = vld [vmem:[#allocation2 + $0x1b0] sm:$0xf0] }
 0x3a5   :  { %v10780_v51 = vld [vmem:[#allocation2 + $0xeac] sm:$0xf0]  ;;  %v10424_v24 = vld [vmem:[#allocation2 + $0x394] sm:$0xf]  ;;  %v7963_v34 = vor.u32 %v10360_v54, %v7960_v56 }
 0x3a6   :  { %v8822_v23 = vld [vmem:[#allocation2 + $0x850] sm:$0xf]  ;;  %v9623_v40 = vor.u32 %v10780_v51, %v9622_v30  ;;  %5714 = vmatpush.bf16.msrb.mxu2 %v9367_v35  ;;  %v10488_v30 = vld [vmem:[#allocation2 + $0x594] sm:$0xf]  ;;  %v8219_v35 = vor.u32 %v10424_v24, %v8216_v42 }
 0x3a7   :  { %v10580_v36 = vld [vmem:[#allocation2 + $0x86c] sm:$0xf0]  ;;  %v8472_v51 = vld [vmem:[#allocation2 + $0x5b0] sm:$0xf0] }
 0x3a8   :  { %v9078_v37 = vld [vmem:[#allocation2 + $0xa50] sm:$0xf]  ;;  %v8823_v49 = vor.u32 %v10580_v36, %v8822_v23  ;;  %5727 = vmatpush.bf16.msrb.mxu3 %v9623_v40  ;;  %v8475_v23 = vor.u32 %v10488_v30, %v8472_v51  ;;  %v10352_v36 = vld [vmem:[#allocation2 + $0x154] sm:$0xf]  ;;  %v8731_v40 = vor.u32 %v10552_v31, %v8728_v33  ;;  %v5510_v30 = vpop.f32.mrf.mxu2 }
 0x3a9   :  { %v10644_v43 = vld [vmem:[#allocation2 + $0xa6c] sm:$0xf0]  ;;  %v10336_v1 = vld [vmem:[#allocation2 + $0xd4] sm:$0xf] }
 0x3aa   :  { %v9334_v44 = vld [vmem:[#allocation2 + $0xc50] sm:$0xf]  ;;  %v9079_v9 = vor.u32 %v10644_v43, %v9078_v37  ;;  %5689 = vmatpush.bf16.msrb.mxu0 %v8823_v49  ;;  %v7928_v37 = vld [vmem:[#allocation2 + $0x170] sm:$0xf0] }
 0x3ab   :  { %v10708_v45 = vld [vmem:[#allocation2 + $0xc6c] sm:$0xf0]  ;;  %v8184_v43 = vld [vmem:[#allocation2 + $0x370] sm:$0xf0]  ;;  %v7931_v49 = vor.u32 %v10352_v36, %v7928_v37 }
 0x3ac   :  { %v9590_v47 = vld [vmem:[#allocation2 + $0xe50] sm:$0xf]  ;;  %v9335_v18 = vor.u32 %v10708_v45, %v9334_v44  ;;  %5702 = vmatpush.bf16.msrb.mxu1 %v9079_v9  ;;  %v10480_v44 = vld [vmem:[#allocation2 + $0x554] sm:$0xf] }
 0x3ad   :  { %v10772_v48 = vld [vmem:[#allocation2 + $0xe6c] sm:$0xf0]  ;;  %v8440_v45 = vld [vmem:[#allocation2 + $0x570] sm:$0xf0] }
 0x3ae   :  { %v8790_v52 = vld [vmem:[#allocation2 + $0x810] sm:$0xf]  ;;  %v9591_v59 = vor.u32 %v10772_v48, %v9590_v47  ;;  %5715 = vmatpush.bf16.msrb.mxu2 %v9335_v18  ;;  %v10544_v47 = vld [vmem:[#allocation2 + $0x754] sm:$0xf] }
 0x3af   :  { %v10572_v8 = vld [vmem:[#allocation2 + $0x82c] sm:$0xf0]  ;;  %v8696_v48 = vld [vmem:[#allocation2 + $0x770] sm:$0xf0] }
 0x3b0   :  { %v9046_v53 = vld [vmem:[#allocation2 + $0xa10] sm:$0xf]  ;;  %v8791_v3 = vor.u32 %v10572_v8, %v8790_v52  ;;  %5728 = vmatpush.bf16.msrb.mxu3 %v9591_v59  ;;  %v8187_v52 = vor.u32 %v10416_v39, %v8184_v43  ;;  %v8443_v8 = vor.u32 %v10480_v44, %v8440_v45  ;;  %v10344_v9 = vld [vmem:[#allocation2 + $0x114] sm:$0xf]  ;;  %v5486_v43 = vpop.f32.mrf.mxu0 }
 0x3b1   :  { %v10636_v57 = vld [vmem:[#allocation2 + $0xa2c] sm:$0xf0]  ;;  %v7896_v18 = vld [vmem:[#allocation2 + $0x130] sm:$0xf0] }
 0x3b2   :  { %v9302_v58 = vld [vmem:[#allocation2 + $0xc10] sm:$0xf]  ;;  %v9047_v21 = vor.u32 %v10636_v57, %v9046_v53  ;;  %5690 = vmatpush.bf16.msrb.mxu0 %v8791_v3  ;;  %v10408_v53 = vld [vmem:[#allocation2 + $0x314] sm:$0xf]  ;;  %v8699_v57 = vor.u32 %v10544_v47, %v8696_v48 }
 0x3b3   :  { %v10700_v60 = vld [vmem:[#allocation2 + $0xc2c] sm:$0xf0]  ;;  %v8408_v59 = vld [vmem:[#allocation2 + $0x530] sm:$0xf0] }
 0x3b4   :  { %v9558_v50 = vld [vmem:[#allocation2 + $0xe10] sm:$0xf]  ;;  %v9303_v38 = vor.u32 %v10700_v60, %v9302_v58  ;;  %5703 = vmatpush.bf16.msrb.mxu1 %v9047_v21  ;;  %v8152_v58 = vld [vmem:[#allocation2 + $0x330] sm:$0xf0]  ;;  %v8411_v0 = vor.u32 %v10472_v25, %v8408_v59 }
 0x3b5   :  { %v10764_v61 = vld [vmem:[#allocation2 + $0xe2c] sm:$0xf0]  ;;  %5691 = vmatmul.bf16.vlgmr.msrb.gmra.mxu0 %v11280_v13  ;;  %v10536_v60 = vld [vmem:[#allocation2 + $0x714] sm:$0xf]  ;;  %v8155_v63 = vor.u32 %v10408_v53, %v8152_v58 }
 0x3b6   :  { %v9559_v2 = vor.u32 %v10764_v61, %v9558_v50  ;;  %5716 = vmatpush.bf16.msrb.mxu2 %v9303_v38  ;;  %5735 = vmatpush.bf16.msra.mxu0 %v7995_v16  ;;  %v8664_v50 = vld [vmem:[#allocation2 + $0x730] sm:$0xf0]  ;;  %v7899_v61 = vor.u32 %v10344_v9, %v7896_v18 }
 0x3b7   :  { %5704 = vmatmul.bf16.vlgmr.msrb.gmra.mxu1 %v11290_v41  ;;  %v7864_v3 = vld [vmem:[#allocation2 + $0xf0] sm:$0xf0]  ;;  %v8667_v21 = vor.u32 %v10536_v60, %v8664_v50 }
 0x3b8   :  { %5729 = vmatpush.bf16.msrb.mxu3 %v9559_v2  ;;  %5748 = vmatpush.bf16.msra.mxu1 %v8251_v5  ;;  %v10400_v4 = vld [vmem:[#allocation2 + $0x2d4] sm:$0xf]  ;;  %v5498_v5 = vadd.f32 %v5497_v12, %v5485_v10 }
 0x3b9   :  { %5717 = vmatmul.bf16.vlgmr.msrb.gmra.mxu2 %v11275_v6  ;;  %v8120_v38 = vld [vmem:[#allocation2 + $0x2f0] sm:$0xf0] }
 0x3ba   :  { %5761 = vmatpush.bf16.msra.mxu2 %v8507_v17  ;;  %5736 = vmatpush.bf16.msra.mxu0 %v7963_v34  ;;  %v10464_v27 = vld [vmem:[#allocation2 + $0x4d4] sm:$0xf]  ;;  %v7867_v17 = vor.u32 %v10336_v1, %v7864_v3  ;;  %v8123_v54 = vor.u32 %v10400_v4, %v8120_v38  ;;  %v5511_v34 = vadd.f32 %v5510_v30, %v5498_v5  ;;  %v5512_v1 = vpop.f32.mrf.mxu2 }
 0x3bb   :  { %5730 = vmatmul.bf16.vlgmr.msrb.gmra.mxu3 %v11285_v14  ;;  %v8376_v15 = vld [vmem:[#allocation2 + $0x4f0] sm:$0xf0] }
 0x3bc   :  { %5774 = vmatpush.bf16.msra.mxu3 %v8763_v29  ;;  %5749 = vmatpush.bf16.msra.mxu1 %v8219_v35  ;;  %v10528_v2 = vld [vmem:[#allocation2 + $0x6d4] sm:$0xf]  ;;  %v8379_v56 = vor.u32 %v10464_v27, %v8376_v15  ;;  %v5523_v35 = vpop.f32.mrf.mxu3 }
 0x3bd   :  { %v8632_v16 = vld [vmem:[#allocation2 + $0x6f0] sm:$0xf0]  ;;  %v11350_v39 = vadd.f32 %v5523_v35, %v5511_v34 }
 0x3be   :  { %5762 = vmatpush.bf16.msra.mxu2 %v8475_v23  ;;  %5737 = vmatpush.bf16.msra.mxu0 %v7931_v49  ;;  %v10328_v24 = vld [vmem:[#allocation2 + $0x94] sm:$0xf]  ;;  %v8635_v32 = vor.u32 %v10528_v2, %v8632_v16 }
 0x3bf   :  { %v7832_v29 = vld [vmem:[#allocation2 + $0xb0] sm:$0xf0]  ;;  %v6049_v9 = vmax.f32 %v11350_v39, 0.0 }
 0x3c0   :  { %5775 = vmatpush.bf16.msra.mxu3 %v8731_v40  ;;  %5750 = vmatpush.bf16.msra.mxu1 %v8187_v52  ;;  %v10392_v42 = vld [vmem:[#allocation2 + $0x294] sm:$0xf]  ;;  %v7835_v37 = vor.u32 %v10328_v24, %v7832_v29  ;;  %v5499_v52 = vpop.f32.mrf.mxu1 }
 0x3c1   :  { %v8088_v51 = vld [vmem:[#allocation2 + $0x2b0] sm:$0xf0] }
 0x3c2   :  { %5763 = vmatpush.bf16.msra.mxu2 %v8443_v8  ;;  %5738 = vmatpush.bf16.msra.mxu0 %v7899_v61  ;;  %v10456_v31 = vld [vmem:[#allocation2 + $0x494] sm:$0xf]  ;;  %v8091_v44 = vor.u32 %v10392_v42, %v8088_v51 }
 0x3c3   :  { %v8344_v33 = vld [vmem:[#allocation2 + $0x4b0] sm:$0xf0] }
 0x3c4   :  { %5776 = vmatpush.bf16.msra.mxu3 %v8699_v57  ;;  %5751 = vmatpush.bf16.msra.mxu1 %v8155_v63  ;;  %v10520_v23 = vld [vmem:[#allocation2 + $0x694] sm:$0xf]  ;;  %v8347_v45 = vor.u32 %v10456_v31, %v8344_v33 }
 0x3c5   :  { %v8600_v36 = vld [vmem:[#allocation2 + $0x6b0] sm:$0xf0] }
 0x3c6   :  { %5764 = vmatpush.bf16.msra.mxu2 %v8411_v0  ;;  %5739 = vmatpush.bf16.msra.mxu0 %v7867_v17  ;;  %v10320_v40 = vld [vmem:[#allocation2 + $0x54] sm:$0xf]  ;;  %v8603_v8 = vor.u32 %v10520_v23, %v8600_v36 }
 0x3c7   :  { %v7800_v47 = vld [vmem:[#allocation2 + $0x70] sm:$0xf0] }
 0x3c8   :  { %5777 = vmatpush.bf16.msra.mxu3 %v8667_v21  ;;  %5752 = vmatpush.bf16.msra.mxu1 %v8123_v54  ;;  %v10384_v48 = vld [vmem:[#allocation2 + $0x254] sm:$0xf]  ;;  %v7803_v25 = vor.u32 %v10320_v40, %v7800_v47  ;;  %v5525_v21 = vpop.f32.mrf.mxu3 }
 0x3c9   :  { %v8056_v49 = vld [vmem:[#allocation2 + $0x270] sm:$0xf0] }
 0x3ca   :  { %5765 = vmatpush.bf16.msra.mxu2 %v8379_v56  ;;  %v10448_v18 = vld [vmem:[#allocation2 + $0x454] sm:$0xf]  ;;  %5740 = vmatpush.bf16.msra.mxu0 %v7835_v37  ;;  %v8059_v50 = vor.u32 %v10384_v48, %v8056_v49 }
 0x3cb   :  { %v8312_v53 = vld [vmem:[#allocation2 + $0x470] sm:$0xf0] }
 0x3cc   :  { %5778 = vmatpush.bf16.msra.mxu3 %v8635_v32  ;;  %v10512_v57 = vld [vmem:[#allocation2 + $0x654] sm:$0xf]  ;;  %5753 = vmatpush.bf16.msra.mxu1 %v8091_v44  ;;  %v8315_v61 = vor.u32 %v10448_v18, %v8312_v53 }
 0x3cd   :  { %v8568_v58 = vld [vmem:[#allocation2 + $0x670] sm:$0xf0] }
 0x3ce   :  { %v10312_v59 = vld [vmem:[#allocation2 + $0x14] sm:$0xf]  ;;  %5766 = vmatpush.bf16.msra.mxu2 %v8347_v45  ;;  %v8571_v3 = vor.u32 %v10512_v57, %v8568_v58  ;;  %5741 = vmatpush.bf16.msra.mxu0 %v7803_v25 }
 0x3cf   :  { %v7768_v60 = vld [vmem:[#allocation2 + $0x30] sm:$0xf0] }
 0x3d0   :  { %v10376_v62 = vld [vmem:[#allocation2 + $0x214] sm:$0xf]  ;;  %5779 = vmatpush.bf16.msra.mxu3 %v8603_v8  ;;  %v7771_v2 = vor.u32 %v10312_v59, %v7768_v60  ;;  %5754 = vmatpush.bf16.msra.mxu1 %v8059_v50 }
 0x3d1   :  { %v8024_v63 = vld [vmem:[#allocation2 + $0x230] sm:$0xf0] }
 0x3d2   :  { %v10440_v0 = vld [vmem:[#allocation2 + $0x414] sm:$0xf]  ;;  %5767 = vmatpush.bf16.msra.mxu2 %v8315_v61  ;;  %v8027_v54 = vor.u32 %v10376_v62, %v8024_v63  ;;  %5742 = vmatpush.bf16.msra.mxu0 %v7771_v2 }
 0x3d3   :  { %v8280_v4 = vld [vmem:[#allocation2 + $0x430] sm:$0xf0] }
 0x3d4   :  { %v10504_v10 = vld [vmem:[#allocation2 + $0x614] sm:$0xf]  ;;  %v8283_v56 = vor.u32 %v10440_v0, %v8280_v4  ;;  %5780 = vmatpush.bf16.msra.mxu3 %v8571_v3  ;;  %5755 = vmatpush.bf16.msra.mxu1 %v8027_v54  ;;  %v2642_v0 = vperm.slane %v11340_v46, 3 }
 0x3d5   :  { %v8536_v12 = vld [vmem:[#allocation2 + $0x630] sm:$0xf0]  ;;  %5743 = vmatmul.bf16.vlgmr.msra.gmra.mxu0 %v11256_v26 }
 0x3d6   :  { %v10624_v38 = vld [vmem:[#allocation2 + $0x9d4] sm:$0xf]  ;;  %v8539_v42 = vor.u32 %v10504_v10, %v8536_v12  ;;  %5768 = vmatpush.bf16.msra.mxu2 %v8283_v56  ;;  %v5549_v56 = vpop.f32.mrf.mxu1 }
 0x3d7   :  { %v9016_v27 = vld [vmem:[#allocation2 + $0x9f0] sm:$0xf0]  ;;  %5756 = vmatmul.bf16.vlgmr.msra.gmra.mxu1 %v11266_v22 }
 0x3d8   :  { %v10688_v15 = vld [vmem:[#allocation2 + $0xbd4] sm:$0xf]  ;;  %v9019_v30 = vor.u32 %v10624_v38, %v9016_v27  ;;  %5781 = vmatpush.bf16.msra.mxu3 %v8539_v42  ;;  %v5536_v27 = vpop.f32.mrf.mxu0 }
 0x3d9   :  { %v9272_v16 = vld [vmem:[#allocation2 + $0xbf0] sm:$0xf0]  ;;  %5769 = vmatmul.bf16.vlgmr.msra.gmra.mxu2 %v11251_v19  ;;  %v5537_v54 = vadd.f32 %v5536_v27, %v2642_v0 }
 0x3da   :  { %v10752_v5 = vld [vmem:[#allocation2 + $0xdd4] sm:$0xf]  ;;  %v9275_v32 = vor.u32 %v10688_v15, %v9272_v16  ;;  %5787 = vmatpush.bf16.msrb.mxu0 %v9019_v30 }
 0x3db   :  { %v9528_v17 = vld [vmem:[#allocation2 + $0xdf0] sm:$0xf0]  ;;  %5782 = vmatmul.bf16.vlgmr.msra.gmra.mxu3 %v11261_v28 }
 0x3dc   :  { %v10816_v24 = vld [vmem:[#allocation2 + $0xfd4] sm:$0xf]  ;;  %v9531_v51 = vor.u32 %v10752_v5, %v9528_v17  ;;  %5800 = vmatpush.bf16.msrb.mxu1 %v9275_v32 }
 0x3dd   :  { %v9784_v29 = vld [vmem:[#allocation2 + $0xff0] sm:$0xf0] }
 0x3de   :  { %v10616_v31 = vld [vmem:[#allocation2 + $0x994] sm:$0xf]  ;;  %v9787_v35 = vor.u32 %v10816_v24, %v9784_v29  ;;  %5813 = vmatpush.bf16.msrb.mxu2 %v9531_v51  ;;  %v5550_v51 = vadd.f32 %v5549_v56, %v5537_v54 }
 0x3df   :  { %v8984_v33 = vld [vmem:[#allocation2 + $0x9b0] sm:$0xf0] }
 0x3e0   :  { %v10680_v34 = vld [vmem:[#allocation2 + $0xb94] sm:$0xf]  ;;  %v8987_v44 = vor.u32 %v10616_v31, %v8984_v33  ;;  %5826 = vmatpush.bf16.msrb.mxu3 %v9787_v35 }
 0x3e1   :  { %v9240_v23 = vld [vmem:[#allocation2 + $0xbb0] sm:$0xf0] }
 0x3e2   :  { %v10744_v36 = vld [vmem:[#allocation2 + $0xd94] sm:$0xf]  ;;  %v9243_v45 = vor.u32 %v10680_v34, %v9240_v23  ;;  %5788 = vmatpush.bf16.msrb.mxu0 %v8987_v44 }
 0x3e3   :  { %v9496_v37 = vld [vmem:[#allocation2 + $0xdb0] sm:$0xf0] }
 0x3e4   :  { %v10808_v40 = vld [vmem:[#allocation2 + $0xf94] sm:$0xf]  ;;  %v9499_v47 = vor.u32 %v10744_v36, %v9496_v37  ;;  %5801 = vmatpush.bf16.msrb.mxu1 %v9243_v45  ;;  %v5562_v37 = vpop.f32.mrf.mxu2 }
 0x3e5   :  { %v9752_v43 = vld [vmem:[#allocation2 + $0xfb0] sm:$0xf0] }
 0x3e6   :  { %v10608_v48 = vld [vmem:[#allocation2 + $0x954] sm:$0xf]  ;;  %v9755_v8 = vor.u32 %v10808_v40, %v9752_v43  ;;  %5814 = vmatpush.bf16.msrb.mxu2 %v9499_v47  ;;  %v5563_v47 = vadd.f32 %v5562_v37, %v5550_v51  ;;  %v8510_v51 = vld [vmem:[#allocation2 + $0x5d8] sm:$0xf] }
 0x3e7   :  { %v8952_v49 = vld [vmem:[#allocation2 + $0x970] sm:$0xf0] }
 0x3e8   :  { %v10672_v52 = vld [vmem:[#allocation2 + $0xb54] sm:$0xf]  ;;  %v8955_v59 = vor.u32 %v10608_v48, %v8952_v49  ;;  %5827 = vmatpush.bf16.msrb.mxu3 %v9755_v8  ;;  %v5575_v48 = vpop.f32.mrf.mxu3 }
 0x3e9   :  { %v9208_v18 = vld [vmem:[#allocation2 + $0xb70] sm:$0xf0] }
 0x3ea   :  { %v10736_v53 = vld [vmem:[#allocation2 + $0xd54] sm:$0xf]  ;;  %v9211_v50 = vor.u32 %v10672_v52, %v9208_v18  ;;  %5789 = vmatpush.bf16.msrb.mxu0 %v8955_v59  ;;  %v11358_v18 = vadd.f32 %v5575_v48, %v5563_v47  ;;  %v8222_v47 = vld [vmem:[#allocation2 + $0x398] sm:$0xf] }
 0x3eb   :  { %v9464_v57 = vld [vmem:[#allocation2 + $0xd70] sm:$0xf0] }
 0x3ec   :  { %v10800_v58 = vld [vmem:[#allocation2 + $0xf54] sm:$0xf]  ;;  %v9467_v61 = vor.u32 %v10736_v53, %v9464_v57  ;;  %5802 = vmatpush.bf16.msrb.mxu1 %v9211_v50  ;;  %v5538_v53 = vpop.f32.mrf.mxu0  ;;  %v5551_v50 = vpop.f32.mrf.mxu1 }
 0x3ed   :  { %v9720_v25 = vld [vmem:[#allocation2 + $0xf70] sm:$0xf0]  ;;  %v8734_v53 = vld [vmem:[#allocation2 + $0x798] sm:$0xf] }
 0x3ee   :  { %v10600_v60 = vld [vmem:[#allocation2 + $0x914] sm:$0xf]  ;;  %v9723_v1 = vor.u32 %v10800_v58, %v9720_v25  ;;  %5815 = vmatpush.bf16.msrb.mxu2 %v9467_v61  ;;  %v10357_v50 = vld [vmem:[#allocation2 + $0x174] sm:$0xf0] }
 0x3ef   :  { %v8920_v62 = vld [vmem:[#allocation2 + $0x930] sm:$0xf0] }
 0x3f0   :  { %v10664_v63 = vld [vmem:[#allocation2 + $0xb14] sm:$0xf]  ;;  %v8923_v38 = vor.u32 %v10600_v60, %v8920_v62  ;;  %5828 = vmatpush.bf16.msrb.mxu3 %v9723_v1 }
 0x3f1   :  { %v9176_v3 = vld [vmem:[#allocation2 + $0xb30] sm:$0xf0] }
 0x3f2   :  { %v10728_v4 = vld [vmem:[#allocation2 + $0xd14] sm:$0xf]  ;;  %v9179_v15 = vor.u32 %v10664_v63, %v9176_v3  ;;  %5790 = vmatpush.bf16.msrb.mxu0 %v8923_v38 }
 0x3f3   :  { %v9432_v10 = vld [vmem:[#allocation2 + $0xd30] sm:$0xf0] }
 0x3f4   :  { %v10792_v12 = vld [vmem:[#allocation2 + $0xf14] sm:$0xf]  ;;  %v9435_v2 = vor.u32 %v10728_v4, %v9432_v10  ;;  %5803 = vmatpush.bf16.msrb.mxu1 %v9179_v15 }
 0x3f5   :  { %v9688_v21 = vld [vmem:[#allocation2 + $0xf30] sm:$0xf0] }
 0x3f6   :  { %v10592_v16 = vld [vmem:[#allocation2 + $0x8d4] sm:$0xf]  ;;  %v9691_v46 = vor.u32 %v10792_v12, %v9688_v21  ;;  %5816 = vmatpush.bf16.msrb.mxu2 %v9435_v2 }
 0x3f7   :  { %v8888_v5 = vld [vmem:[#allocation2 + $0x8f0] sm:$0xf0] }
 0x3f8   :  { %v10656_v17 = vld [vmem:[#allocation2 + $0xad4] sm:$0xf]  ;;  %v8891_v31 = vor.u32 %v10592_v16, %v8888_v5  ;;  %5829 = vmatpush.bf16.msrb.mxu3 %v9691_v46  ;;  %v5564_v16 = vpop.f32.mrf.mxu2  ;;  %v5577_v46 = vpop.f32.mrf.mxu3 }
 0x3f9   :  { %v9144_v24 = vld [vmem:[#allocation2 + $0xaf0] sm:$0xf0]  ;;  %v10413_v16 = vld [vmem:[#allocation2 + $0x334] sm:$0xf0] }
 0x3fa   :  { %v10720_v29 = vld [vmem:[#allocation2 + $0xcd4] sm:$0xf]  ;;  %v9147_v33 = vor.u32 %v10656_v17, %v9144_v24  ;;  %5791 = vmatpush.bf16.msrb.mxu0 %v8891_v31  ;;  %v7998_v24 = vld [vmem:[#allocation2 + $0x1d8] sm:$0xf] }
 0x3fb   :  { %v9400_v42 = vld [vmem:[#allocation2 + $0xcf0] sm:$0xf0]  ;;  %v10501_v31 = vld [vmem:[#allocation2 + $0x5f4] sm:$0xf0] }
 0x3fc   :  { %v10784_v30 = vld [vmem:[#allocation2 + $0xed4] sm:$0xf]  ;;  %v9403_v34 = vor.u32 %v10720_v29, %v9400_v42  ;;  %5804 = vmatpush.bf16.msrb.mxu1 %v9147_v33  ;;  %v10373_v29 = vld [vmem:[#allocation2 + $0x1f4] sm:$0xf0] }
 0x3fd   :  { %v9656_v32 = vld [vmem:[#allocation2 + $0xef0] sm:$0xf0]  ;;  %v8254_v42 = vld [vmem:[#allocation2 + $0x3d8] sm:$0xf]  ;;  %v7999_v37 = vor.u32 %v10373_v29, %v7998_v24  ;;  %v5588_v24 = vpop.f32.mrf.mxu0 }
 0x3fe   :  { %v10584_v35 = vld [vmem:[#allocation2 + $0x894] sm:$0xf]  ;;  %v9659_v40 = vor.u32 %v10784_v30, %v9656_v32  ;;  %5817 = vmatpush.bf16.msrb.mxu2 %v9403_v34  ;;  %v10437_v32 = vld [vmem:[#allocation2 + $0x3f4] sm:$0xf0] }
 0x3ff   :  { %v8856_v23 = vld [vmem:[#allocation2 + $0x8b0] sm:$0xf0] }
 0x400   :  { %v10648_v36 = vld [vmem:[#allocation2 + $0xa94] sm:$0xf]  ;;  %v8859_v8 = vor.u32 %v10584_v35, %v8856_v23  ;;  %5830 = vmatpush.bf16.msrb.mxu3 %v9659_v40  ;;  %v8766_v35 = vld [vmem:[#allocation2 + $0x7d8] sm:$0xf]  ;;  %v8255_v40 = vor.u32 %v10437_v32, %v8254_v42 }
 0x401   :  { %v9112_v43 = vld [vmem:[#allocation2 + $0xab0] sm:$0xf0]  ;;  %v10565_v23 = vld [vmem:[#allocation2 + $0x7f4] sm:$0xf0] }
 0x402   :  { %v10712_v44 = vld [vmem:[#allocation2 + $0xc94] sm:$0xf]  ;;  %v9115_v57 = vor.u32 %v10648_v36, %v9112_v43  ;;  %5792 = vmatpush.bf16.msrb.mxu0 %v8859_v8  ;;  %v8511_v43 = vor.u32 %v10501_v31, %v8510_v51  ;;  %v8767_v48 = vor.u32 %v10565_v23, %v8766_v35  ;;  %v10493_v8 = vld [vmem:[#allocation2 + $0x5b4] sm:$0xf0]  ;;  %v5589_v31 = vadd.f32 %v5588_v24, %v11358_v18 }
 0x403   :  { %v9368_v45 = vld [vmem:[#allocation2 + $0xcb0] sm:$0xf0]  ;;  %v10341_v32 = vld [vmem:[#allocation2 + $0xf4] sm:$0xf0] }
 0x404   :  { %v10776_v49 = vld [vmem:[#allocation2 + $0xe94] sm:$0xf]  ;;  %v9371_v58 = vor.u32 %v10712_v44, %v9368_v45  ;;  %5805 = vmatpush.bf16.msrb.mxu1 %v9115_v57  ;;  %v7966_v44 = vld [vmem:[#allocation2 + $0x198] sm:$0xf] }
 0x405   :  { %v9624_v52 = vld [vmem:[#allocation2 + $0xeb0] sm:$0xf0]  ;;  %v10365_v45 = vld [vmem:[#allocation2 + $0x1b4] sm:$0xf0] }
 0x406   :  { %v10576_v25 = vld [vmem:[#allocation2 + $0x854] sm:$0xf]  ;;  %v9627_v61 = vor.u32 %v10776_v49, %v9624_v52  ;;  %5818 = vmatpush.bf16.msrb.mxu2 %v9371_v58  ;;  %v10429_v49 = vld [vmem:[#allocation2 + $0x3b4] sm:$0xf0]  ;;  %v7967_v58 = vor.u32 %v10365_v45, %v7966_v44 }
 0x407   :  { %v8824_v59 = vld [vmem:[#allocation2 + $0x870] sm:$0xf0]  ;;  %v8478_v52 = vld [vmem:[#allocation2 + $0x598] sm:$0xf] }
 0x408   :  { %v10640_v60 = vld [vmem:[#allocation2 + $0xa54] sm:$0xf]  ;;  %v8827_v4 = vor.u32 %v10576_v25, %v8824_v59  ;;  %5831 = vmatpush.bf16.msrb.mxu3 %v9627_v61  ;;  %v10557_v57 = vld [vmem:[#allocation2 + $0x7b4] sm:$0xf0]  ;;  %v8223_v25 = vor.u32 %v10429_v49, %v8222_v47  ;;  %v8479_v59 = vor.u32 %v10493_v8, %v8478_v52  ;;  %v5614_v8 = vpop.f32.mrf.mxu2 }
 0x409   :  { %v9080_v62 = vld [vmem:[#allocation2 + $0xa70] sm:$0xf0]  ;;  %v8190_v61 = vld [vmem:[#allocation2 + $0x358] sm:$0xf] }
 0x40a   :  { %v10704_v63 = vld [vmem:[#allocation2 + $0xc54] sm:$0xf]  ;;  %v9083_v21 = vor.u32 %v10640_v60, %v9080_v62  ;;  %5793 = vmatpush.bf16.msrb.mxu0 %v8827_v4  ;;  %v7934_v60 = vld [vmem:[#allocation2 + $0x158] sm:$0xf]  ;;  %v8735_v62 = vor.u32 %v10557_v57, %v8734_v53 }
 0x40b   :  { %v9336_v0 = vld [vmem:[#allocation2 + $0xc70] sm:$0xf0]  ;;  %v10549_v4 = vld [vmem:[#allocation2 + $0x774] sm:$0xf0] }
 0x40c   :  { %v10768_v1 = vld [vmem:[#allocation2 + $0xe54] sm:$0xf]  ;;  %v9339_v38 = vor.u32 %v10704_v63, %v9336_v0  ;;  %5806 = vmatpush.bf16.msrb.mxu1 %v9083_v21  ;;  %v10421_v63 = vld [vmem:[#allocation2 + $0x374] sm:$0xf0] }
 0x40d   :  { %v9592_v3 = vld [vmem:[#allocation2 + $0xe70] sm:$0xf0]  ;;  %v8446_v0 = vld [vmem:[#allocation2 + $0x558] sm:$0xf] }
 0x40e   :  { %v10568_v10 = vld [vmem:[#allocation2 + $0x814] sm:$0xf]  ;;  %v9595_v5 = vor.u32 %v10768_v1, %v9592_v3  ;;  %5819 = vmatpush.bf16.msrb.mxu2 %v9339_v38  ;;  %v10485_v1 = vld [vmem:[#allocation2 + $0x574] sm:$0xf0] }
 0x40f   :  { %v8792_v12 = vld [vmem:[#allocation2 + $0x830] sm:$0xf0]  ;;  %v8702_v3 = vld [vmem:[#allocation2 + $0x758] sm:$0xf]  ;;  %v8447_v21 = vor.u32 %v10485_v1, %v8446_v0  ;;  %v5590_v0 = vpop.f32.mrf.mxu0 }
 0x410   :  { %v10632_v27 = vld [vmem:[#allocation2 + $0xa14] sm:$0xf]  ;;  %v8795_v30 = vor.u32 %v10568_v10, %v8792_v12  ;;  %5832 = vmatpush.bf16.msrb.mxu3 %v9595_v5  ;;  %v7935_v10 = vor.u32 %v10357_v50, %v7934_v60  ;;  %v8191_v12 = vor.u32 %v10421_v63, %v8190_v61  ;;  %v7902_v38 = vld [vmem:[#allocation2 + $0x118] sm:$0xf] }
 0x411   :  { %v9048_v15 = vld [vmem:[#allocation2 + $0xa30] sm:$0xf0]  ;;  %v8414_v5 = vld [vmem:[#allocation2 + $0x518] sm:$0xf] }
 0x412   :  { %v10696_v2 = vld [vmem:[#allocation2 + $0xc14] sm:$0xf]  ;;  %v9051_v33 = vor.u32 %v10632_v27, %v9048_v15  ;;  %5794 = vmatpush.bf16.msrb.mxu0 %v8795_v30  ;;  %v10349_v27 = vld [vmem:[#allocation2 + $0x134] sm:$0xf0] }
 0x413   :  { %v9304_v17 = vld [vmem:[#allocation2 + $0xc30] sm:$0xf0]  ;;  %v8158_v15 = vld [vmem:[#allocation2 + $0x318] sm:$0xf]  ;;  %v7903_v46 = vor.u32 %v10349_v27, %v7902_v38 }
 0x414   :  { %v10760_v54 = vld [vmem:[#allocation2 + $0xe14] sm:$0xf]  ;;  %v9307_v34 = vor.u32 %v10696_v2, %v9304_v17  ;;  %5807 = vmatpush.bf16.msrb.mxu1 %v9051_v33  ;;  %v8703_v2 = vor.u32 %v10549_v4, %v8702_v3  ;;  %v10477_v17 = vld [vmem:[#allocation2 + $0x534] sm:$0xf0]  ;;  %v8159_v29 = vor.u32 %v10413_v16, %v8158_v15  ;;  %v5601_v33 = vpop.f32.mrf.mxu1 }
 0x415   :  { %v9560_v56 = vld [vmem:[#allocation2 + $0xe30] sm:$0xf0]  ;;  %5795 = vmatmul.bf16.vlgmr.msrb.gmra.mxu0 %v11280_v13  ;;  %v8415_v42 = vor.u32 %v10477_v17, %v8414_v5  ;;  %v7870_v30 = vld [vmem:[#allocation2 + $0xd8] sm:$0xf] }
 0x416   :  { %v9563_v36 = vor.u32 %v10760_v54, %v9560_v56  ;;  %5820 = vmatpush.bf16.msrb.mxu2 %v9307_v34  ;;  %5839 = vmatpush.bf16.msra.mxu0 %v7999_v37  ;;  %v8670_v54 = vld [vmem:[#allocation2 + $0x718] sm:$0xf]  ;;  %v7871_v44 = vor.u32 %v10341_v32, %v7870_v30  ;;  %v5616_v32 = vpop.f32.mrf.mxu2 }
 0x417   :  { %5808 = vmatmul.bf16.vlgmr.msrb.gmra.mxu1 %v11290_v41  ;;  %v10541_v56 = vld [vmem:[#allocation2 + $0x734] sm:$0xf0]  ;;  %v11372_v32 = vld [vmem:[#allocation11] sm:$0xff] }
 0x418   :  { %5833 = vmatpush.bf16.msrb.mxu3 %v9563_v36  ;;  %5852 = vmatpush.bf16.msra.mxu1 %v8255_v40  ;;  %v8126_v51 = vld [vmem:[#allocation2 + $0x2d8] sm:$0xf]  ;;  %v8671_v34 = vor.u32 %v10541_v56, %v8670_v54 }
 0x419   :  { %5821 = vmatmul.bf16.vlgmr.msrb.gmra.mxu2 %v11275_v6  ;;  %v10405_v35 = vld [vmem:[#allocation2 + $0x2f4] sm:$0xf0] }
 0x41a   :  { %5865 = vmatpush.bf16.msra.mxu2 %v8511_v43  ;;  %5840 = vmatpush.bf16.msra.mxu0 %v7967_v58  ;;  %v8382_v23 = vld [vmem:[#allocation2 + $0x4d8] sm:$0xf]  ;;  %v5602_v43 = vadd.f32 %v5601_v33, %v5589_v31  ;;  %v8127_v45 = vor.u32 %v10405_v35, %v8126_v51 }
 0x41b   :  { %5834 = vmatmul.bf16.vlgmr.msrb.gmra.mxu3 %v11285_v14  ;;  %v10469_v36 = vld [vmem:[#allocation2 + $0x4f4] sm:$0xf0] }
 0x41c   :  { %5878 = vmatpush.bf16.msra.mxu3 %v8767_v48  ;;  %5853 = vmatpush.bf16.msra.mxu1 %v8223_v25  ;;  %v8638_v37 = vld [vmem:[#allocation2 + $0x6d8] sm:$0xf]  ;;  %v8383_v47 = vor.u32 %v10469_v36, %v8382_v23  ;;  %v5615_v25 = vadd.f32 %v5614_v8, %v5602_v43 }
 0x41d   :  { %v10533_v40 = vld [vmem:[#allocation2 + $0x6f4] sm:$0xf0] }
 0x41e   :  { %5866 = vmatpush.bf16.msra.mxu2 %v8479_v59  ;;  %5841 = vmatpush.bf16.msra.mxu0 %v7935_v10  ;;  %v7838_v48 = vld [vmem:[#allocation2 + $0x98] sm:$0xf]  ;;  %v8639_v18 = vor.u32 %v10533_v40, %v8638_v37  ;;  %v5627_v59 = vpop.f32.mrf.mxu3 }
 0x41f   :  { %v10333_v49 = vld [vmem:[#allocation2 + $0xb4] sm:$0xf0] }
 0x420   :  { %5879 = vmatpush.bf16.msra.mxu3 %v8735_v62  ;;  %5854 = vmatpush.bf16.msra.mxu1 %v8191_v12  ;;  %v8094_v52 = vld [vmem:[#allocation2 + $0x298] sm:$0xf]  ;;  %v7839_v61 = vor.u32 %v10333_v49, %v7838_v48  ;;  %v11365_v62 = vadd.f32 %v5627_v59, %v5615_v25 }
 0x421   :  { %v10397_v53 = vld [vmem:[#allocation2 + $0x2b4] sm:$0xf0] }
 0x422   :  { %5867 = vmatpush.bf16.msra.mxu2 %v8447_v21  ;;  %5842 = vmatpush.bf16.msra.mxu0 %v7903_v46  ;;  %v8350_v57 = vld [vmem:[#allocation2 + $0x498] sm:$0xf]  ;;  %v8095_v1 = vor.u32 %v10397_v53, %v8094_v52  ;;  %v5603_v21 = vpop.f32.mrf.mxu1  ;;  %v6050_v27 = vmax.f32 %v11365_v62, 0.0 }
 0x423   :  { %v10461_v58 = vld [vmem:[#allocation2 + $0x4b4] sm:$0xf0] }
 0x424   :  { %5880 = vmatpush.bf16.msra.mxu3 %v8703_v2  ;;  %5855 = vmatpush.bf16.msra.mxu1 %v8159_v29  ;;  %v8606_v60 = vld [vmem:[#allocation2 + $0x698] sm:$0xf]  ;;  %v8351_v3 = vor.u32 %v10461_v58, %v8350_v57 }
 0x425   :  { %v10525_v50 = vld [vmem:[#allocation2 + $0x6b4] sm:$0xf0] }
 0x426   :  { %5868 = vmatpush.bf16.msra.mxu2 %v8415_v42  ;;  %5843 = vmatpush.bf16.msra.mxu0 %v7871_v44  ;;  %v7806_v63 = vld [vmem:[#allocation2 + $0x58] sm:$0xf]  ;;  %v8607_v38 = vor.u32 %v10525_v50, %v8606_v60  ;;  %v5629_v35 = vpop.f32.mrf.mxu3 }
 0x427   :  { %v10325_v4 = vld [vmem:[#allocation2 + $0x74] sm:$0xf0] }
 0x428   :  { %5881 = vmatpush.bf16.msra.mxu3 %v8671_v34  ;;  %5856 = vmatpush.bf16.msra.mxu1 %v8127_v45  ;;  %v8062_v10 = vld [vmem:[#allocation2 + $0x258] sm:$0xf]  ;;  %v7807_v17 = vor.u32 %v10325_v4, %v7806_v63 }
 0x429   :  { %v10389_v12 = vld [vmem:[#allocation2 + $0x274] sm:$0xf0] }
 0x42a   :  { %5869 = vmatpush.bf16.msra.mxu2 %v8383_v47  ;;  %v8318_v15 = vld [vmem:[#allocation2 + $0x458] sm:$0xf]  ;;  %5844 = vmatpush.bf16.msra.mxu0 %v7839_v61  ;;  %v8063_v46 = vor.u32 %v10389_v12, %v8062_v10 }
 0x42b   :  { %v10453_v2 = vld [vmem:[#allocation2 + $0x474] sm:$0xf0] }
 0x42c   :  { %5882 = vmatpush.bf16.msra.mxu3 %v8639_v18  ;;  %v8574_v16 = vld [vmem:[#allocation2 + $0x658] sm:$0xf]  ;;  %5857 = vmatpush.bf16.msra.mxu1 %v8095_v1  ;;  %v8319_v24 = vor.u32 %v10453_v2, %v8318_v15 }
 0x42d   :  { %v10517_v5 = vld [vmem:[#allocation2 + $0x674] sm:$0xf0] }
 0x42e   :  { %v7774_v54 = vld [vmem:[#allocation2 + $0x18] sm:$0xf]  ;;  %5870 = vmatpush.bf16.msra.mxu2 %v8351_v3  ;;  %v8575_v51 = vor.u32 %v10517_v5, %v8574_v16  ;;  %5845 = vmatpush.bf16.msra.mxu0 %v7807_v17 }
 0x42f   :  { %v10317_v56 = vld [vmem:[#allocation2 + $0x34] sm:$0xf0] }
 0x430   :  { %v8030_v29 = vld [vmem:[#allocation2 + $0x218] sm:$0xf]  ;;  %5883 = vmatpush.bf16.msra.mxu3 %v8607_v38  ;;  %v7775_v40 = vor.u32 %v10317_v56, %v7774_v54  ;;  %5858 = vmatpush.bf16.msra.mxu1 %v8063_v46 }
 0x431   :  { %v10381_v42 = vld [vmem:[#allocation2 + $0x234] sm:$0xf0] }
 0x432   :  { %v8286_v30 = vld [vmem:[#allocation2 + $0x418] sm:$0xf]  ;;  %5871 = vmatpush.bf16.msra.mxu2 %v8319_v24  ;;  %v8031_v47 = vor.u32 %v10381_v42, %v8030_v29  ;;  %5846 = vmatpush.bf16.msra.mxu0 %v7775_v40  ;;  %v5640_v40 = vpop.f32.mrf.mxu0 }
 0x433   :  { %v10445_v31 = vld [vmem:[#allocation2 + $0x434] sm:$0xf0] }
 0x434   :  { %v8542_v33 = vld [vmem:[#allocation2 + $0x618] sm:$0xf]  ;;  %v8287_v48 = vor.u32 %v10445_v31, %v8286_v30  ;;  %5884 = vmatpush.bf16.msra.mxu3 %v8575_v51  ;;  %5859 = vmatpush.bf16.msra.mxu1 %v8031_v47  ;;  %v2643_v51 = vperm.slane %v11372_v32, 4 }
 0x435   :  { %v10509_v34 = vld [vmem:[#allocation2 + $0x634] sm:$0xf0]  ;;  %5847 = vmatmul.bf16.vlgmr.msra.gmra.mxu0 %v11256_v26 }
 0x436   :  { %v9022_v23 = vld [vmem:[#allocation2 + $0x9d8] sm:$0xf]  ;;  %v8543_v8 = vor.u32 %v10509_v34, %v8542_v33  ;;  %5872 = vmatpush.bf16.msra.mxu2 %v8287_v48 }
 0x437   :  { %v10629_v36 = vld [vmem:[#allocation2 + $0x9f4] sm:$0xf0]  ;;  %5860 = vmatmul.bf16.vlgmr.msra.gmra.mxu1 %v11266_v22 }
 0x438   :  { %v9278_v37 = vld [vmem:[#allocation2 + $0xbd8] sm:$0xf]  ;;  %v9023_v18 = vor.u32 %v10629_v36, %v9022_v23  ;;  %5885 = vmatpush.bf16.msra.mxu3 %v8543_v8 }
 0x439   :  { %v10693_v43 = vld [vmem:[#allocation2 + $0xbf4] sm:$0xf0]  ;;  %5873 = vmatmul.bf16.vlgmr.msra.gmra.mxu2 %v11251_v19 }
 0x43a   :  { %v9534_v44 = vld [vmem:[#allocation2 + $0xdd8] sm:$0xf]  ;;  %v9279_v53 = vor.u32 %v10693_v43, %v9278_v37  ;;  %5891 = vmatpush.bf16.msrb.mxu0 %v9023_v18 }
 0x43b   :  { %v10757_v45 = vld [vmem:[#allocation2 + $0xdf4] sm:$0xf0]  ;;  %5886 = vmatmul.bf16.vlgmr.msra.gmra.mxu3 %v11261_v28 }
 0x43c   :  { %v9790_v49 = vld [vmem:[#allocation2 + $0xfd8] sm:$0xf]  ;;  %v9535_v57 = vor.u32 %v10757_v45, %v9534_v44  ;;  %5904 = vmatpush.bf16.msrb.mxu1 %v9279_v53 }
 0x43d   :  { %v10821_v52 = vld [vmem:[#allocation2 + $0xff4] sm:$0xf0] }
 0x43e   :  { %v8990_v58 = vld [vmem:[#allocation2 + $0x998] sm:$0xf]  ;;  %v9791_v60 = vor.u32 %v10821_v52, %v9790_v49  ;;  %5917 = vmatpush.bf16.msrb.mxu2 %v9535_v57  ;;  %v5641_v49 = vadd.f32 %v5640_v40, %v2643_v51  ;;  %v5653_v52 = vpop.f32.mrf.mxu1 }
 0x43f   :  { %v10621_v25 = vld [vmem:[#allocation2 + $0x9b4] sm:$0xf0] }
 0x440   :  { %v9246_v59 = vld [vmem:[#allocation2 + $0xb98] sm:$0xf]  ;;  %v8991_v3 = vor.u32 %v10621_v25, %v8990_v58  ;;  %5930 = vmatpush.bf16.msrb.mxu3 %v9791_v60 }
 0x441   :  { %v10685_v50 = vld [vmem:[#allocation2 + $0xbb4] sm:$0xf0] }
 0x442   :  { %v9502_v61 = vld [vmem:[#allocation2 + $0xd98] sm:$0xf]  ;;  %v9247_v4 = vor.u32 %v10685_v50, %v9246_v59  ;;  %5892 = vmatpush.bf16.msrb.mxu0 %v8991_v3  ;;  %v5654_v59 = vadd.f32 %v5653_v52, %v5641_v49  ;;  %v5666_v3 = vpop.f32.mrf.mxu2 }
 0x443   :  { %v10749_v63 = vld [vmem:[#allocation2 + $0xdb4] sm:$0xf0] }
 0x444   :  { %v9758_v0 = vld [vmem:[#allocation2 + $0xf98] sm:$0xf]  ;;  %v9503_v10 = vor.u32 %v10749_v63, %v9502_v61  ;;  %5905 = vmatpush.bf16.msrb.mxu1 %v9247_v4 }
 0x445   :  { %v10813_v1 = vld [vmem:[#allocation2 + $0xfb4] sm:$0xf0] }
 0x446   :  { %v8958_v12 = vld [vmem:[#allocation2 + $0x958] sm:$0xf]  ;;  %v9759_v15 = vor.u32 %v10813_v1, %v9758_v0  ;;  %5918 = vmatpush.bf16.msrb.mxu2 %v9503_v10 }
 0x447   :  { %v10613_v21 = vld [vmem:[#allocation2 + $0x974] sm:$0xf0] }
 0x448   :  { %v9214_v38 = vld [vmem:[#allocation2 + $0xb58] sm:$0xf]  ;;  %v8959_v56 = vor.u32 %v10613_v21, %v8958_v12  ;;  %5931 = vmatpush.bf16.msrb.mxu3 %v9759_v15  ;;  %v5679_v15 = vpop.f32.mrf.mxu3 }
 0x449   :  { %v10677_v2 = vld [vmem:[#allocation2 + $0xb74] sm:$0xf0] }
 0x44a   :  { %v9470_v16 = vld [vmem:[#allocation2 + $0xd58] sm:$0xf]  ;;  %v9215_v24 = vor.u32 %v10677_v2, %v9214_v38  ;;  %5893 = vmatpush.bf16.msrb.mxu0 %v8959_v56  ;;  %v5667_v38 = vadd.f32 %v5666_v3, %v5654_v59  ;;  %v5668_v49 = vpop.f32.mrf.mxu2  ;;  %v10433_v59 = vld [vmem:[#allocation2 + $0x3dc] sm:$0xf] }
 0x44b   :  { %v10741_v5 = vld [vmem:[#allocation2 + $0xd74] sm:$0xf0]  ;;  %v10561_v3 = vld [vmem:[#allocation2 + $0x7dc] sm:$0xf] }
 0x44c   :  { %v9726_v17 = vld [vmem:[#allocation2 + $0xf58] sm:$0xf]  ;;  %v9471_v29 = vor.u32 %v10741_v5, %v9470_v16  ;;  %5906 = vmatpush.bf16.msrb.mxu1 %v9215_v24  ;;  %v7904_v49 = vld [vmem:[#allocation2 + $0x138] sm:$0xf0] }
 0x44d   :  { %v10805_v54 = vld [vmem:[#allocation2 + $0xf74] sm:$0xf0] }
 0x44e   :  { %v8926_v46 = vld [vmem:[#allocation2 + $0x918] sm:$0xf]  ;;  %v9727_v31 = vor.u32 %v10805_v54, %v9726_v17  ;;  %5919 = vmatpush.bf16.msrb.mxu2 %v9471_v29  ;;  %v11375_v17 = vadd.f32 %v5679_v15, %v5667_v38  ;;  %v5642_v54 = vpop.f32.mrf.mxu0  ;;  %v10361_v15 = vld [vmem:[#allocation2 + $0x19c] sm:$0xf] }
 0x44f   :  { %v10605_v42 = vld [vmem:[#allocation2 + $0x934] sm:$0xf0]  ;;  %v8224_v54 = vld [vmem:[#allocation2 + $0x3b8] sm:$0xf0] }
 0x450   :  { %v9182_v30 = vld [vmem:[#allocation2 + $0xb18] sm:$0xf]  ;;  %v8927_v37 = vor.u32 %v10605_v42, %v8926_v46  ;;  %5932 = vmatpush.bf16.msrb.mxu3 %v9727_v31 }
 0x451   :  { %v10669_v33 = vld [vmem:[#allocation2 + $0xb34] sm:$0xf0] }
 0x452   :  { %v9438_v34 = vld [vmem:[#allocation2 + $0xd18] sm:$0xf]  ;;  %v9183_v43 = vor.u32 %v10669_v33, %v9182_v30  ;;  %5894 = vmatpush.bf16.msrb.mxu0 %v8927_v37  ;;  %v5655_v30 = vpop.f32.mrf.mxu1 }
 0x453   :  { %v10733_v35 = vld [vmem:[#allocation2 + $0xd34] sm:$0xf0] }
 0x454   :  { %v9694_v23 = vld [vmem:[#allocation2 + $0xf18] sm:$0xf]  ;;  %v9439_v44 = vor.u32 %v10733_v35, %v9438_v34  ;;  %5907 = vmatpush.bf16.msrb.mxu1 %v9183_v43 }
 0x455   :  { %v10797_v36 = vld [vmem:[#allocation2 + $0xf34] sm:$0xf0] }
 0x456   :  { %v8894_v45 = vld [vmem:[#allocation2 + $0x8d8] sm:$0xf]  ;;  %v9695_v8 = vor.u32 %v10797_v36, %v9694_v23  ;;  %5920 = vmatpush.bf16.msrb.mxu2 %v9439_v44 }
 0x457   :  { %v10597_v47 = vld [vmem:[#allocation2 + $0x8f4] sm:$0xf0] }
 0x458   :  { %v9150_v48 = vld [vmem:[#allocation2 + $0xad8] sm:$0xf]  ;;  %v8895_v60 = vor.u32 %v10597_v47, %v8894_v45  ;;  %5933 = vmatpush.bf16.msrb.mxu3 %v9695_v8 }
 0x459   :  { %v10661_v18 = vld [vmem:[#allocation2 + $0xaf4] sm:$0xf0] }
 0x45a   :  { %v9406_v53 = vld [vmem:[#allocation2 + $0xcd8] sm:$0xf]  ;;  %v9151_v50 = vor.u32 %v10661_v18, %v9150_v48  ;;  %5895 = vmatpush.bf16.msrb.mxu0 %v8895_v60 }
 0x45b   :  { %v10725_v57 = vld [vmem:[#allocation2 + $0xcf4] sm:$0xf0] }
 0x45c   :  { %v9662_v58 = vld [vmem:[#allocation2 + $0xed8] sm:$0xf]  ;;  %v9407_v61 = vor.u32 %v10725_v57, %v9406_v53  ;;  %5908 = vmatpush.bf16.msrb.mxu1 %v9151_v50  ;;  %v5681_v57 = vpop.f32.mrf.mxu3  ;;  %v8256_v50 = vld [vmem:[#allocation2 + $0x3f8] sm:$0xf0] }
 0x45d   :  { %v10789_v25 = vld [vmem:[#allocation2 + $0xef4] sm:$0xf0]  ;;  %v8416_v57 = vld [vmem:[#allocation2 + $0x538] sm:$0xf0] }
 0x45e   :  { %v8862_v63 = vld [vmem:[#allocation2 + $0x898] sm:$0xf]  ;;  %v9663_v4 = vor.u32 %v10789_v25, %v9662_v58  ;;  %5921 = vmatpush.bf16.msrb.mxu2 %v9407_v61  ;;  %v10369_v58 = vld [vmem:[#allocation2 + $0x1dc] sm:$0xf] }
 0x45f   :  { %v10589_v0 = vld [vmem:[#allocation2 + $0x8b4] sm:$0xf0]  ;;  %v8000_v25 = vld [vmem:[#allocation2 + $0x1f8] sm:$0xf0] }
 0x460   :  { %v9118_v1 = vld [vmem:[#allocation2 + $0xa98] sm:$0xf]  ;;  %v8863_v5 = vor.u32 %v10589_v0, %v8862_v63  ;;  %5934 = vmatpush.bf16.msrb.mxu3 %v9663_v4  ;;  %v10497_v61 = vld [vmem:[#allocation2 + $0x5dc] sm:$0xf] }
 0x461   :  { %v10653_v10 = vld [vmem:[#allocation2 + $0xab4] sm:$0xf0]  ;;  %v8512_v63 = vld [vmem:[#allocation2 + $0x5f8] sm:$0xf0] }
 0x462   :  { %v9374_v12 = vld [vmem:[#allocation2 + $0xc98] sm:$0xf]  ;;  %v9119_v56 = vor.u32 %v10653_v10, %v9118_v1  ;;  %5896 = vmatpush.bf16.msrb.mxu0 %v8863_v5  ;;  %v8768_v4 = vld [vmem:[#allocation2 + $0x7f8] sm:$0xf0]  ;;  %v8515_v38 = vor.u32 %v10497_v61, %v8512_v63 }
 0x463   :  { %v10717_v21 = vld [vmem:[#allocation2 + $0xcb4] sm:$0xf0]  ;;  %v8771_v5 = vor.u32 %v10561_v3, %v8768_v4  ;;  %v10337_v63 = vld [vmem:[#allocation2 + $0xdc] sm:$0xf]  ;;  %v5705_v4 = vpop.f32.mrf.mxu1 }
 0x464   :  { %v9630_v2 = vld [vmem:[#allocation2 + $0xe98] sm:$0xf]  ;;  %v9375_v46 = vor.u32 %v10717_v21, %v9374_v12  ;;  %5909 = vmatpush.bf16.msrb.mxu1 %v9119_v56  ;;  %v8003_v12 = vor.u32 %v10369_v58, %v8000_v25  ;;  %v8259_v21 = vor.u32 %v10433_v59, %v8256_v50  ;;  %v10489_v56 = vld [vmem:[#allocation2 + $0x59c] sm:$0xf] }
 0x465   :  { %v10781_v16 = vld [vmem:[#allocation2 + $0xeb4] sm:$0xf0]  ;;  %v10537_v58 = vld [vmem:[#allocation2 + $0x71c] sm:$0xf] }
 0x466   :  { %v8830_v24 = vld [vmem:[#allocation2 + $0x858] sm:$0xf]  ;;  %v9631_v51 = vor.u32 %v10781_v16, %v9630_v2  ;;  %5922 = vmatpush.bf16.msrb.mxu2 %v9375_v46  ;;  %v7968_v2 = vld [vmem:[#allocation2 + $0x1b8] sm:$0xf0] }
 0x467   :  { %v10581_v29 = vld [vmem:[#allocation2 + $0x874] sm:$0xf0]  ;;  %v10425_v16 = vld [vmem:[#allocation2 + $0x39c] sm:$0xf] }
 0x468   :  { %v9086_v42 = vld [vmem:[#allocation2 + $0xa58] sm:$0xf]  ;;  %v8831_v36 = vor.u32 %v10581_v29, %v8830_v24  ;;  %5935 = vmatpush.bf16.msrb.mxu3 %v9631_v51  ;;  %v8480_v46 = vld [vmem:[#allocation2 + $0x5b8] sm:$0xf0]  ;;  %v8227_v30 = vor.u32 %v10425_v16, %v8224_v54 }
 0x469   :  { %v10645_v31 = vld [vmem:[#allocation2 + $0xa74] sm:$0xf0]  ;;  %v10553_v24 = vld [vmem:[#allocation2 + $0x79c] sm:$0xf]  ;;  %v8483_v51 = vor.u32 %v10489_v56, %v8480_v46 }
 0x46a   :  { %v9342_v33 = vld [vmem:[#allocation2 + $0xc58] sm:$0xf]  ;;  %v9087_v43 = vor.u32 %v10645_v31, %v9086_v42  ;;  %5897 = vmatpush.bf16.msrb.mxu0 %v8831_v36  ;;  %v8736_v29 = vld [vmem:[#allocation2 + $0x7b8] sm:$0xf0]  ;;  %v7971_v42 = vor.u32 %v10361_v15, %v7968_v2 }
 0x46b   :  { %v10709_v34 = vld [vmem:[#allocation2 + $0xc74] sm:$0xf0]  ;;  %v10353_v31 = vld [vmem:[#allocation2 + $0x15c] sm:$0xf] }
 0x46c   :  { %v9598_v35 = vld [vmem:[#allocation2 + $0xe58] sm:$0xf]  ;;  %v9343_v44 = vor.u32 %v10709_v34, %v9342_v33  ;;  %5910 = vmatpush.bf16.msrb.mxu1 %v9087_v43  ;;  %v7936_v33 = vld [vmem:[#allocation2 + $0x178] sm:$0xf0] }
 0x46d   :  { %v10773_v23 = vld [vmem:[#allocation2 + $0xe74] sm:$0xf0]  ;;  %v10417_v34 = vld [vmem:[#allocation2 + $0x35c] sm:$0xf] }
 0x46e   :  { %v8798_v37 = vld [vmem:[#allocation2 + $0x818] sm:$0xf]  ;;  %v9599_v52 = vor.u32 %v10773_v23, %v9598_v35  ;;  %5923 = vmatpush.bf16.msrb.mxu2 %v9343_v44  ;;  %v8739_v35 = vor.u32 %v10553_v24, %v8736_v29  ;;  %v8192_v23 = vld [vmem:[#allocation2 + $0x378] sm:$0xf0]  ;;  %v7939_v44 = vor.u32 %v10353_v31, %v7936_v33 }
 0x46f   :  { %v10573_v40 = vld [vmem:[#allocation2 + $0x834] sm:$0xf0]  ;;  %v10481_v36 = vld [vmem:[#allocation2 + $0x55c] sm:$0xf] }
 0x470   :  { %v9054_v45 = vld [vmem:[#allocation2 + $0xa18] sm:$0xf]  ;;  %v8799_v60 = vor.u32 %v10573_v40, %v8798_v37  ;;  %5936 = vmatpush.bf16.msrb.mxu3 %v9599_v52  ;;  %v8448_v37 = vld [vmem:[#allocation2 + $0x578] sm:$0xf0] }
 0x471   :  { %v10637_v47 = vld [vmem:[#allocation2 + $0xa34] sm:$0xf0]  ;;  %v10545_v40 = vld [vmem:[#allocation2 + $0x75c] sm:$0xf] }
 0x472   :  { %v9310_v48 = vld [vmem:[#allocation2 + $0xc18] sm:$0xf]  ;;  %v9055_v0 = vor.u32 %v10637_v47, %v9054_v45  ;;  %5898 = vmatpush.bf16.msrb.mxu0 %v8799_v60  ;;  %v8704_v43 = vld [vmem:[#allocation2 + $0x778] sm:$0xf0]  ;;  %v8195_v45 = vor.u32 %v10417_v34, %v8192_v23  ;;  %v8451_v47 = vor.u32 %v10481_v36, %v8448_v37  ;;  %v5692_v60 = vpop.f32.mrf.mxu0  ;;  %v5731_v34 = vpop.f32.mrf.mxu3 }
 0x473   :  { %v10701_v8 = vld [vmem:[#allocation2 + $0xc34] sm:$0xf0]  ;;  %v10409_v52 = vld [vmem:[#allocation2 + $0x31c] sm:$0xf]  ;;  %v5693_v3 = vadd.f32 %v5692_v60, %v11375_v17 }
 0x474   :  { %v9566_v18 = vld [vmem:[#allocation2 + $0xe18] sm:$0xf]  ;;  %v9311_v1 = vor.u32 %v10701_v8, %v9310_v48  ;;  %5911 = vmatpush.bf16.msrb.mxu1 %v9055_v0  ;;  %v10345_v48 = vld [vmem:[#allocation2 + $0x11c] sm:$0xf]  ;;  %v8707_v8 = vor.u32 %v10545_v40, %v8704_v43 }
 0x475   :  { %v10765_v53 = vld [vmem:[#allocation2 + $0xe34] sm:$0xf0]  ;;  %5899 = vmatmul.bf16.vlgmr.msrb.gmra.mxu0 %v11280_v13  ;;  %v8672_v25 = vld [vmem:[#allocation2 + $0x738] sm:$0xf0]  ;;  %v7907_v59 = vor.u32 %v10345_v48, %v7904_v49  ;;  %v5706_v16 = vadd.f32 %v5705_v4, %v5693_v3 }
 0x476   :  { %v9567_v10 = vor.u32 %v10765_v53, %v9566_v18  ;;  %5924 = vmatpush.bf16.msrb.mxu2 %v9311_v1  ;;  %5943 = vmatpush.bf16.msra.mxu0 %v8003_v12  ;;  %v8160_v18 = vld [vmem:[#allocation2 + $0x338] sm:$0xf0] }
 0x477   :  { %5912 = vmatmul.bf16.vlgmr.msrb.gmra.mxu1 %v11290_v41  ;;  %v10473_v53 = vld [vmem:[#allocation2 + $0x51c] sm:$0xf]  ;;  %v8163_v50 = vor.u32 %v10409_v52, %v8160_v18  ;;  %v5707_v52 = vpop.f32.mrf.mxu1 }
 0x478   :  { %5937 = vmatpush.bf16.msrb.mxu3 %v9567_v10  ;;  %5956 = vmatpush.bf16.msra.mxu1 %v8259_v21  ;;  %v8419_v61 = vor.u32 %v10473_v53, %v8416_v57  ;;  %v7872_v0 = vld [vmem:[#allocation2 + $0xf8] sm:$0xf0]  ;;  %v8675_v10 = vor.u32 %v10537_v58, %v8672_v25 }
 0x479   :  { %5925 = vmatmul.bf16.vlgmr.msrb.gmra.mxu2 %v11275_v6  ;;  %v10401_v1 = vld [vmem:[#allocation2 + $0x2dc] sm:$0xf] }
 0x47a   :  { %5969 = vmatpush.bf16.msra.mxu2 %v8515_v38  ;;  %5944 = vmatpush.bf16.msra.mxu0 %v7971_v42  ;;  %v8128_v12 = vld [vmem:[#allocation2 + $0x2f8] sm:$0xf0]  ;;  %v5718_v42 = vpop.f32.mrf.mxu2  ;;  %v5694_v43 = vpop.f32.mrf.mxu0 }
 0x47b   :  { %5938 = vmatmul.bf16.vlgmr.msrb.gmra.mxu3 %v11285_v14  ;;  %v10465_v21 = vld [vmem:[#allocation2 + $0x4dc] sm:$0xf]  ;;  %v8131_v54 = vor.u32 %v10401_v1, %v8128_v12  ;;  %v5719_v33 = vadd.f32 %v5718_v42, %v5706_v16 }
 0x47c   :  { %5982 = vmatpush.bf16.msra.mxu3 %v8771_v5  ;;  %5957 = vmatpush.bf16.msra.mxu1 %v8227_v30  ;;  %v8384_v38 = vld [vmem:[#allocation2 + $0x4f8] sm:$0xf0]  ;;  %v7875_v5 = vor.u32 %v10337_v63, %v7872_v0 }
 0x47d   :  { %v10529_v15 = vld [vmem:[#allocation2 + $0x6dc] sm:$0xf]  ;;  %v8387_v56 = vor.u32 %v10465_v21, %v8384_v38  ;;  %v11382_v37 = vadd.f32 %v5731_v34, %v5719_v33 }
 0x47e   :  { %5970 = vmatpush.bf16.msra.mxu2 %v8483_v51  ;;  %5945 = vmatpush.bf16.msra.mxu0 %v7939_v44  ;;  %v8640_v2 = vld [vmem:[#allocation2 + $0x6f8] sm:$0xf0] }
 0x47f   :  { %v10329_v46 = vld [vmem:[#allocation2 + $0x9c] sm:$0xf]  ;;  %v8643_v17 = vor.u32 %v10529_v15, %v8640_v2  ;;  %v6051_v18 = vmax.f32 %v11382_v37, 0.0  ;;  %v5733_v15 = vpop.f32.mrf.mxu3 }
 0x480   :  { %5983 = vmatpush.bf16.msra.mxu3 %v8739_v35  ;;  %5958 = vmatpush.bf16.msra.mxu1 %v8195_v45  ;;  %v7840_v24 = vld [vmem:[#allocation2 + $0xb8] sm:$0xf0] }
 0x481   :  { %v10393_v29 = vld [vmem:[#allocation2 + $0x29c] sm:$0xf]  ;;  %v7843_v36 = vor.u32 %v10329_v46, %v7840_v24 }
 0x482   :  { %5971 = vmatpush.bf16.msra.mxu2 %v8451_v47  ;;  %5946 = vmatpush.bf16.msra.mxu0 %v7907_v59  ;;  %v8096_v30 = vld [vmem:[#allocation2 + $0x2b8] sm:$0xf0]  ;;  %v5720_v4 = vpop.f32.mrf.mxu2 }
 0x483   :  { %v10457_v51 = vld [vmem:[#allocation2 + $0x49c] sm:$0xf]  ;;  %v8099_v44 = vor.u32 %v10393_v29, %v8096_v30 }
 0x484   :  { %5984 = vmatpush.bf16.msra.mxu3 %v8707_v8  ;;  %5959 = vmatpush.bf16.msra.mxu1 %v8163_v50  ;;  %v8352_v31 = vld [vmem:[#allocation2 + $0x4b8] sm:$0xf0] }
 0x485   :  { %v10521_v35 = vld [vmem:[#allocation2 + $0x69c] sm:$0xf]  ;;  %v8355_v45 = vor.u32 %v10457_v51, %v8352_v31 }
 0x486   :  { %5972 = vmatpush.bf16.msra.mxu2 %v8419_v61  ;;  %v8608_v23 = vld [vmem:[#allocation2 + $0x6b8] sm:$0xf0]  ;;  %5947 = vmatpush.bf16.msra.mxu0 %v7875_v5 }
 0x487   :  { %v10321_v40 = vld [vmem:[#allocation2 + $0x5c] sm:$0xf]  ;;  %v8611_v8 = vor.u32 %v10521_v35, %v8608_v23 }
 0x488   :  { %5985 = vmatpush.bf16.msra.mxu3 %v8675_v10  ;;  %5960 = vmatpush.bf16.msra.mxu1 %v8131_v54  ;;  %v7808_v47 = vld [vmem:[#allocation2 + $0x78] sm:$0xf0] }
 0x489   :  { %v10385_v48 = vld [vmem:[#allocation2 + $0x25c] sm:$0xf]  ;;  %v7811_v59 = vor.u32 %v10321_v40, %v7808_v47 }
 0x48a   :  { %5973 = vmatpush.bf16.msra.mxu2 %v8387_v56  ;;  %v8064_v49 = vld [vmem:[#allocation2 + $0x278] sm:$0xf0]  ;;  %5948 = vmatpush.bf16.msra.mxu0 %v7843_v36 }
 0x48b   :  { %v10449_v53 = vld [vmem:[#allocation2 + $0x45c] sm:$0xf]  ;;  %v8067_v61 = vor.u32 %v10385_v48, %v8064_v49 }
 0x48c   :  { %5986 = vmatpush.bf16.msra.mxu3 %v8643_v17  ;;  %v8320_v57 = vld [vmem:[#allocation2 + $0x478] sm:$0xf0]  ;;  %5961 = vmatpush.bf16.msra.mxu1 %v8099_v44 }
 0x48d   :  { %v10513_v58 = vld [vmem:[#allocation2 + $0x65c] sm:$0xf]  ;;  %v8323_v63 = vor.u32 %v10449_v53, %v8320_v57 }
 0x48e   :  { %v8576_v25 = vld [vmem:[#allocation2 + $0x678] sm:$0xf0]  ;;  %5974 = vmatpush.bf16.msra.mxu2 %v8355_v45  ;;  %5949 = vmatpush.bf16.msra.mxu0 %v7811_v59 }
 0x48f   :  { %v10313_v60 = vld [vmem:[#allocation2 + $0x1c] sm:$0xf]  ;;  %v8579_v10 = vor.u32 %v10513_v58, %v8576_v25 }
 0x490   :  { %v7776_v50 = vld [vmem:[#allocation2 + $0x38] sm:$0xf0]  ;;  %5987 = vmatpush.bf16.msra.mxu3 %v8611_v8  ;;  %5962 = vmatpush.bf16.msra.mxu1 %v8067_v61 }
 0x491   :  { %v10377_v0 = vld [vmem:[#allocation2 + $0x21c] sm:$0xf]  ;;  %v7779_v54 = vor.u32 %v10313_v60, %v7776_v50 }
 0x492   :  { %v8032_v1 = vld [vmem:[#allocation2 + $0x238] sm:$0xf0]  ;;  %5975 = vmatpush.bf16.msra.mxu2 %v8323_v63 }
 0x493   :  { %v10441_v3 = vld [vmem:[#allocation2 + $0x41c] sm:$0xf]  ;;  %v8035_v29 = vor.u32 %v10377_v0, %v8032_v1  ;;  %5950 = vmatpush.bf16.msra.mxu0 %v7779_v54 }
 0x494   :  { %v8288_v12 = vld [vmem:[#allocation2 + $0x438] sm:$0xf0]  ;;  %5988 = vmatpush.bf16.msra.mxu3 %v8579_v10 }
 0x495   :  { %v10505_v21 = vld [vmem:[#allocation2 + $0x61c] sm:$0xf]  ;;  %v8291_v42 = vor.u32 %v10441_v3, %v8288_v12  ;;  %5963 = vmatpush.bf16.msra.mxu1 %v8035_v29  ;;  %v2644_v12 = vperm.slane %v11372_v32, 5 }
 0x496   :  { %v8544_v38 = vld [vmem:[#allocation2 + $0x638] sm:$0xf0]  ;;  %5951 = vmatmul.bf16.vlgmr.msra.gmra.mxu0 %v11256_v26 }
 0x497   :  { %v10625_v2 = vld [vmem:[#allocation2 + $0x9dc] sm:$0xf]  ;;  %v8547_v51 = vor.u32 %v10505_v21, %v8544_v38  ;;  %5976 = vmatpush.bf16.msra.mxu2 %v8291_v42  ;;  %v5757_v42 = vpop.f32.mrf.mxu1 }
 0x498   :  { %v9024_v16 = vld [vmem:[#allocation2 + $0x9f8] sm:$0xf0]  ;;  %5964 = vmatmul.bf16.vlgmr.msra.gmra.mxu1 %v11266_v22 }
 0x499   :  { %v10689_v5 = vld [vmem:[#allocation2 + $0xbdc] sm:$0xf]  ;;  %v9027_v31 = vor.u32 %v10625_v2, %v9024_v16  ;;  %5989 = vmatpush.bf16.msra.mxu3 %v8547_v51 }
 0x49a   :  { %v9280_v56 = vld [vmem:[#allocation2 + $0xbf8] sm:$0xf0]  ;;  %5977 = vmatmul.bf16.vlgmr.msra.gmra.mxu2 %v11251_v19 }
 0x49b   :  { %v10753_v46 = vld [vmem:[#allocation2 + $0xddc] sm:$0xf]  ;;  %v9283_v33 = vor.u32 %v10689_v5, %v9280_v56  ;;  %5995 = vmatpush.bf16.msrb.mxu0 %v9027_v31  ;;  %v5744_v5 = vpop.f32.mrf.mxu0 }
 0x49c   :  { %v9536_v24 = vld [vmem:[#allocation2 + $0xdf8] sm:$0xf0]  ;;  %5990 = vmatmul.bf16.vlgmr.msra.gmra.mxu3 %v11261_v28  ;;  %v5745_v29 = vadd.f32 %v5744_v5, %v2644_v12 }
 0x49d   :  { %v10817_v17 = vld [vmem:[#allocation2 + $0xfdc] sm:$0xf]  ;;  %v9539_v34 = vor.u32 %v10753_v46, %v9536_v24  ;;  %6008 = vmatpush.bf16.msrb.mxu1 %v9283_v33 }
 0x49e   :  { %v9792_v30 = vld [vmem:[#allocation2 + $0xff8] sm:$0xf0] }
 0x49f   :  { %v10617_v35 = vld [vmem:[#allocation2 + $0x99c] sm:$0xf]  ;;  %v9795_v40 = vor.u32 %v10817_v17, %v9792_v30  ;;  %6021 = vmatpush.bf16.msrb.mxu2 %v9539_v34 }
 0x4a0   :  { %v8992_v23 = vld [vmem:[#allocation2 + $0x9b8] sm:$0xf0] }
 0x4a1   :  { %v10681_v36 = vld [vmem:[#allocation2 + $0xb9c] sm:$0xf]  ;;  %v8995_v49 = vor.u32 %v10617_v35, %v8992_v23  ;;  %6034 = vmatpush.bf16.msrb.mxu3 %v9795_v40  ;;  %v5758_v35 = vadd.f32 %v5757_v42, %v5745_v29 }
 0x4a2   :  { %v9248_v43 = vld [vmem:[#allocation2 + $0xbb8] sm:$0xf0] }
 0x4a3   :  { %v10745_v44 = vld [vmem:[#allocation2 + $0xd9c] sm:$0xf]  ;;  %v9251_v52 = vor.u32 %v10681_v36, %v9248_v43  ;;  %5996 = vmatpush.bf16.msrb.mxu0 %v8995_v49 }
 0x4a4   :  { %v9504_v45 = vld [vmem:[#allocation2 + $0xdb8] sm:$0xf0] }
 0x4a5   :  { %v10809_v47 = vld [vmem:[#allocation2 + $0xf9c] sm:$0xf]  ;;  %v9507_v8 = vor.u32 %v10745_v44, %v9504_v45  ;;  %6009 = vmatpush.bf16.msrb.mxu1 %v9251_v52 }
 0x4a6   :  { %v9760_v48 = vld [vmem:[#allocation2 + $0xfb8] sm:$0xf0] }
 0x4a7   :  { %v10609_v53 = vld [vmem:[#allocation2 + $0x95c] sm:$0xf]  ;;  %v9763_v25 = vor.u32 %v10809_v47, %v9760_v48  ;;  %6022 = vmatpush.bf16.msrb.mxu2 %v9507_v8  ;;  %v5770_v47 = vpop.f32.mrf.mxu2 }
 0x4a8   :  { %v8960_v57 = vld [vmem:[#allocation2 + $0x978] sm:$0xf0] }
 0x4a9   :  { %v10673_v58 = vld [vmem:[#allocation2 + $0xb5c] sm:$0xf]  ;;  %v8963_v0 = vor.u32 %v10609_v53, %v8960_v57  ;;  %6035 = vmatpush.bf16.msrb.mxu3 %v9763_v25  ;;  %v5771_v53 = vadd.f32 %v5770_v47, %v5758_v35  ;;  %v5783_v57 = vpop.f32.mrf.mxu3 }
 0x4aa   :  { %v9216_v59 = vld [vmem:[#allocation2 + $0xb78] sm:$0xf0] }
 0x4ab   :  { %v10737_v60 = vld [vmem:[#allocation2 + $0xd5c] sm:$0xf]  ;;  %v9219_v3 = vor.u32 %v10673_v58, %v9216_v59  ;;  %5997 = vmatpush.bf16.msrb.mxu0 %v8963_v0 }
 0x4ac   :  { %v9472_v50 = vld [vmem:[#allocation2 + $0xd78] sm:$0xf0] }
 0x4ad   :  { %v10801_v61 = vld [vmem:[#allocation2 + $0xf5c] sm:$0xf]  ;;  %v9475_v4 = vor.u32 %v10737_v60, %v9472_v50  ;;  %6010 = vmatpush.bf16.msrb.mxu1 %v9219_v3  ;;  %v5784_v60 = vadd.f32 %v5783_v57, %v5771_v53  ;;  %v5746_v50 = vpop.f32.mrf.mxu0 }
 0x4ae   :  { %v9728_v63 = vld [vmem:[#allocation2 + $0xf78] sm:$0xf0] }
 0x4af   :  { %v10601_v1 = vld [vmem:[#allocation2 + $0x91c] sm:$0xf]  ;;  %v9731_v21 = vor.u32 %v10801_v61, %v9728_v63  ;;  %6023 = vmatpush.bf16.msrb.mxu2 %v9475_v4  ;;  %v5759_v4 = vpop.f32.mrf.mxu1 }
 0x4b0   :  { %v8928_v10 = vld [vmem:[#allocation2 + $0x938] sm:$0xf0] }
 0x4b1   :  { %v10665_v19 = vld [vmem:[#allocation2 + $0xb1c] sm:$0xf]  ;;  %v8931_v16 = vor.u32 %v10601_v1, %v8928_v10  ;;  %6036 = vmatpush.bf16.msrb.mxu3 %v9731_v21  ;;  %v5785_v42 = vpop.f32.mrf.mxu3 }
 0x4b2   :  { %v9184_v28 = vld [vmem:[#allocation2 + $0xb38] sm:$0xf0] }
 0x4b3   :  { %v10729_v38 = vld [vmem:[#allocation2 + $0xd1c] sm:$0xf]  ;;  %v9187_v22 = vor.u32 %v10665_v19, %v9184_v28  ;;  %5998 = vmatpush.bf16.msrb.mxu0 %v8931_v16 }
 0x4b4   :  { %v9440_v15 = vld [vmem:[#allocation2 + $0xd38] sm:$0xf0] }
 0x4b5   :  { %v10793_v2 = vld [vmem:[#allocation2 + $0xf1c] sm:$0xf]  ;;  %v9443_v54 = vor.u32 %v10729_v38, %v9440_v15  ;;  %6011 = vmatpush.bf16.msrb.mxu1 %v9187_v22  ;;  %v5796_v35 = vpop.f32.mrf.mxu0 }
 0x4b6   :  { %v9696_v26 = vld [vmem:[#allocation2 + $0xf38] sm:$0xf0] }
 0x4b7   :  { %v10593_v56 = vld [vmem:[#allocation2 + $0x8dc] sm:$0xf]  ;;  %v9699_v17 = vor.u32 %v10793_v2, %v9696_v26  ;;  %6024 = vmatpush.bf16.msrb.mxu2 %v9443_v54  ;;  %v5772_v54 = vpop.f32.mrf.mxu2 }
 0x4b8   :  { %v8896_v46 = vld [vmem:[#allocation2 + $0x8f8] sm:$0xf0] }
 0x4b9   :  { %v10657_v24 = vld [vmem:[#allocation2 + $0xadc] sm:$0xf]  ;;  %v8899_v23 = vor.u32 %v10593_v56, %v8896_v46  ;;  %6037 = vmatpush.bf16.msrb.mxu3 %v9699_v17 }
 0x4ba   :  { %v9152_v30 = vld [vmem:[#allocation2 + $0xaf8] sm:$0xf0] }
 0x4bb   :  { %v10721_v51 = vld [vmem:[#allocation2 + $0xcdc] sm:$0xf]  ;;  %v9155_v36 = vor.u32 %v10657_v24, %v9152_v30  ;;  %5999 = vmatpush.bf16.msrb.mxu0 %v8899_v23  ;;  %v5797_v23 = vadd.f32 %v5796_v35, %v5784_v60 }
 0x4bc   :  { %v9408_v31 = vld [vmem:[#allocation2 + $0xcf8] sm:$0xf0] }
 0x4bd   :  { %v10785_v33 = vld [vmem:[#allocation2 + $0xedc] sm:$0xf]  ;;  %v9411_v40 = vor.u32 %v10721_v51, %v9408_v31  ;;  %6012 = vmatpush.bf16.msrb.mxu1 %v9155_v36  ;;  %v5809_v36 = vpop.f32.mrf.mxu1 }
 0x4be   :  { %v9664_v34 = vld [vmem:[#allocation2 + $0xef8] sm:$0xf0] }
 0x4bf   :  { %v10585_v43 = vld [vmem:[#allocation2 + $0x89c] sm:$0xf]  ;;  %v9667_v48 = vor.u32 %v10785_v33, %v9664_v34  ;;  %6025 = vmatpush.bf16.msrb.mxu2 %v9411_v40  ;;  %v5810_v40 = vadd.f32 %v5809_v36, %v5797_v23 }
 0x4c0   :  { %v8864_v44 = vld [vmem:[#allocation2 + $0x8b8] sm:$0xf0] }
 0x4c1   :  { %v10649_v45 = vld [vmem:[#allocation2 + $0xa9c] sm:$0xf]  ;;  %v8867_v59 = vor.u32 %v10585_v43, %v8864_v44  ;;  %6038 = vmatpush.bf16.msrb.mxu3 %v9667_v48  ;;  %v5822_v43 = vpop.f32.mrf.mxu2  ;;  %v5798_v48 = vpop.f32.mrf.mxu0 }
 0x4c2   :  { %v9120_v49 = vld [vmem:[#allocation2 + $0xab8] sm:$0xf0]  ;;  %v5823_v44 = vadd.f32 %v5822_v43, %v5810_v40 }
 0x4c3   :  { %v10713_v52 = vld [vmem:[#allocation2 + $0xc9c] sm:$0xf]  ;;  %v9123_v61 = vor.u32 %v10649_v45, %v9120_v49  ;;  %6000 = vmatpush.bf16.msrb.mxu0 %v8867_v59  ;;  %v5835_v45 = vpop.f32.mrf.mxu3 }
 0x4c4   :  { %v9376_v8 = vld [vmem:[#allocation2 + $0xcb8] sm:$0xf0]  ;;  %v11394_v47 = vadd.f32 %v5835_v45, %v5823_v44 }
 0x4c5   :  { %v10777_v58 = vld [vmem:[#allocation2 + $0xe9c] sm:$0xf]  ;;  %v9379_v63 = vor.u32 %v10713_v52, %v9376_v8  ;;  %6013 = vmatpush.bf16.msrb.mxu1 %v9123_v61  ;;  %v5811_v49 = vpop.f32.mrf.mxu1 }
 0x4c6   :  { %v9632_v25 = vld [vmem:[#allocation2 + $0xeb8] sm:$0xf0]  ;;  %v6052_v52 = vmax.f32 %v11394_v47, 0.0 }
 0x4c7   :  { %v10577_v0 = vld [vmem:[#allocation2 + $0x85c] sm:$0xf]  ;;  %v9635_v10 = vor.u32 %v10777_v58, %v9632_v25  ;;  %6026 = vmatpush.bf16.msrb.mxu2 %v9379_v63 }
 0x4c8   :  { %v8832_v1 = vld [vmem:[#allocation2 + $0x878] sm:$0xf0] }
 0x4c9   :  { %v10641_v3 = vld [vmem:[#allocation2 + $0xa5c] sm:$0xf]  ;;  %v8835_v15 = vor.u32 %v10577_v0, %v8832_v1  ;;  %6039 = vmatpush.bf16.msrb.mxu3 %v9635_v10 }
 0x4ca   :  { %v9088_v19 = vld [vmem:[#allocation2 + $0xa78] sm:$0xf0] }
 0x4cb   :  { %v10705_v12 = vld [vmem:[#allocation2 + $0xc5c] sm:$0xf]  ;;  %v9091_v2 = vor.u32 %v10641_v3, %v9088_v19  ;;  %6001 = vmatpush.bf16.msrb.mxu0 %v8835_v15  ;;  %v5837_v8 = vpop.f32.mrf.mxu3 }
 0x4cc   :  { %v9344_v21 = vld [vmem:[#allocation2 + $0xc78] sm:$0xf0] }
 0x4cd   :  { %v10769_v28 = vld [vmem:[#allocation2 + $0xe5c] sm:$0xf]  ;;  %v9347_v26 = vor.u32 %v10705_v12, %v9344_v21  ;;  %6014 = vmatpush.bf16.msrb.mxu1 %v9091_v2 }
 0x4ce   :  { %v9600_v38 = vld [vmem:[#allocation2 + $0xe78] sm:$0xf0] }
 0x4cf   :  { %v10569_v16 = vld [vmem:[#allocation2 + $0x81c] sm:$0xf]  ;;  %v9603_v56 = vor.u32 %v10769_v28, %v9600_v38  ;;  %6027 = vmatpush.bf16.msrb.mxu2 %v9347_v26 }
 0x4d0   :  { %v8800_v5 = vld [vmem:[#allocation2 + $0x838] sm:$0xf0] }
 0x4d1   :  { %v10633_v22 = vld [vmem:[#allocation2 + $0xa1c] sm:$0xf]  ;;  %v8803_v51 = vor.u32 %v10569_v16, %v8800_v5  ;;  %6040 = vmatpush.bf16.msrb.mxu3 %v9603_v56 }
 0x4d2   :  { %v9056_v46 = vld [vmem:[#allocation2 + $0xa38] sm:$0xf0] }
 0x4d3   :  { %v10697_v24 = vld [vmem:[#allocation2 + $0xc1c] sm:$0xf]  ;;  %v9059_v31 = vor.u32 %v10633_v22, %v9056_v46  ;;  %6002 = vmatpush.bf16.msrb.mxu0 %v8803_v51  ;;  %v5887_v59 = vpop.f32.mrf.mxu3 }
 0x4d4   :  { %v9312_v29 = vld [vmem:[#allocation2 + $0xc38] sm:$0xf0] }
 0x4d5   :  { %v10761_v17 = vld [vmem:[#allocation2 + $0xe1c] sm:$0xf]  ;;  %v9315_v33 = vor.u32 %v10697_v24, %v9312_v29  ;;  %6015 = vmatpush.bf16.msrb.mxu1 %v9059_v31  ;;  %v2646_v29 = vperm.slane %v11372_v32, 7 }
 0x4d6   :  { %v9568_v30 = vld [vmem:[#allocation2 + $0xe38] sm:$0xf0]  ;;  %6003 = vmatmul.bf16.vlgmr.msrb.gmra.mxu0 %v11280_v13  ;;  %v5824_v13 = vpop.f32.mrf.mxu2 }
 0x4d7   :  { %v9571_v34 = vor.u32 %v10761_v17, %v9568_v30  ;;  %6028 = vmatpush.bf16.msrb.mxu2 %v9315_v33 }
 0x4d8   :  { %6016 = vmatmul.bf16.vlgmr.msrb.gmra.mxu1 %v11290_v41  ;;  %v2645_v41 = vperm.slane %v11372_v32, 6 }
 0x4d9   :  { %6041 = vmatpush.bf16.msrb.mxu3 %v9571_v34 }
 0x4da   :  { %6029 = vmatmul.bf16.vlgmr.msrb.gmra.mxu2 %v11275_v6  ;;  %v5848_v6 = vpop.f32.mrf.mxu0 }
 0x4db   :  { %v5849_v53 = vadd.f32 %v5848_v6, %v2645_v41  ;;  %v5889_v0 = vpop.f32.mrf.mxu3 }
 0x4dc   :  { %6042 = vmatmul.bf16.vlgmr.msrb.gmra.mxu3 %v11285_v14  ;;  %v5861_v14 = vpop.f32.mrf.mxu1 }
 0x4dd   :  { %v5862_v57 = vadd.f32 %v5861_v14, %v5849_v53 }
 0x4de   :  { %v5874_v58 = vpop.f32.mrf.mxu2 }
 0x4df   :  { %v5875_v25 = vadd.f32 %v5874_v58, %v5862_v57 }
 0x4e1   :  { %v5888_v60 = vadd.f32 %v5887_v59, %v5875_v25 }
 0x4e2   :  { %v5850_v50 = vpop.f32.mrf.mxu0 }
 0x4e4   :  { %v5863_v61 = vpop.f32.mrf.mxu1 }
 0x4e6   :  { %v5876_v63 = vpop.f32.mrf.mxu2 }
 0x4f2   :  { %v5900_v1 = vpop.f32.mrf.mxu0 }
 0x4f3   :  { %v5901_v3 = vadd.f32 %v5900_v1, %v5888_v60 }
 0x4f4   :  { %v5913_v4 = vpop.f32.mrf.mxu1 }
 0x4f5   :  { %v5914_v10 = vadd.f32 %v5913_v4, %v5901_v3 }
 0x4fa   :  { %v5902_v38 = vpop.f32.mrf.mxu0 }
 0x4fc   :  { %v5926_v19 = vpop.f32.mrf.mxu2  ;;  %v5915_v15 = vpop.f32.mrf.mxu1 }
 0x4fd   :  { %v5927_v12 = vadd.f32 %v5926_v19, %v5914_v10 }
 0x4fe   :  { %v5939_v21 = vpop.f32.mrf.mxu3 }
 0x4ff   :  { %v11398_v28 = vadd.f32 %v5939_v21, %v5927_v12 }
 0x501   :  { %v6053_v2 = vmax.f32 %v11398_v28, 0.0 }
 0x504   :  { %v5928_v26 = vpop.f32.mrf.mxu2 }
 0x506   :  { %v5941_v16 = vpop.f32.mrf.mxu3 }
 0x513   :  { %v5952_v5 = vpop.f32.mrf.mxu0 }
 0x514   :  { %v5953_v30 = vadd.f32 %v5952_v5, %v2646_v29 }
 0x515   :  { %v5965_v22 = vpop.f32.mrf.mxu1 }
 0x516   :  { %v5966_v51 = vadd.f32 %v5965_v22, %v5953_v30 }
 0x51b   :  { %v5954_v46 = vpop.f32.mrf.mxu0 }
 0x51d   :  { %v5978_v54 = vpop.f32.mrf.mxu2  ;;  %v5967_v24 = vpop.f32.mrf.mxu1 }
 0x51e   :  { %v5979_v31 = vadd.f32 %v5978_v54, %v5966_v51 }
 0x51f   :  { %v5991_v56 = vpop.f32.mrf.mxu3 }
 0x520   :  { %v5992_v33 = vadd.f32 %v5991_v56, %v5979_v31 }
 0x525   :  { %v5980_v42 = vpop.f32.mrf.mxu2 }
 0x527   :  { %v5993_v17 = vpop.f32.mrf.mxu3 }
 0x553   :  { %v6004_v34 = vpop.f32.mrf.mxu0 }
 0x554   :  { %v6005_v23 = vadd.f32 %v6004_v34, %v5992_v33 }
 0x555   :  { %v6017_v35 = vpop.f32.mrf.mxu1 }
 0x556   :  { %v6018_v36 = vadd.f32 %v6017_v35, %v6005_v23 }
 0x55b   :  { %v6006_v45 = vpop.f32.mrf.mxu0 }
 0x55d   :  { %v6030_v40 = vpop.f32.mrf.mxu2  ;;  %v6019_v48 = vpop.f32.mrf.mxu1 }
 0x55e   :  { %v6031_v43 = vadd.f32 %v6030_v40, %v6018_v36 }
 0x55f   :  { %v6043_v44 = vpop.f32.mrf.mxu3 }
 0x560   :  { %v11402_v49 = vadd.f32 %v6043_v44, %v6031_v43 }
 0x562   :  { %v6054_v13 = vmax.f32 %v11402_v49, 0.0 }
 0x565   :  { %v6032_v32 = vpop.f32.mrf.mxu2 }
 0x567   :  { %v6045_v8 = vpop.f32.mrf.mxu3 }
 0x568   :  { %11099 = dma.done.wait [#allocation4 + $0x1], 8192 }
 0x569   :  { %11100 = vsyncadd [#allocation4 + $0x1], 4294959104  ;;  %v10829_v41 = vld [vmem:[#allocation3 + $0x38] sm:$0xff]  ;;  %v10828_v57 = vld [vmem:[#allocation3 + $0x30] sm:$0xff]  ;;  %v6065_v33 = vpack.c.bf16 %v6049_v9, %v6049_v9  ;;  %v6066_v34 = vpack.c.bf16 %v6050_v27, %v6050_v27  ;;  %v6063_v35 = vpack.c.bf16 %v6047_v55, %v6047_v55  ;;  %v6064_v23 = vpack.c.bf16 %v6048_v11, %v6048_v11  ;;  %s11112_s5 = smov [#allocation14]   ;;  %s6699_s12 = sshll.u32 %s11439_s7, 4  ;;  %s6700_s12 = int_to_ptr.hbm [resolvable:$true] %s6699_s12 }
 0x56a   :  { %v10837_v6 = vld [vmem:[#allocation3 + $0x78] sm:$0xff]  ;;  %6587 = vmatpush.bf16.msra.mxu0 %v10829_v41  ;;  %v10836_v58 = vld [vmem:[#allocation3 + $0x70] sm:$0xff]  ;;  %v10827_v60 = vld [vmem:[#allocation3 + $0x28] sm:$0xff]  ;;  %s6697_s6 = sshll.u32 %s11112_s5, 4  ;;  %s6698_s6 = int_to_ptr.vmem [resolvable:$true] %s6697_s6 }
 0x56b   :  { %v10845_v53 = vld [vmem:[#allocation3 + $0xb8] sm:$0xff]  ;;  %6600 = vmatpush.bf16.msra.mxu1 %v10837_v6  ;;  %v10844_v25 = vld [vmem:[#allocation3 + $0xb0] sm:$0xff]  ;;  %v10835_v50 = vld [vmem:[#allocation3 + $0x68] sm:$0xff] }
 0x56c   :  { %v10853_v14 = vld [vmem:[#allocation3 + $0xf8] sm:$0xff]  ;;  %6613 = vmatpush.bf16.msra.mxu2 %v10845_v53  ;;  %v10852_v59 = vld [vmem:[#allocation3 + $0xf0] sm:$0xff]  ;;  %v10843_v61 = vld [vmem:[#allocation3 + $0xa8] sm:$0xff] }
 0x56d   :  { %6626 = vmatpush.bf16.msra.mxu3 %v10853_v14  ;;  %v10851_v63 = vld [vmem:[#allocation3 + $0xe8] sm:$0xff]  ;;  %v10826_v0 = vld [vmem:[#allocation3 + $0x20] sm:$0xff]  ;;  %v10825_v10 = vld [vmem:[#allocation3 + $0x18] sm:$0xff] }
 0x56e   :  { %6588 = vmatpush.bf16.msra.mxu0 %v10828_v57  ;;  %v10834_v1 = vld [vmem:[#allocation3 + $0x60] sm:$0xff]  ;;  %v10833_v19 = vld [vmem:[#allocation3 + $0x58] sm:$0xff]  ;;  %v10824_v38 = vld [vmem:[#allocation3 + $0x10] sm:$0xff] }
 0x56f   :  { %6601 = vmatpush.bf16.msra.mxu1 %v10836_v58  ;;  %v10842_v3 = vld [vmem:[#allocation3 + $0xa0] sm:$0xff]  ;;  %v10841_v12 = vld [vmem:[#allocation3 + $0x98] sm:$0xff]  ;;  %v10832_v15 = vld [vmem:[#allocation3 + $0x50] sm:$0xff] }
 0x570   :  { %6614 = vmatpush.bf16.msra.mxu2 %v10844_v25  ;;  %v10850_v4 = vld [vmem:[#allocation3 + $0xe0] sm:$0xff]  ;;  %v10849_v21 = vld [vmem:[#allocation3 + $0xd8] sm:$0xff]  ;;  %v10840_v26 = vld [vmem:[#allocation3 + $0x90] sm:$0xff] }
 0x571   :  { %6627 = vmatpush.bf16.msra.mxu3 %v10852_v59  ;;  %v10848_v16 = vld [vmem:[#allocation3 + $0xd0] sm:$0xff]  ;;  %v10823_v5 = vld [vmem:[#allocation3 + $0x8] sm:$0xff]  ;;  %v10822_v46 = vld [vmem:[#allocation3] sm:$0xff] }
 0x572   :  { %6589 = vmatpush.bf16.msra.mxu0 %v10827_v60  ;;  %v10831_v22 = vld [vmem:[#allocation3 + $0x48] sm:$0xff]  ;;  %v10830_v24 = vld [vmem:[#allocation3 + $0x40] sm:$0xff]  ;;  %v10861_v17 = vld [vmem:[#allocation3 + $0x138] sm:$0xff] }
 0x573   :  { %6602 = vmatpush.bf16.msra.mxu1 %v10835_v50  ;;  %v10839_v54 = vld [vmem:[#allocation3 + $0x88] sm:$0xff]  ;;  %v10838_v29 = vld [vmem:[#allocation3 + $0x80] sm:$0xff]  ;;  %v10869_v30 = vld [vmem:[#allocation3 + $0x178] sm:$0xff] }
 0x574   :  { %6615 = vmatpush.bf16.msra.mxu2 %v10843_v61  ;;  %v10847_v56 = vld [vmem:[#allocation3 + $0xc8] sm:$0xff]  ;;  %v10846_v42 = vld [vmem:[#allocation3 + $0xc0] sm:$0xff]  ;;  %v10877_v51 = vld [vmem:[#allocation3 + $0x1b8] sm:$0xff] }
 0x575   :  { %6628 = vmatpush.bf16.msra.mxu3 %v10851_v63  ;;  %v10885_v31 = vld [vmem:[#allocation3 + $0x1f8] sm:$0xff]  ;;  %v10860_v36 = vld [vmem:[#allocation3 + $0x130] sm:$0xff]  ;;  %v10859_v20 = vld [vmem:[#allocation3 + $0x128] sm:$0xff] }
 0x576   :  { %6590 = vmatpush.bf16.msra.mxu0 %v10826_v0  ;;  %v10868_v39 = vld [vmem:[#allocation3 + $0x170] sm:$0xff]  ;;  %v10867_v55 = vld [vmem:[#allocation3 + $0x168] sm:$0xff]  ;;  %v10858_v27 = vld [vmem:[#allocation3 + $0x120] sm:$0xff]  ;;  %v6067_v0 = vpack.c.bf16 %v6051_v18, %v6051_v18 }
 0x577   :  { %6603 = vmatpush.bf16.msra.mxu1 %v10834_v1  ;;  %v10876_v9 = vld [vmem:[#allocation3 + $0x1b0] sm:$0xff]  ;;  %v10875_v7 = vld [vmem:[#allocation3 + $0x1a8] sm:$0xff]  ;;  %v10866_v40 = vld [vmem:[#allocation3 + $0x160] sm:$0xff]  ;;  %v6068_v1 = vpack.c.bf16 %v6052_v52, %v6052_v52 }
 0x578   :  { %6616 = vmatpush.bf16.msra.mxu2 %v10842_v3  ;;  %v10884_v62 = vld [vmem:[#allocation3 + $0x1f0] sm:$0xff]  ;;  %v10883_v11 = vld [vmem:[#allocation3 + $0x1e8] sm:$0xff]  ;;  %v10874_v43 = vld [vmem:[#allocation3 + $0x1a0] sm:$0xff]  ;;  %v6069_v3 = vpack.c.bf16 %v6053_v2, %v6053_v2 }
 0x579   :  { %6629 = vmatpush.bf16.msra.mxu3 %v10850_v4  ;;  %v10882_v44 = vld [vmem:[#allocation3 + $0x1e0] sm:$0xff]  ;;  %v10857_v45 = vld [vmem:[#allocation3 + $0x118] sm:$0xff]  ;;  %v10856_v41 = vld [vmem:[#allocation3 + $0x110] sm:$0xff]  ;;  %v6070_v4 = vpack.c.bf16 %v6054_v13, %v6054_v13 }
 0x57a   :  { %6591 = vmatpush.bf16.msra.mxu0 %v10825_v10  ;;  %v10865_v48 = vld [vmem:[#allocation3 + $0x158] sm:$0xff]  ;;  %v10864_v6 = vld [vmem:[#allocation3 + $0x150] sm:$0xff]  ;;  %v10855_v57 = vld [vmem:[#allocation3 + $0x108] sm:$0xff] }
 0x57b   :  { %6604 = vmatpush.bf16.msra.mxu1 %v10833_v19  ;;  %v10873_v32 = vld [vmem:[#allocation3 + $0x198] sm:$0xff]  ;;  %v10872_v53 = vld [vmem:[#allocation3 + $0x190] sm:$0xff]  ;;  %v10863_v58 = vld [vmem:[#allocation3 + $0x148] sm:$0xff] }
 0x57c   :  { %6617 = vmatpush.bf16.msra.mxu2 %v10841_v12  ;;  %v10881_v8 = vld [vmem:[#allocation3 + $0x1d8] sm:$0xff]  ;;  %v10880_v14 = vld [vmem:[#allocation3 + $0x1d0] sm:$0xff]  ;;  %v10871_v25 = vld [vmem:[#allocation3 + $0x188] sm:$0xff] }
 0x57d   :  { %6630 = vmatpush.bf16.msra.mxu3 %v10849_v21  ;;  %v10879_v59 = vld [vmem:[#allocation3 + $0x1c8] sm:$0xff]  ;;  %v10854_v60 = vld [vmem:[#allocation3 + $0x100] sm:$0xff]  ;;  %v10898_v12 = vld [vmem:[#allocation13] ss:$0 sm:$0xff] }
 0x57e   :  { %6592 = vmatpush.bf16.msra.mxu0 %v10824_v38  ;;  %v10862_v50 = vld [vmem:[#allocation3 + $0x140] sm:$0xff] }
 0x57f   :  { %6605 = vmatpush.bf16.msra.mxu1 %v10832_v15  ;;  %v10870_v61 = vld [vmem:[#allocation3 + $0x180] sm:$0xff] }
 0x580   :  { %6618 = vmatpush.bf16.msra.mxu2 %v10840_v26  ;;  %v10878_v63 = vld [vmem:[#allocation3 + $0x1c0] sm:$0xff] }
 0x581   :  { %6631 = vmatpush.bf16.msra.mxu3 %v10848_v16 }
 0x582   :  { %6593 = vmatpush.bf16.msra.mxu0 %v10823_v5 }
 0x583   :  { %6606 = vmatpush.bf16.msra.mxu1 %v10831_v22 }
 0x584   :  { %6619 = vmatpush.bf16.msra.mxu2 %v10839_v54 }
 0x585   :  { %6632 = vmatpush.bf16.msra.mxu3 %v10847_v56 }
 0x586   :  { %6594 = vmatpush.bf16.msra.mxu0 %v10822_v46 }
 0x587   :  { %6607 = vmatpush.bf16.msra.mxu1 %v10830_v24 }
 0x588   :  { %6620 = vmatpush.bf16.msra.mxu2 %v10838_v29 }
 0x589   :  { %6633 = vmatpush.bf16.msra.mxu3 %v10846_v42  ;;  %6595 = vmatmul.bf16.vlgmr.msra.gmra.mxu0 %v6063_v35 }
 0x58a   :  { %6639 = vmatpush.bf16.msrb.mxu0 %v10861_v17  ;;  %6608 = vmatmul.bf16.vlgmr.msra.gmra.mxu1 %v6064_v23 }
 0x58b   :  { %6652 = vmatpush.bf16.msrb.mxu1 %v10869_v30  ;;  %6621 = vmatmul.bf16.vlgmr.msra.gmra.mxu2 %v6065_v33 }
 0x58c   :  { %6665 = vmatpush.bf16.msrb.mxu2 %v10877_v51  ;;  %6634 = vmatmul.bf16.vlgmr.msra.gmra.mxu3 %v6066_v34 }
 0x58d   :  { %6678 = vmatpush.bf16.msrb.mxu3 %v10885_v31 }
 0x58e   :  { %6640 = vmatpush.bf16.msrb.mxu0 %v10860_v36 }
 0x58f   :  { %6653 = vmatpush.bf16.msrb.mxu1 %v10868_v39 }
 0x590   :  { %6666 = vmatpush.bf16.msrb.mxu2 %v10876_v9 }
 0x591   :  { %6679 = vmatpush.bf16.msrb.mxu3 %v10884_v62 }
 0x592   :  { %6641 = vmatpush.bf16.msrb.mxu0 %v10859_v20 }
 0x593   :  { %6654 = vmatpush.bf16.msrb.mxu1 %v10867_v55 }
 0x594   :  { %6667 = vmatpush.bf16.msrb.mxu2 %v10875_v7 }
 0x595   :  { %6680 = vmatpush.bf16.msrb.mxu3 %v10883_v11 }
 0x596   :  { %6642 = vmatpush.bf16.msrb.mxu0 %v10858_v27 }
 0x597   :  { %6655 = vmatpush.bf16.msrb.mxu1 %v10866_v40 }
 0x598   :  { %6668 = vmatpush.bf16.msrb.mxu2 %v10874_v43 }
 0x599   :  { %6681 = vmatpush.bf16.msrb.mxu3 %v10882_v44 }
 0x59a   :  { %6643 = vmatpush.bf16.msrb.mxu0 %v10857_v45 }
 0x59b   :  { %6656 = vmatpush.bf16.msrb.mxu1 %v10865_v48 }
 0x59c   :  { %6669 = vmatpush.bf16.msrb.mxu2 %v10873_v32 }
 0x59d   :  { %6682 = vmatpush.bf16.msrb.mxu3 %v10881_v8 }
 0x59e   :  { %6644 = vmatpush.bf16.msrb.mxu0 %v10856_v41 }
 0x59f   :  { %6657 = vmatpush.bf16.msrb.mxu1 %v10864_v6 }
 0x5a0   :  { %6670 = vmatpush.bf16.msrb.mxu2 %v10872_v53 }
 0x5a1   :  { %6683 = vmatpush.bf16.msrb.mxu3 %v10880_v14 }
 0x5a2   :  { %6645 = vmatpush.bf16.msrb.mxu0 %v10855_v57 }
 0x5a3   :  { %6658 = vmatpush.bf16.msrb.mxu1 %v10863_v58 }
 0x5a4   :  { %6671 = vmatpush.bf16.msrb.mxu2 %v10871_v25 }
 0x5a5   :  { %6684 = vmatpush.bf16.msrb.mxu3 %v10879_v59 }
 0x5a6   :  { %6646 = vmatpush.bf16.msrb.mxu0 %v10854_v60 }
 0x5a7   :  { %6659 = vmatpush.bf16.msrb.mxu1 %v10862_v50 }
 0x5a8   :  { %6672 = vmatpush.bf16.msrb.mxu2 %v10870_v61 }
 0x5a9   :  { %6685 = vmatpush.bf16.msrb.mxu3 %v10878_v63  ;;  %6647 = vmatmul.bf16.vlgmr.msrb.gmra.mxu0 %v6067_v0 }
 0x5aa   :  { %6660 = vmatmul.bf16.vlgmr.msrb.gmra.mxu1 %v6068_v1 }
 0x5ab   :  { %6673 = vmatmul.bf16.vlgmr.msrb.gmra.mxu2 %v6069_v3 }
 0x5ac   :  { %6686 = vmatmul.bf16.vlgmr.msrb.gmra.mxu3 %v6070_v4 }
 0x606   :  { %v6596_v37 = vpop.f32.mrf.mxu0 }
 0x607   :  { %v6609_v18 = vpop.f32.mrf.mxu1  ;;  %v6597_v2 = vadd.f32 %v10898_v12, %v6596_v37 }
 0x609   :  { %v6610_v38 = vadd.f32 %v6609_v18, %v6597_v2 }
 0x60e   :  { %v6622_v47 = vpop.f32.mrf.mxu2  ;;  %v6598_v10 = vpop.f32.mrf.mxu0 }
 0x60f   :  { %v6635_v52 = vpop.f32.mrf.mxu3  ;;  %v6611_v19 = vpop.f32.mrf.mxu1  ;;  %v6623_v49 = vadd.f32 %v6622_v47, %v6610_v38 }
 0x611   :  { %v6636_v15 = vadd.f32 %v6635_v52, %v6623_v49 }
 0x616   :  { %v6624_v28 = vpop.f32.mrf.mxu2 }
 0x617   :  { %v6637_v21 = vpop.f32.mrf.mxu3 }
 0x626   :  { %v6648_v13 = vpop.f32.mrf.mxu0 }
 0x627   :  { %v6661_v26 = vpop.f32.mrf.mxu1  ;;  %v6649_v16 = vadd.f32 %v6648_v13, %v6636_v15 }
 0x629   :  { %v6662_v5 = vadd.f32 %v6661_v26, %v6649_v16 }
 0x62e   :  { %v6674_v22 = vpop.f32.mrf.mxu2  ;;  %v6650_v46 = vpop.f32.mrf.mxu0 }
 0x62f   :  { %v6687_v54 = vpop.f32.mrf.mxu3  ;;  %v6675_v56 = vadd.f32 %v6674_v22, %v6662_v5  ;;  %v6663_v24 = vpop.f32.mrf.mxu1 }
 0x631   :  { %v6688_v29 = vadd.f32 %v6687_v54, %v6675_v56 }
 0x633   :  { %6691 = vst [vmem:[#allocation14] sm:$0xff] %v6688_v29 }
 0x634   :  { %6702 = dma.vmem_to_hbm [thread:$0]  %s6698_s6, 128, %s6700_s12, [#allocation7]  }
 0x636   :  { %v6676_v42 = vpop.f32.mrf.mxu2 }
 0x637   :  { %v6689_v17 = vpop.f32.mrf.mxu3 }
 0x638   :  { %11101 = dma.done.wait [#allocation7], 128  }
 0x639   :  { %11102 = vsyncadd [#allocation7], 4294967168 }
 0x63a   :  { %6707 = vsyncpa [#allocation6], 1 }
 0x63b   :  { %6708 = vsyncpa [#allocation9], 1 }
 0x63c   :  { %6709 = vsyncpa [#allocation12], 1 }
 0x63d   :  { %6710 = vsyncpa [#allocation7], 1 }
 0x63e   :  { %6711 = vsyncmov [#allocation4] }
 0x641   :  { %s6712_s13 = vpop.sfrf %6711 }
 0x642   :  { %p10052_p0 = scmp.ne.s32.totalorder %s6712_s13, 0 }
 0x644   :  { %6716 = shalt.err (%p10052_p0)  }
 0x645   :  { %6718 = vsyncmov [#allocation4 + $0x1] }
 0x648   :  { %s6719_s7 = vpop.sfrf %6718 }
 0x649   :  { %p10053_p1 = scmp.ne.s32.totalorder %s6719_s7, 0 }
 0x64b   :  { %6723 = shalt.err (%p10053_p1)  }

</bundles_post_ra>
